<compile_context>
chip_gen: v6e
topology: v6e:2x2x1
jax: 0.10.0
libtpu: 0.0.40
codegen_flags: <defaults>
</compile_context>

<pallas_src>
import functools

import jax
import jax.numpy as jnp
from jax.experimental import pallas as pl
from jax.experimental.pallas import tpu as pltpu

BERT_DIM = 768      # bert_output_size
HIDDEN = 100        # LSTM hidden size (per direction)
HP = 128            # HIDDEN zero-padded to one full 128-lane vreg
NUM_LABELS = 26
OUT_PAD = 128       # label-head output padded to a full lane width
VOCAB = 32
SEGMENTS = 2


# ----------------------------- Pallas kernel --------------------------------

def _gates_act(pre):
    """One EUP pass over all four gates.

    `pre` is the (BP, 4*HP) pre-activation with the g-gate columns already
    scaled by 2 in the weights/bias, so tanh(g_pre) = 2*sigmoid(2*g_pre) - 1.
    sigmoid(x) = 1 / (1 + exp(-x)) with an approximate EUP reciprocal.
    Padded lanes: pre = 0 -> i/f/o = 0.5, g = 0, so padded c/h lanes stay 0.
    """
    s = pl.reciprocal(1.0 + jnp.exp(-pre), approx=True)
    i = s[:, 0 * HP:1 * HP]
    f = s[:, 1 * HP:2 * HP]
    g = 2.0 * s[:, 2 * HP:3 * HP] - 1.0
    o = s[:, 3 * HP:4 * HP]
    return i, f, g, o


def textrnn_kernel(x_ref, wih_ref, whh_f_ref, bias_ref, wl_ref, bl_ref,
                   out_ref, *, T, BP):
    # Hoisted input projection for BOTH directions + fused bias, one big MXU
    # matmul: (T*BP, 768) bf16 @ (768, 8*HP) bf16 -> (T*BP, 8*HP) f32.
    xw = jnp.dot(x_ref[...], wih_ref[...],
                 preferred_element_type=jnp.float32) + bias_ref[...]

    # ---- forward direction, t = 0 peeled (h = c = 0 -> gates = gx).
    i0, _, g0, o0 = _gates_act(xw[0:BP, 0:4 * HP])
    c = i0 * g0
    h = o0 * jnp.tanh(c)

    # Remaining steps: tiny (BP,128)@(128,512) f32 recurrent matmul + one EUP
    # pass per step. T is small & static -> fully unrolled, all slices static
    # and (8,128)-tile aligned.
    for t in range(1, T):
        gx = xw[t * BP:(t + 1) * BP, 0:4 * HP]
        pre = gx + jnp.dot(h, whh_f_ref[...],
                           preferred_element_type=jnp.float32)
        i, f, g, o = _gates_act(pre)
        c = f * c + i * g
        h = o * jnp.tanh(c)

    # ---- reverse direction: output[:, -1] of the reverse stream equals one
    # cell step on x[T-1] from zero state; the zero-state recurrent matmul
    # contributes nothing, so gates_b == gxb (lanes 4*HP .. 8*HP).
    ib, _, gb, ob = _gates_act(xw[(T - 1) * BP:T * BP, 4 * HP:8 * HP])
    cb = ib * gb
    hb = ob * jnp.tanh(cb)

    # ---- label head on concat([h_f, h_b], -1): single fused matmul against
    # row-stacked (2*HP, OUT_PAD) weights; padded rows/cols are zero.
    hcat = jnp.concatenate([h, hb], axis=1)            # (BP, 2*HP), lane-aligned
    logits = jnp.dot(hcat, wl_ref[...],
                     preferred_element_type=jnp.float32) + bl_ref[...]
    out_ref[...] = logits.astype(out_ref.dtype)


def textrnn_pallas(x_seq, kp):
    """x_seq: (T, B, BERT_DIM) float32 -> logits (B, NUM_LABELS) float32."""
    T, B, F = x_seq.shape
    assert F == BERT_DIM
    BP = max(8, -(-B // 8) * 8)                        # pad batch to 8 sublanes
    x_pad = jnp.pad(x_seq, ((0, 0), (0, BP - B), (0, 0)))
    x2d = x_pad.reshape(T * BP, F).astype(jnp.bfloat16)   # bf16 MXU operand
    vmem = pl.BlockSpec(memory_space=pltpu.MemorySpace.VMEM)
    out_pad = pl.pallas_call(
        functools.partial(textrnn_kernel, T=T, BP=BP),
        out_shape=jax.ShapeDtypeStruct((BP, OUT_PAD), jnp.float32),
        in_specs=[vmem] * 6,
        out_specs=vmem,
    )(x2d, kp["wih"], kp["whh_f"], kp["bias"], kp["wl"], kp["b_l"])
    return out_pad[:B, :NUM_LABELS]


# ------------------------------ glue (plain JAX) -----------------------------

def bert_stub(input_ids, segment_ids, input_mask, tok_emb, seg_emb):
    # TODO(synk): the real module runs an externally-supplied full BERT encoder
    # here; replaced by a deterministic token+segment embedding lookup.
    emb = tok_emb[input_ids] + seg_emb[segment_ids]          # (B, S, 768)
    return emb * input_mask[..., None].astype(emb.dtype)


def text_rnn_forward(torch_params, kernel_params, input_ids, segment_ids,
                     input_mask):
    result = bert_stub(input_ids, segment_ids, input_mask,
                       torch_params["tok_emb"], torch_params["seg_emb"])
    x = result[:, 1:-2, :]                                   # (B, T, 768)
    x = jnp.transpose(x, (1, 0, 2))                          # (T, B, 768)
    return textrnn_pallas(x, kernel_params)


# ------------------------------ parameters -----------------------------------

def init_torch_params(key):
    """Parameters in PyTorch nn.LSTM / nn.Linear layout (gate order i,f,g,o)."""
    ks = jax.random.split(key, 12)
    bound = 1.0 / jnp.sqrt(jnp.float32(HIDDEN))
    u = lambda k, s: jax.random.uniform(k, s, jnp.float32, -bound, bound)
    kb = 1.0 / jnp.sqrt(jnp.float32(2 * HIDDEN))
    return dict(
        w_ih_f=u(ks[0], (4 * HIDDEN, BERT_DIM)),
        w_hh_f=u(ks[1], (4 * HIDDEN, HIDDEN)),
        b_ih_f=u(ks[2], (4 * HIDDEN,)),
        b_hh_f=u(ks[3], (4 * HIDDEN,)),
        w_ih_b=u(ks[4], (4 * HIDDEN, BERT_DIM)),
        w_hh_b=u(ks[5], (4 * HIDDEN, HIDDEN)),   # unused: multiplies zero state
        b_ih_b=u(ks[6], (4 * HIDDEN,)),
        b_hh_b=u(ks[7], (4 * HIDDEN,)),
        w_label=jax.random.uniform(ks[8], (NUM_LABELS, 2 * HIDDEN),
                                   jnp.float32, -kb, kb),
        b_label=jax.random.uniform(ks[9], (NUM_LABELS,), jnp.float32, -kb, kb),
        # BERT stand-in embedding tables
        tok_emb=0.02 * jax.random.normal(ks[10], (VOCAB, BERT_DIM), jnp.float32),
        seg_emb=0.02 * jax.random.normal(ks[11], (SEGMENTS, BERT_DIM), jnp.float32),
    )


# Gate order (i, f, g, o); the g gate pre-activation is scaled x2 so the kernel
# can use a single sigmoid pass: tanh(x) = 2*sigmoid(2x) - 1.
_GATE_SCALE = jnp.array([1.0, 1.0, 2.0, 1.0], jnp.float32)


def prepare_kernel_params(p):
    """Fuse / transpose / zero-pad to 128 lanes / scale g gates for the kernel."""

    def gates_in(w):                               # (4H, In) -> (In, 4*HP)
        g = w.reshape(4, HIDDEN, w.shape[1]) * _GATE_SCALE[:, None, None]
        g = jnp.transpose(g, (2, 0, 1))            # (In, 4, H)
        g = jnp.pad(g, ((0, 0), (0, 0), (0, HP - HIDDEN)))
        return g.reshape(w.shape[1], 4 * HP)

    def gates_hh(w):                               # (4H, H) -> (HP, 4*HP)
        return jnp.pad(gates_in(w), ((0, HP - HIDDEN), (0, 0)))

    def gate_bias(b_ih, b_hh):                     # -> (4*HP,)
        b = (b_ih + b_hh).reshape(4, HIDDEN) * _GATE_SCALE[:, None]
        return jnp.pad(b, ((0, 0), (0, HP - HIDDEN))).reshape(4 * HP)

    def head_half(w_half):                         # (26, 100) -> (HP, OUT_PAD)
        return jnp.pad(w_half.T, ((0, HP - HIDDEN), (0, OUT_PAD - NUM_LABELS)))

    # Both directions' input projections fused into one (768, 8*HP) weight.
    wih = jnp.concatenate([gates_in(p["w_ih_f"]),
                           gates_in(p["w_ih_b"])], axis=1)
    bias = jnp.concatenate([gate_bias(p["b_ih_f"], p["b_hh_f"]),
                            gate_bias(p["b_ih_b"], p["b_hh_b"])])[None, :]
    # Label head: row-stacked halves so concat([h_f, h_b]) @ wl is one matmul.
    wl = jnp.concatenate([head_half(p["w_label"][:, :HIDDEN]),
                          head_half(p["w_label"][:, HIDDEN:])], axis=0)

    return dict(
        wih=wih.astype(jnp.bfloat16),              # big matmul: bf16 operands
        whh_f=gates_hh(p["w_hh_f"]),               # f32: tiny serial matmul
        bias=bias,                                 # f32
        wl=wl,                                     # f32
        b_l=jnp.pad(p["b_label"], (0, OUT_PAD - NUM_LABELS))[None, :],  # f32
    )


# ---------------------------------- main -------------------------------------

if __name__ == "__main__":
    params = init_torch_params(jax.random.PRNGKey(0))
    kparams = prepare_kernel_params(params)

    B, S = 2, 8                                    # T = S - 3 = 5
    k_ids, k_seg = jax.random.split(jax.random.PRNGKey(1))
    input_ids = jax.random.randint(k_ids, (B, S), 0, VOCAB, dtype=jnp.int32)
    segment_ids = jax.random.randint(k_seg, (B, S), 0, SEGMENTS, dtype=jnp.int32)
    input_mask = jnp.ones((B, S), dtype=jnp.int32)

    fwd = jax.jit(text_rnn_forward)
    logits = fwd(params, kparams, input_ids, segment_ids, input_mask)
    jax.block_until_ready(logits)
    assert logits.shape == (B, NUM_LABELS) and logits.dtype == jnp.float32
    print("KERNEL_OK")
</pallas_src>

<mosaic_0001>
module attributes {stable_mosaic.version = 11 : i64} {
  func.func @textrnn_kernel(%arg0: memref<40x768xbf16, #tpu.memory_space<vmem>>, %arg1: memref<768x1024xbf16, #tpu.memory_space<vmem>>, %arg2: memref<128x512xf32, #tpu.memory_space<vmem>>, %arg3: memref<1x1024xf32, #tpu.memory_space<vmem>>, %arg4: memref<256x128xf32, #tpu.memory_space<vmem>>, %arg5: memref<1x128xf32, #tpu.memory_space<vmem>>, %arg6: memref<8x128xf32, #tpu.memory_space<vmem>>) attributes {dimension_semantics = [], scalar_prefetch = 0 : i64, scratch_operands = 0 : i64, tpu.core_type = #tpu.core_type<tc>} {
    %c0 = arith.constant 0 : index
    %c0_0 = arith.constant 0 : index
    %0 = vector.load %arg0[%c0, %c0_0] : memref<40x768xbf16, #tpu.memory_space<vmem>>, vector<40x768xbf16>
    %c0_1 = arith.constant 0 : index
    %c0_2 = arith.constant 0 : index
    %1 = vector.load %arg1[%c0_1, %c0_2] : memref<768x1024xbf16, #tpu.memory_space<vmem>>, vector<768x1024xbf16>
    %cst = arith.constant dense<0.000000e+00> : vector<40x1024xf32>
    %2 = tpu.matmul %0, %1, %cst {dimension_numbers = #tpu.dot_dimension_numbers<[1], [0], [0], [1], [0, 0, 1, 1], [], []>} : vector<40x768xbf16>, vector<768x1024xbf16>, vector<40x1024xf32> -> vector<40x1024xf32>
    %c0_3 = arith.constant 0 : index
    %c0_4 = arith.constant 0 : index
    %3 = vector.load %arg3[%c0_3, %c0_4] : memref<1x1024xf32, #tpu.memory_space<vmem>>, vector<1x1024xf32>
    %4 = vector.broadcast %3 : vector<1x1024xf32> to vector<40x1024xf32>
    %5 = arith.addf %2, %4 : vector<40x1024xf32>
    %6 = vector.extract_strided_slice %5 {offsets = [0, 0], sizes = [8, 512], strides = [1, 1]} : vector<40x1024xf32> to vector<8x512xf32>
    %cst_5 = arith.constant 0.000000e+00 : f32
    %7 = vector.broadcast %cst_5 : f32 to vector<8x512xf32>
    %8 = arith.subf %7, %6 : vector<8x512xf32>
    %9 = math.exp %8 : vector<8x512xf32>
    %cst_6 = arith.constant 1.000000e+00 : f32
    %10 = vector.broadcast %cst_6 : f32 to vector<8x512xf32>
    %11 = arith.addf %10, %9 : vector<8x512xf32>
    %12 = tpu.reciprocal %11 {approx = true} : vector<8x512xf32> -> vector<8x512xf32>
    %13 = vector.extract_strided_slice %12 {offsets = [0, 0], sizes = [8, 128], strides = [1, 1]} : vector<8x512xf32> to vector<8x128xf32>
    %14 = vector.extract_strided_slice %12 {offsets = [0, 256], sizes = [8, 128], strides = [1, 1]} : vector<8x512xf32> to vector<8x128xf32>
    %cst_7 = arith.constant 2.000000e+00 : f32
    %15 = vector.broadcast %cst_7 : f32 to vector<8x128xf32>
    %16 = arith.mulf %15, %14 : vector<8x128xf32>
    %cst_8 = arith.constant 1.000000e+00 : f32
    %17 = vector.broadcast %cst_8 : f32 to vector<8x128xf32>
    %18 = arith.subf %16, %17 : vector<8x128xf32>
    %19 = vector.extract_strided_slice %12 {offsets = [0, 384], sizes = [8, 128], strides = [1, 1]} : vector<8x512xf32> to vector<8x128xf32>
    %20 = arith.mulf %13, %18 : vector<8x128xf32>
    %21 = math.tanh %20 : vector<8x128xf32>
    %22 = arith.mulf %19, %21 : vector<8x128xf32>
    %23 = vector.extract_strided_slice %5 {offsets = [8, 0], sizes = [8, 512], strides = [1, 1]} : vector<40x1024xf32> to vector<8x512xf32>
    %c0_9 = arith.constant 0 : index
    %c0_10 = arith.constant 0 : index
    %24 = vector.load %arg2[%c0_9, %c0_10] : memref<128x512xf32, #tpu.memory_space<vmem>>, vector<128x512xf32>
    %cst_11 = arith.constant dense<0.000000e+00> : vector<8x512xf32>
    %25 = tpu.matmul %22, %24, %cst_11 {dimension_numbers = #tpu.dot_dimension_numbers<[1], [0], [0], [1], [0, 0, 1, 1], [], []>} : vector<8x128xf32>, vector<128x512xf32>, vector<8x512xf32> -> vector<8x512xf32>
    %26 = arith.addf %23, %25 : vector<8x512xf32>
    %cst_12 = arith.constant 0.000000e+00 : f32
    %27 = vector.broadcast %cst_12 : f32 to vector<8x512xf32>
    %28 = arith.subf %27, %26 : vector<8x512xf32>
    %29 = math.exp %28 : vector<8x512xf32>
    %cst_13 = arith.constant 1.000000e+00 : f32
    %30 = vector.broadcast %cst_13 : f32 to vector<8x512xf32>
    %31 = arith.addf %30, %29 : vector<8x512xf32>
    %32 = tpu.reciprocal %31 {approx = true} : vector<8x512xf32> -> vector<8x512xf32>
    %33 = vector.extract_strided_slice %32 {offsets = [0, 0], sizes = [8, 128], strides = [1, 1]} : vector<8x512xf32> to vector<8x128xf32>
    %34 = vector.extract_strided_slice %32 {offsets = [0, 128], sizes = [8, 128], strides = [1, 1]} : vector<8x512xf32> to vector<8x128xf32>
    %35 = vector.extract_strided_slice %32 {offsets = [0, 256], sizes = [8, 128], strides = [1, 1]} : vector<8x512xf32> to vector<8x128xf32>
    %cst_14 = arith.constant 2.000000e+00 : f32
    %36 = vector.broadcast %cst_14 : f32 to vector<8x128xf32>
    %37 = arith.mulf %36, %35 : vector<8x128xf32>
    %cst_15 = arith.constant 1.000000e+00 : f32
    %38 = vector.broadcast %cst_15 : f32 to vector<8x128xf32>
    %39 = arith.subf %37, %38 : vector<8x128xf32>
    %40 = vector.extract_strided_slice %32 {offsets = [0, 384], sizes = [8, 128], strides = [1, 1]} : vector<8x512xf32> to vector<8x128xf32>
    %41 = arith.mulf %34, %20 : vector<8x128xf32>
    %42 = arith.mulf %33, %39 : vector<8x128xf32>
    %43 = arith.addf %41, %42 : vector<8x128xf32>
    %44 = math.tanh %43 : vector<8x128xf32>
    %45 = arith.mulf %40, %44 : vector<8x128xf32>
    %46 = vector.extract_strided_slice %5 {offsets = [16, 0], sizes = [8, 512], strides = [1, 1]} : vector<40x1024xf32> to vector<8x512xf32>
    %c0_16 = arith.constant 0 : index
    %c0_17 = arith.constant 0 : index
    %47 = vector.load %arg2[%c0_16, %c0_17] : memref<128x512xf32, #tpu.memory_space<vmem>>, vector<128x512xf32>
    %cst_18 = arith.constant dense<0.000000e+00> : vector<8x512xf32>
    %48 = tpu.matmul %45, %47, %cst_18 {dimension_numbers = #tpu.dot_dimension_numbers<[1], [0], [0], [1], [0, 0, 1, 1], [], []>} : vector<8x128xf32>, vector<128x512xf32>, vector<8x512xf32> -> vector<8x512xf32>
    %49 = arith.addf %46, %48 : vector<8x512xf32>
    %cst_19 = arith.constant 0.000000e+00 : f32
    %50 = vector.broadcast %cst_19 : f32 to vector<8x512xf32>
    %51 = arith.subf %50, %49 : vector<8x512xf32>
    %52 = math.exp %51 : vector<8x512xf32>
    %cst_20 = arith.constant 1.000000e+00 : f32
    %53 = vector.broadcast %cst_20 : f32 to vector<8x512xf32>
    %54 = arith.addf %53, %52 : vector<8x512xf32>
    %55 = tpu.reciprocal %54 {approx = true} : vector<8x512xf32> -> vector<8x512xf32>
    %56 = vector.extract_strided_slice %55 {offsets = [0, 0], sizes = [8, 128], strides = [1, 1]} : vector<8x512xf32> to vector<8x128xf32>
    %57 = vector.extract_strided_slice %55 {offsets = [0, 128], sizes = [8, 128], strides = [1, 1]} : vector<8x512xf32> to vector<8x128xf32>
    %58 = vector.extract_strided_slice %55 {offsets = [0, 256], sizes = [8, 128], strides = [1, 1]} : vector<8x512xf32> to vector<8x128xf32>
    %cst_21 = arith.constant 2.000000e+00 : f32
    %59 = vector.broadcast %cst_21 : f32 to vector<8x128xf32>
    %60 = arith.mulf %59, %58 : vector<8x128xf32>
    %cst_22 = arith.constant 1.000000e+00 : f32
    %61 = vector.broadcast %cst_22 : f32 to vector<8x128xf32>
    %62 = arith.subf %60, %61 : vector<8x128xf32>
    %63 = vector.extract_strided_slice %55 {offsets = [0, 384], sizes = [8, 128], strides = [1, 1]} : vector<8x512xf32> to vector<8x128xf32>
    %64 = arith.mulf %57, %43 : vector<8x128xf32>
    %65 = arith.mulf %56, %62 : vector<8x128xf32>
    %66 = arith.addf %64, %65 : vector<8x128xf32>
    %67 = math.tanh %66 : vector<8x128xf32>
    %68 = arith.mulf %63, %67 : vector<8x128xf32>
    %69 = vector.extract_strided_slice %5 {offsets = [24, 0], sizes = [8, 512], strides = [1, 1]} : vector<40x1024xf32> to vector<8x512xf32>
    %c0_23 = arith.constant 0 : index
    %c0_24 = arith.constant 0 : index
    %70 = vector.load %arg2[%c0_23, %c0_24] : memref<128x512xf32, #tpu.memory_space<vmem>>, vector<128x512xf32>
    %cst_25 = arith.constant dense<0.000000e+00> : vector<8x512xf32>
    %71 = tpu.matmul %68, %70, %cst_25 {dimension_numbers = #tpu.dot_dimension_numbers<[1], [0], [0], [1], [0, 0, 1, 1], [], []>} : vector<8x128xf32>, vector<128x512xf32>, vector<8x512xf32> -> vector<8x512xf32>
    %72 = arith.addf %69, %71 : vector<8x512xf32>
    %cst_26 = arith.constant 0.000000e+00 : f32
    %73 = vector.broadcast %cst_26 : f32 to vector<8x512xf32>
    %74 = arith.subf %73, %72 : vector<8x512xf32>
    %75 = math.exp %74 : vector<8x512xf32>
    %cst_27 = arith.constant 1.000000e+00 : f32
    %76 = vector.broadcast %cst_27 : f32 to vector<8x512xf32>
    %77 = arith.addf %76, %75 : vector<8x512xf32>
    %78 = tpu.reciprocal %77 {approx = true} : vector<8x512xf32> -> vector<8x512xf32>
    %79 = vector.extract_strided_slice %78 {offsets = [0, 0], sizes = [8, 128], strides = [1, 1]} : vector<8x512xf32> to vector<8x128xf32>
    %80 = vector.extract_strided_slice %78 {offsets = [0, 128], sizes = [8, 128], strides = [1, 1]} : vector<8x512xf32> to vector<8x128xf32>
    %81 = vector.extract_strided_slice %78 {offsets = [0, 256], sizes = [8, 128], strides = [1, 1]} : vector<8x512xf32> to vector<8x128xf32>
    %cst_28 = arith.constant 2.000000e+00 : f32
    %82 = vector.broadcast %cst_28 : f32 to vector<8x128xf32>
    %83 = arith.mulf %82, %81 : vector<8x128xf32>
    %cst_29 = arith.constant 1.000000e+00 : f32
    %84 = vector.broadcast %cst_29 : f32 to vector<8x128xf32>
    %85 = arith.subf %83, %84 : vector<8x128xf32>
    %86 = vector.extract_strided_slice %78 {offsets = [0, 384], sizes = [8, 128], strides = [1, 1]} : vector<8x512xf32> to vector<8x128xf32>
    %87 = arith.mulf %80, %66 : vector<8x128xf32>
    %88 = arith.mulf %79, %85 : vector<8x128xf32>
    %89 = arith.addf %87, %88 : vector<8x128xf32>
    %90 = math.tanh %89 : vector<8x128xf32>
    %91 = arith.mulf %86, %90 : vector<8x128xf32>
    %92 = vector.extract_strided_slice %5 {offsets = [32, 0], sizes = [8, 512], strides = [1, 1]} : vector<40x1024xf32> to vector<8x512xf32>
    %c0_30 = arith.constant 0 : index
    %c0_31 = arith.constant 0 : index
    %93 = vector.load %arg2[%c0_30, %c0_31] : memref<128x512xf32, #tpu.memory_space<vmem>>, vector<128x512xf32>
    %cst_32 = arith.constant dense<0.000000e+00> : vector<8x512xf32>
    %94 = tpu.matmul %91, %93, %cst_32 {dimension_numbers = #tpu.dot_dimension_numbers<[1], [0], [0], [1], [0, 0, 1, 1], [], []>} : vector<8x128xf32>, vector<128x512xf32>, vector<8x512xf32> -> vector<8x512xf32>
    %95 = arith.addf %92, %94 : vector<8x512xf32>
    %cst_33 = arith.constant 0.000000e+00 : f32
    %96 = vector.broadcast %cst_33 : f32 to vector<8x512xf32>
    %97 = arith.subf %96, %95 : vector<8x512xf32>
    %98 = math.exp %97 : vector<8x512xf32>
    %cst_34 = arith.constant 1.000000e+00 : f32
    %99 = vector.broadcast %cst_34 : f32 to vector<8x512xf32>
    %100 = arith.addf %99, %98 : vector<8x512xf32>
    %101 = tpu.reciprocal %100 {approx = true} : vector<8x512xf32> -> vector<8x512xf32>
    %102 = vector.extract_strided_slice %101 {offsets = [0, 0], sizes = [8, 128], strides = [1, 1]} : vector<8x512xf32> to vector<8x128xf32>
    %103 = vector.extract_strided_slice %101 {offsets = [0, 128], sizes = [8, 128], strides = [1, 1]} : vector<8x512xf32> to vector<8x128xf32>
    %104 = vector.extract_strided_slice %101 {offsets = [0, 256], sizes = [8, 128], strides = [1, 1]} : vector<8x512xf32> to vector<8x128xf32>
    %cst_35 = arith.constant 2.000000e+00 : f32
    %105 = vector.broadcast %cst_35 : f32 to vector<8x128xf32>
    %106 = arith.mulf %105, %104 : vector<8x128xf32>
    %cst_36 = arith.constant 1.000000e+00 : f32
    %107 = vector.broadcast %cst_36 : f32 to vector<8x128xf32>
    %108 = arith.subf %106, %107 : vector<8x128xf32>
    %109 = vector.extract_strided_slice %101 {offsets = [0, 384], sizes = [8, 128], strides = [1, 1]} : vector<8x512xf32> to vector<8x128xf32>
    %110 = arith.mulf %103, %89 : vector<8x128xf32>
    %111 = arith.mulf %102, %108 : vector<8x128xf32>
    %112 = arith.addf %110, %111 : vector<8x128xf32>
    %113 = math.tanh %112 : vector<8x128xf32>
    %114 = arith.mulf %109, %113 : vector<8x128xf32>
    %115 = vector.extract_strided_slice %5 {offsets = [32, 512], sizes = [8, 512], strides = [1, 1]} : vector<40x1024xf32> to vector<8x512xf32>
    %cst_37 = arith.constant 0.000000e+00 : f32
    %116 = vector.broadcast %cst_37 : f32 to vector<8x512xf32>
    %117 = arith.subf %116, %115 : vector<8x512xf32>
    %118 = math.exp %117 : vector<8x512xf32>
    %cst_38 = arith.constant 1.000000e+00 : f32
    %119 = vector.broadcast %cst_38 : f32 to vector<8x512xf32>
    %120 = arith.addf %119, %118 : vector<8x512xf32>
    %121 = tpu.reciprocal %120 {approx = true} : vector<8x512xf32> -> vector<8x512xf32>
    %122 = vector.extract_strided_slice %121 {offsets = [0, 0], sizes = [8, 128], strides = [1, 1]} : vector<8x512xf32> to vector<8x128xf32>
    %123 = vector.extract_strided_slice %121 {offsets = [0, 256], sizes = [8, 128], strides = [1, 1]} : vector<8x512xf32> to vector<8x128xf32>
    %cst_39 = arith.constant 2.000000e+00 : f32
    %124 = vector.broadcast %cst_39 : f32 to vector<8x128xf32>
    %125 = arith.mulf %124, %123 : vector<8x128xf32>
    %cst_40 = arith.constant 1.000000e+00 : f32
    %126 = vector.broadcast %cst_40 : f32 to vector<8x128xf32>
    %127 = arith.subf %125, %126 : vector<8x128xf32>
    %128 = vector.extract_strided_slice %121 {offsets = [0, 384], sizes = [8, 128], strides = [1, 1]} : vector<8x512xf32> to vector<8x128xf32>
    %129 = arith.mulf %122, %127 : vector<8x128xf32>
    %130 = math.tanh %129 : vector<8x128xf32>
    %131 = arith.mulf %128, %130 : vector<8x128xf32>
    %132 = tpu.concatenate %114, %131 in 1 : vector<8x128xf32>, vector<8x128xf32> -> vector<8x256xf32>
    %c0_41 = arith.constant 0 : index
    %c0_42 = arith.constant 0 : index
    %133 = vector.load %arg4[%c0_41, %c0_42] : memref<256x128xf32, #tpu.memory_space<vmem>>, vector<256x128xf32>
    %cst_43 = arith.constant dense<0.000000e+00> : vector<8x128xf32>
    %134 = tpu.matmul %132, %133, %cst_43 {dimension_numbers = #tpu.dot_dimension_numbers<[1], [0], [0], [1], [0, 0, 1, 1], [], []>} : vector<8x256xf32>, vector<256x128xf32>, vector<8x128xf32> -> vector<8x128xf32>
    %c0_44 = arith.constant 0 : index
    %c0_45 = arith.constant 0 : index
    %135 = vector.load %arg5[%c0_44, %c0_45] : memref<1x128xf32, #tpu.memory_space<vmem>>, vector<1x128xf32>
    %136 = vector.broadcast %135 : vector<1x128xf32> to vector<8x128xf32>
    %137 = arith.addf %134, %136 : vector<8x128xf32>
    %c0_46 = arith.constant 0 : index
    %c0_47 = arith.constant 0 : index
    %138 = vector.load %arg6[%c0_46, %c0_47] : memref<8x128xf32, #tpu.memory_space<vmem>>, vector<8x128xf32>
    tpu.vector_store %arg6[%c0_46, %c0_47], %137 {strides = array<i32>} : memref<8x128xf32, #tpu.memory_space<vmem>>, vector<8x128xf32>,
    return
  }
}

</mosaic_0001>

<bundles_post_ra>
// kernel: text_rnn_forward.1
= control target key start
LH: loop header
LB: loop body
LE: loop exit
PB: predicated region body
PF: predicated region fallthrough
CT: control target
= control target key end

     0   :  { %11 = vsyncpa [#allocation3], 0  ;;  %s5654_s0 = inlined_call_operand.vmem [shape: bf16[40,768], index: 0, kind: input, shape index: {}]   ;;  %s5655_s1 = inlined_call_operand.hbm [shape: bf16[768,1024], index: 1, kind: input, shape index: {}]   ;;  %s5656_s2 = inlined_call_operand.hbm [shape: f32[128,512], index: 2, kind: input, shape index: {}]   ;;  %s5657_s3 = inlined_call_operand.hbm [shape: f32[1,1024], index: 3, kind: input, shape index: {}]   ;;  %s5658_s4 = inlined_call_operand.hbm [shape: f32[256,128], index: 4, kind: input, shape index: {}]   ;;  %s5659_s5 = inlined_call_operand.hbm [shape: f32[1,128], index: 5, kind: input, shape index: {}]   ;;  %s5660_s6 = inlined_call_operand.vmem [shape: f32[8,128], index: 6, kind: output, shape index: {}]  }
   0x1   :  { %12 = vsyncpa [#allocation5], 0 }
   0x2   :  { %13 = vsyncpa [#allocation8], 0  ;;  %s4827_s21 = smov [#allocation4]   ;;  %s4828_s23 = smov [#allocation7]  }
   0x3   :  { %s33_s22 = sshll.u32 %s4827_s21, 4  ;;  %s55_s24 = sshll.u32 %s4828_s23, 4  ;;  %s34_s22 = int_to_ptr.vmem [resolvable:$true] %s33_s22  ;;  %s56_s24 = int_to_ptr.vmem [resolvable:$true] %s55_s24 }
   0x4   :  { %s4729_s25 = scalar_lea.vmem %s34_s22, 8192  ;;  %p4734_p1 = scmp.lt.s32.totalorder %s34_s22, %s34_s22 }
   0x5   :  { %p4730_p0 = scmp.ne.s32.totalorder %s34_s22, %s4729_s25  ;;  %p4735_p2 = scmp.lt.s32.totalorder %s4729_s25, %s4729_s25 }
   0x7   :  { %p4736_p3 = por %p4735_p2, %p4734_p1 }
   0x9   :  { %p4737_p4 = pnand %p4736_p3, %p4730_p0 }
   0xb   :  { %4740 = shalt.err (!%p4737_p4)
}
   0xc   :  { %s4829_s26 = smov 512   ;;  %s4830_s27 = smov 32  }
   0xd   :  { %39 = dma.hbm_to_vmem [thread:$0]  %s5656_s2, 8192, %s34_s22, [#allocation5], %s4829_s26, %s4829_s26, %s4830_s27  }
   0xe   :  { %s4749_s30 = scalar_lea.vmem %s56_s24, 4096  ;;  %p4754_p6 = scmp.lt.s32.totalorder %s56_s24, %s56_s24 }
   0xf   :  { %p4750_p5 = scmp.ne.s32.totalorder %s56_s24, %s4749_s30  ;;  %p4755_p7 = scmp.lt.s32.totalorder %s4749_s30, %s4749_s30 }
  0x11   :  { %p4756_p8 = por %p4755_p7, %p4754_p6 }
  0x13   :  { %p4757_p9 = pnand %p4756_p8, %p4750_p5 }
  0x15   :  { %4760 = shalt.err (!%p4757_p9)
}
  0x16   :  { %s4831_s7 = smov 128   ;;  %s4832_s8 = smov 8  }
  0x17   :  { %61 = dma.hbm_to_vmem [thread:$0]  %s5658_s4, 4096, %s56_s24, [#allocation8], %s4831_s7, %s4831_s7, %s4832_s8  }
  0x18   :  { %s4833_s11 = smov [#allocation2]   ;;  %s4834_s13 = smov [#allocation6]  }
  0x19   :  { %s21_s12 = sshll.u32 %s4833_s11, 4  ;;  %s46_s14 = sshll.u32 %s4834_s13, 4  ;;  %s22_s12 = int_to_ptr.vmem [resolvable:$true] %s21_s12  ;;  %s47_s14 = int_to_ptr.vmem [resolvable:$true] %s46_s14 }
  0x1a   :  { %s4769_s2 = scalar_lea.vmem %s22_s12, 49152  ;;  %p4774_p11 = scmp.lt.s32.totalorder %s22_s12, %s22_s12 }
  0x1b   :  { %p4770_p10 = scmp.ne.s32.totalorder %s22_s12, %s4769_s2  ;;  %p4775_p12 = scmp.lt.s32.totalorder %s4769_s2, %s4769_s2 }
  0x1d   :  { %p4776_p13 = por %p4775_p12, %p4774_p11 }
  0x1f   :  { %p4777_p0 = pnand %p4776_p13, %p4770_p10 }
  0x21   :  { %4780 = shalt.err (!%p4777_p0)
}
  0x22   :  { %27 = dma.hbm_to_vmem [thread:$0]  %s5655_s1, 49152, %s22_s12, [#allocation3], %s4829_s26, %s4829_s26, %s4830_s27  }
  0x23   :  { %s4789_s17 = scalar_lea.vmem %s47_s14, 128  ;;  %p4794_p2 = scmp.lt.s32.totalorder %s47_s14, %s47_s14 }
  0x24   :  { %p4790_p1 = scmp.ne.s32.totalorder %s47_s14, %s4789_s17  ;;  %p4795_p3 = scmp.lt.s32.totalorder %s4789_s17, %s4789_s17 }
  0x26   :  { %p4796_p4 = por %p4795_p3, %p4794_p2 }
  0x28   :  { %p4797_p5 = pnand %p4796_p4, %p4790_p1 }
  0x2a   :  { %4800 = shalt.err (!%p4797_p5)
}
  0x2b   :  { %49 = dma.hbm_to_vmem [thread:$0]  %s5657_s3, 128, %s47_s14, [#allocation5]  }
  0x2c   :  { %s4835_s19 = smov [#allocation9]  }
  0x2d   :  { %s68_s20 = sshll.u32 %s4835_s19, 4  ;;  %s69_s20 = int_to_ptr.vmem [resolvable:$true] %s68_s20 }
  0x2e   :  { %s4809_s21 = scalar_lea.vmem %s69_s20, 16  ;;  %s4813_s22 = scalar_lea.vmem %s69_s20, 32 }
  0x2f   :  { %p4810_p6 = scmp.ne.s32.totalorder %s69_s20, %s4809_s21  ;;  %p4814_p7 = scmp.lt.s32.totalorder %s69_s20, %s69_s20 }
  0x30   :  { %p4815_p8 = scmp.lt.s32.totalorder %s4813_s22, %s4809_s21 }
  0x32   :  { %p4816_p9 = por %p4815_p8, %p4814_p7 }
  0x34   :  { %p4817_p10 = pnand %p4816_p9, %p4810_p6 }
  0x36   :  { %4820 = shalt.err (!%p4817_p10)
}
  0x37   :  { %71 = dma.hbm_to_vmem [thread:$0]  %s5659_s5, 16, %s69_s20, [#allocation8]  }
  0x38   :  { %4821 = dma.done.wait [#allocation3], 49152  }
  0x39   :  { %4822 = vsyncadd [#allocation3], 4294918144 }
  0x3a   :  { %4823 = dma.done.wait [#allocation5], 8320  }
  0x3b   :  { %4824 = vsyncadd [#allocation5], 4294958976 }
  0x3c   :  { %4825 = dma.done.wait [#allocation8], 4112  }
  0x3d   :  { %4826 = vsyncadd [#allocation8], 4294963184  ;;  %v158_v0 = vld [vmem:[#allocation2 + $0x1c0] sm:$0xff] }
  0x3e   :  { %v162_v1 = vld [vmem:[#allocation2 + $0x1e0] sm:$0xff] }
  0x3f   :  { %v286_v2 = vld [vmem:[#allocation2 + $0x5c0] sm:$0xff]  ;;  %v4190_v3 = vcombine.high %v158_v0, %v162_v1  ;;  %v4189_v5 = vcombine.low %v158_v0, %v162_v1 }
  0x40   :  { %v290_v4 = vld [vmem:[#allocation2 + $0x5e0] sm:$0xff] }
  0x41   :  { %v150_v6 = vld [vmem:[#allocation2 + $0x180] sm:$0xff]  ;;  %v4318_v8 = vcombine.high %v286_v2, %v290_v4  ;;  %v4317_v9 = vcombine.low %v286_v2, %v290_v4  ;;  %2524 = vmatprep.subr.bf16.mxu0 %v4190_v3 }
  0x42   :  { %v154_v7 = vld [vmem:[#allocation2 + $0x1a0] sm:$0xff]  ;;  %2525 = vmatpush1.bf16.msra.mxu0 %v4189_v5 }
  0x43   :  { %v4182_v10 = vcombine.high %v150_v6, %v154_v7  ;;  %v278_v11 = vld [vmem:[#allocation2 + $0x580] sm:$0xff]  ;;  %2584 = vmatprep.subr.bf16.mxu1 %v4318_v8  ;;  %v4181_v18 = vcombine.low %v150_v6, %v154_v7 }
  0x44   :  { %v282_v12 = vld [vmem:[#allocation2 + $0x5a0] sm:$0xff]  ;;  %2585 = vmatpush1.bf16.msra.mxu1 %v4317_v9 }
  0x45   :  { %v142_v13 = vld [vmem:[#allocation2 + $0x140] sm:$0xff]  ;;  %v4310_v14 = vcombine.high %v278_v11, %v282_v12  ;;  %2526 = vmatprep.subr.bf16.mxu0 %v4182_v10  ;;  %v4309_v19 = vcombine.low %v278_v11, %v282_v12 }
  0x46   :  { %v146_v15 = vld [vmem:[#allocation2 + $0x160] sm:$0xff]  ;;  %2527 = vmatpush1.bf16.msra.mxu0 %v4181_v18 }
  0x47   :  { %v270_v16 = vld [vmem:[#allocation2 + $0x540] sm:$0xff]  ;;  %v4174_v20 = vcombine.high %v142_v13, %v146_v15  ;;  %2586 = vmatprep.subr.bf16.mxu1 %v4310_v14  ;;  %v4173_v26 = vcombine.low %v142_v13, %v146_v15 }
  0x48   :  { %v274_v17 = vld [vmem:[#allocation2 + $0x560] sm:$0xff]  ;;  %2587 = vmatpush1.bf16.msra.mxu1 %v4309_v19 }
  0x49   :  { %v4302_v21 = vcombine.high %v270_v16, %v274_v17  ;;  %v134_v22 = vld [vmem:[#allocation2 + $0x100] sm:$0xff]  ;;  %2528 = vmatprep.subr.bf16.mxu0 %v4174_v20  ;;  %v4301_v27 = vcombine.low %v270_v16, %v274_v17 }
  0x4a   :  { %v138_v23 = vld [vmem:[#allocation2 + $0x120] sm:$0xff]  ;;  %2529 = vmatpush1.bf16.msra.mxu0 %v4173_v26 }
  0x4b   :  { %v262_v24 = vld [vmem:[#allocation2 + $0x500] sm:$0xff]  ;;  %v4166_v28 = vcombine.high %v134_v22, %v138_v23  ;;  %2588 = vmatprep.subr.bf16.mxu1 %v4302_v21  ;;  %v4165_v34 = vcombine.low %v134_v22, %v138_v23 }
  0x4c   :  { %v266_v25 = vld [vmem:[#allocation2 + $0x520] sm:$0xff]  ;;  %2589 = vmatpush1.bf16.msra.mxu1 %v4301_v27 }
  0x4d   :  { %v4294_v29 = vcombine.high %v262_v24, %v266_v25  ;;  %v126_v30 = vld [vmem:[#allocation2 + $0xc0] sm:$0xff]  ;;  %2530 = vmatprep.subr.bf16.mxu0 %v4166_v28  ;;  %v4293_v35 = vcombine.low %v262_v24, %v266_v25 }
  0x4e   :  { %v130_v31 = vld [vmem:[#allocation2 + $0xe0] sm:$0xff]  ;;  %2531 = vmatpush1.bf16.msra.mxu0 %v4165_v34 }
  0x4f   :  { %v254_v32 = vld [vmem:[#allocation2 + $0x4c0] sm:$0xff]  ;;  %v4158_v36 = vcombine.high %v126_v30, %v130_v31  ;;  %2590 = vmatprep.subr.bf16.mxu1 %v4294_v29  ;;  %v4157_v42 = vcombine.low %v126_v30, %v130_v31 }
  0x50   :  { %v258_v33 = vld [vmem:[#allocation2 + $0x4e0] sm:$0xff]  ;;  %2591 = vmatpush1.bf16.msra.mxu1 %v4293_v35 }
  0x51   :  { %v4286_v37 = vcombine.high %v254_v32, %v258_v33  ;;  %v118_v38 = vld [vmem:[#allocation2 + $0x80] sm:$0xff]  ;;  %2532 = vmatprep.subr.bf16.mxu0 %v4158_v36  ;;  %v4285_v43 = vcombine.low %v254_v32, %v258_v33 }
  0x52   :  { %v122_v39 = vld [vmem:[#allocation2 + $0xa0] sm:$0xff]  ;;  %2533 = vmatpush1.bf16.msra.mxu0 %v4157_v42 }
  0x53   :  { %v246_v40 = vld [vmem:[#allocation2 + $0x480] sm:$0xff]  ;;  %v4150_v44 = vcombine.high %v118_v38, %v122_v39  ;;  %2592 = vmatprep.subr.bf16.mxu1 %v4286_v37  ;;  %v4149_v50 = vcombine.low %v118_v38, %v122_v39 }
  0x54   :  { %v250_v41 = vld [vmem:[#allocation2 + $0x4a0] sm:$0xff]  ;;  %2593 = vmatpush1.bf16.msra.mxu1 %v4285_v43 }
  0x55   :  { %v4278_v45 = vcombine.high %v246_v40, %v250_v41  ;;  %v110_v46 = vld [vmem:[#allocation2 + $0x40] sm:$0xff]  ;;  %2534 = vmatprep.subr.bf16.mxu0 %v4150_v44  ;;  %v4277_v52 = vcombine.low %v246_v40, %v250_v41 }
  0x56   :  { %v114_v47 = vld [vmem:[#allocation2 + $0x60] sm:$0xff]  ;;  %2535 = vmatpush1.bf16.msra.mxu0 %v4149_v50 }
  0x57   :  { %v238_v48 = vld [vmem:[#allocation2 + $0x440] sm:$0xff]  ;;  %v4142_v53 = vcombine.high %v110_v46, %v114_v47  ;;  %2594 = vmatprep.subr.bf16.mxu1 %v4278_v45  ;;  %v4141_v60 = vcombine.low %v110_v46, %v114_v47 }
  0x58   :  { %v242_v49 = vld [vmem:[#allocation2 + $0x460] sm:$0xff]  ;;  %2595 = vmatpush1.bf16.msra.mxu1 %v4277_v52 }
  0x59   :  { %v102_v51 = vld [vmem:[#allocation2] sm:$0xff]  ;;  %v4270_v55 = vcombine.high %v238_v48, %v242_v49  ;;  %2536 = vmatprep.subr.bf16.mxu0 %v4142_v53  ;;  %v4269_v61 = vcombine.low %v238_v48, %v242_v49 }
  0x5a   :  { %v106_v54 = vld [vmem:[#allocation2 + $0x20] sm:$0xff]  ;;  %2537 = vmatpush1.bf16.msra.mxu0 %v4141_v60 }
  0x5b   :  { %v4890_v56 = vld [vmem:[%s5654_s0 + $0x4] ss:$24 sps:$4 sm:$0xff]   ;;  %v4134_v62 = vcombine.high %v102_v51, %v106_v54  ;;  %2596 = vmatprep.subr.bf16.mxu1 %v4270_v55  ;;  %v4133_v4 = vcombine.low %v102_v51, %v106_v54 }
  0x5c   :  { %v230_v57 = vld [vmem:[#allocation2 + $0x400] sm:$0xff]  ;;  %2556 = vmatprep.mubr.bf16.mxu0 %v4890_v56  ;;  %2597 = vmatpush1.bf16.msra.mxu1 %v4269_v61 }
  0x5d   :  { %v234_v58 = vld [vmem:[#allocation2 + $0x420] sm:$0xff]  ;;  %2538 = vmatprep.subr.bf16.mxu0 %v4134_v62 }
  0x5e   :  { %v4895_v59 = vld [vmem:[%s5654_s0 + $0xc] ss:$24 sps:$4 sm:$0xff]   ;;  %v4262_v63 = vcombine.high %v230_v57, %v234_v58  ;;  %v4261_v5 = vcombine.low %v230_v57, %v234_v58  ;;  %2539 = vmatpush1.bf16.msra.mxu0 %v4133_v4 }
  0x5f   :  { %v222_v0 = vld [vmem:[#allocation2 + $0x3c0] sm:$0xff]  ;;  %2616 = vmatprep.mubr.bf16.mxu1 %v4895_v59  ;;  %v159_v4 = vld [vmem:[#allocation2 + $0x1c8] sm:$0xff] }
  0x60   :  { %v226_v1 = vld [vmem:[#allocation2 + $0x3e0] sm:$0xff]  ;;  %2598 = vmatprep.subr.bf16.mxu1 %v4262_v63 }
  0x61   :  { %v350_v2 = vld [vmem:[#allocation2 + $0x7c0] sm:$0xff]  ;;  %v4254_v6 = vcombine.high %v222_v0, %v226_v1  ;;  %v4253_v12 = vcombine.low %v222_v0, %v226_v1  ;;  %2599 = vmatpush1.bf16.msra.mxu1 %v4261_v5  ;;  %v163_v5 = vld [vmem:[#allocation2 + $0x1e8] sm:$0xff] }
  0x62   :  { %v354_v3 = vld [vmem:[#allocation2 + $0x7e0] sm:$0xff] }
  0x63   :  { %v4382_v7 = vcombine.high %v350_v2, %v354_v3  ;;  %v214_v8 = vld [vmem:[#allocation2 + $0x380] sm:$0xff]  ;;  %2540 = vmatprep.subr.bf16.mxu0 %v4254_v6  ;;  %v4381_v13 = vcombine.low %v350_v2, %v354_v3 }
  0x64   :  { %v218_v9 = vld [vmem:[#allocation2 + $0x3a0] sm:$0xff]  ;;  %2541 = vmatpush2.bf16.msra.mxu0 %v4253_v12 }
  0x65   :  { %v342_v10 = vld [vmem:[#allocation2 + $0x780] sm:$0xff]  ;;  %v4246_v14 = vcombine.high %v214_v8, %v218_v9  ;;  %2600 = vmatprep.subr.bf16.mxu1 %v4382_v7  ;;  %v4245_v20 = vcombine.low %v214_v8, %v218_v9  ;;  %v4192_v9 = vcombine.high %v159_v4, %v163_v5 }
  0x66   :  { %v346_v11 = vld [vmem:[#allocation2 + $0x7a0] sm:$0xff]  ;;  %2601 = vmatpush2.bf16.msra.mxu1 %v4381_v13  ;;  %v151_v13 = vld [vmem:[#allocation2 + $0x188] sm:$0xff] }
  0x67   :  { %v4374_v15 = vcombine.high %v342_v10, %v346_v11  ;;  %v206_v16 = vld [vmem:[#allocation2 + $0x340] sm:$0xff]  ;;  %2542 = vmatprep.subr.bf16.mxu0 %v4246_v14  ;;  %v4373_v21 = vcombine.low %v342_v10, %v346_v11  ;;  %v155_v14 = vld [vmem:[#allocation2 + $0x1a8] sm:$0xff] }
  0x68   :  { %v210_v17 = vld [vmem:[#allocation2 + $0x360] sm:$0xff]  ;;  %2543 = vmatpush2.bf16.msra.mxu0 %v4245_v20 }
  0x69   :  { %v334_v18 = vld [vmem:[#allocation2 + $0x740] sm:$0xff]  ;;  %v4238_v22 = vcombine.high %v206_v16, %v210_v17  ;;  %2602 = vmatprep.subr.bf16.mxu1 %v4374_v15  ;;  %v4237_v28 = vcombine.low %v206_v16, %v210_v17  ;;  %v4191_v17 = vcombine.low %v159_v4, %v163_v5  ;;  %v115_v4 = vld [vmem:[#allocation2 + $0x68] sm:$0xff] }
  0x6a   :  { %v338_v19 = vld [vmem:[#allocation2 + $0x760] sm:$0xff]  ;;  %2603 = vmatpush2.bf16.msra.mxu1 %v4373_v21 }
  0x6b   :  { %v4366_v23 = vcombine.high %v334_v18, %v338_v19  ;;  %v198_v24 = vld [vmem:[#allocation2 + $0x300] sm:$0xff]  ;;  %2544 = vmatprep.subr.bf16.mxu0 %v4238_v22  ;;  %v4365_v29 = vcombine.low %v334_v18, %v338_v19  ;;  %v4184_v19 = vcombine.high %v151_v13, %v155_v14  ;;  %v4912_v22 = vld [vmem:[%s5654_s0 + $0x34] ss:$24 sps:$4 sm:$0xff]  }
  0x6c   :  { %v202_v25 = vld [vmem:[#allocation2 + $0x320] sm:$0xff]  ;;  %2545 = vmatpush2.bf16.msra.mxu0 %v4237_v28 }
  0x6d   :  { %v326_v26 = vld [vmem:[#allocation2 + $0x700] sm:$0xff]  ;;  %v4230_v30 = vcombine.high %v198_v24, %v202_v25  ;;  %2604 = vmatprep.subr.bf16.mxu1 %v4366_v23  ;;  %v4229_v36 = vcombine.low %v198_v24, %v202_v25  ;;  %v143_v23 = vld [vmem:[#allocation2 + $0x148] sm:$0xff]  ;;  %v4918_v25 = vld [vmem:[%s5654_s0 + $0x3c] ss:$24 sps:$4 sm:$0xff]  }
  0x6e   :  { %v330_v27 = vld [vmem:[#allocation2 + $0x720] sm:$0xff]  ;;  %2605 = vmatpush2.bf16.msra.mxu1 %v4365_v29  ;;  %v147_v24 = vld [vmem:[#allocation2 + $0x168] sm:$0xff] }
  0x6f   :  { %v4358_v31 = vcombine.high %v326_v26, %v330_v27  ;;  %v190_v32 = vld [vmem:[#allocation2 + $0x2c0] sm:$0xff]  ;;  %2546 = vmatprep.subr.bf16.mxu0 %v4230_v30  ;;  %v4357_v37 = vcombine.low %v326_v26, %v330_v27  ;;  %v4183_v27 = vcombine.low %v151_v13, %v155_v14  ;;  %v4176_v29 = vcombine.high %v143_v23, %v147_v24  ;;  %v107_v13 = vld [vmem:[#allocation2 + $0x28] sm:$0xff] }
  0x70   :  { %v194_v33 = vld [vmem:[#allocation2 + $0x2e0] sm:$0xff]  ;;  %2547 = vmatpush2.bf16.msra.mxu0 %v4229_v36 }
  0x71   :  { %v318_v34 = vld [vmem:[#allocation2 + $0x6c0] sm:$0xff]  ;;  %v4222_v38 = vcombine.high %v190_v32, %v194_v33  ;;  %2606 = vmatprep.subr.bf16.mxu1 %v4358_v31  ;;  %v4221_v44 = vcombine.low %v190_v32, %v194_v33  ;;  %v135_v32 = vld [vmem:[#allocation2 + $0x108] sm:$0xff] }
  0x72   :  { %v322_v35 = vld [vmem:[#allocation2 + $0x6e0] sm:$0xff]  ;;  %2607 = vmatpush2.bf16.msra.mxu1 %v4357_v37  ;;  %v139_v33 = vld [vmem:[#allocation2 + $0x128] sm:$0xff]  ;;  %v4934_v37 = vld [vmem:[%s5654_s0 + $0x38] ss:$24 sps:$4 sm:$0xff]  }
  0x73   :  { %v4350_v39 = vcombine.high %v318_v34, %v322_v35  ;;  %v182_v40 = vld [vmem:[#allocation2 + $0x280] sm:$0xff]  ;;  %2548 = vmatprep.subr.bf16.mxu0 %v4222_v38  ;;  %v4349_v45 = vcombine.low %v318_v34, %v322_v35  ;;  %v4925_v34 = vld [vmem:[%s5654_s0 + $0x30] ss:$24 sps:$4 sm:$0xff]  }
  0x74   :  { %v186_v41 = vld [vmem:[#allocation2 + $0x2a0] sm:$0xff]  ;;  %2549 = vmatpush2.bf16.msra.mxu0 %v4221_v44  ;;  %v100_v38 = vld [vmem:[%s5654_s0 + $0x68] sm:$0xff] }
  0x75   :  { %v310_v42 = vld [vmem:[#allocation2 + $0x680] sm:$0xff]  ;;  %v4214_v46 = vcombine.high %v182_v40, %v186_v41  ;;  %2608 = vmatprep.subr.bf16.mxu1 %v4350_v39  ;;  %v4213_v52 = vcombine.low %v182_v40, %v186_v41  ;;  %v4175_v39 = vcombine.low %v143_v23, %v147_v24  ;;  %v4168_v41 = vcombine.high %v135_v32, %v139_v33  ;;  %v227_v23 = vld [vmem:[#allocation2 + $0x3e8] sm:$0xff] }
  0x76   :  { %v314_v43 = vld [vmem:[#allocation2 + $0x6a0] sm:$0xff]  ;;  %2609 = vmatpush2.bf16.msra.mxu1 %v4349_v45  ;;  %v127_v45 = vld [vmem:[#allocation2 + $0xc8] sm:$0xff] }
  0x77   :  { %v4342_v47 = vcombine.high %v310_v42, %v314_v43  ;;  %v174_v48 = vld [vmem:[#allocation2 + $0x240] sm:$0xff]  ;;  %2550 = vmatprep.subr.bf16.mxu0 %v4214_v46  ;;  %v4341_v53 = vcombine.low %v310_v42, %v314_v43  ;;  %v131_v46 = vld [vmem:[#allocation2 + $0xe8] sm:$0xff] }
  0x78   :  { %v178_v49 = vld [vmem:[#allocation2 + $0x260] sm:$0xff]  ;;  %2551 = vmatpush2.bf16.msra.mxu0 %v4213_v52 }
  0x79   :  { %v302_v50 = vld [vmem:[#allocation2 + $0x640] sm:$0xff]  ;;  %v4206_v54 = vcombine.high %v174_v48, %v178_v49  ;;  %2610 = vmatprep.subr.bf16.mxu1 %v4342_v47  ;;  %v4205_v62 = vcombine.low %v174_v48, %v178_v49  ;;  %v4942_v47 = vcombine.high %v100_v38, %v100_v38  ;;  %v4167_v49 = vcombine.low %v135_v32, %v139_v33 }
  0x7a   :  { %v306_v51 = vld [vmem:[#allocation2 + $0x660] sm:$0xff]  ;;  %2611 = vmatpush2.bf16.msra.mxu1 %v4341_v53 }
  0x7b   :  { %v4334_v55 = vcombine.high %v302_v50, %v306_v51  ;;  %v166_v57 = vld [vmem:[#allocation2 + $0x200] sm:$0xff]  ;;  %2552 = vmatprep.subr.bf16.mxu0 %v4206_v54  ;;  %v4333_v63 = vcombine.low %v302_v50, %v306_v51  ;;  %v4160_v51 = vcombine.high %v127_v45, %v131_v46  ;;  %v119_v54 = vld [vmem:[#allocation2 + $0x88] sm:$0xff] }
  0x7c   :  { %v170_v58 = vld [vmem:[#allocation2 + $0x220] sm:$0xff]  ;;  %2553 = vmatpush2.bf16.msra.mxu0 %v4205_v62 }
  0x7d   :  { %v294_v60 = vld [vmem:[#allocation2 + $0x600] sm:$0xff]  ;;  %v4198_v0 = vcombine.high %v166_v57, %v170_v58  ;;  %2612 = vmatprep.subr.bf16.mxu1 %v4334_v55  ;;  %v4197_v6 = vcombine.low %v166_v57, %v170_v58  ;;  %v123_v55 = vld [vmem:[#allocation2 + $0xa8] sm:$0xff] }
  0x7e   :  { %v298_v61 = vld [vmem:[#allocation2 + $0x620] sm:$0xff]  ;;  %2613 = vmatpush2.bf16.msra.mxu1 %v4333_v63  ;;  %v4152_v63 = vcombine.high %v119_v54, %v123_v55 }
  0x7f   :  { %v4326_v1 = vcombine.high %v294_v60, %v298_v61  ;;  %v414_v2 = vld [vmem:[#allocation2 + $0x9c0] sm:$0xff]  ;;  %2554 = vmatprep.subr.bf16.mxu0 %v4198_v0  ;;  %v4325_v7 = vcombine.low %v294_v60, %v298_v61  ;;  %v4949_v60 = vcombine.low %v100_v38, %v100_v38  ;;  %v4159_v61 = vcombine.low %v127_v45, %v131_v46 }
  0x80   :  { %v418_v3 = vld [vmem:[#allocation2 + $0x9e0] sm:$0xff]  ;;  %2555 = vmatpush2.bf16.msra.mxu0 %v4197_v6  ;;  %v4151_v6 = vcombine.low %v119_v54, %v123_v55 }
  0x81   :  { %v4446_v8 = vcombine.high %v414_v2, %v418_v3  ;;  %2614 = vmatprep.subr.bf16.mxu1 %v4326_v1  ;;  %v406_v10 = vld [vmem:[#allocation2 + $0x980] sm:$0xff]  ;;  %v4445_v16 = vcombine.low %v414_v2, %v418_v3  ;;  %v4954_v2 = vld [vmem:[%s5654_s0 + $0x14] ss:$24 sps:$4 sm:$0xff]  }
  0x82   :  { %v410_v11 = vld [vmem:[#allocation2 + $0x9a0] sm:$0xff]  ;;  %2615 = vmatpush2.bf16.msra.mxu1 %v4325_v7  ;;  %v111_v3 = vld [vmem:[#allocation2 + $0x48] sm:$0xff] }
  0x83   :  { %v4902_v12 = vld [vmem:[%s5654_s0] ss:$24 sps:$4 sm:$0xff]   ;;  %2644 = vmatprep.subr.bf16.mxu0 %v4446_v8  ;;  %v4438_v18 = vcombine.high %v406_v10, %v410_v11  ;;  %2704 = vmatprep.subr.bf16.mxu1 %v4192_v9  ;;  %v4437_v26 = vcombine.low %v406_v10, %v410_v11  ;;  %v4144_v8 = vcombine.high %v111_v3, %v115_v4  ;;  %v103_v11 = vld [vmem:[#allocation2 + $0x8] sm:$0xff] }
  0x84   :  { %v4907_v15 = vld [vmem:[%s5654_s0 + $0x8] ss:$24 sps:$4 sm:$0xff]   ;;  %2557 = vmatmul.mubr.bf16.vlgmr.msra.gmra.mxu0 %v4902_v12 }
  0x85   :  { %v398_v20 = vld [vmem:[#allocation2 + $0x940] sm:$0xff]  ;;  %2617 = vmatmul.mubr.bf16.vlgmr.msra.gmra.mxu1 %v4907_v15  ;;  %2645 = vmatpush1.bf16.msra.mxu0 %v4445_v16  ;;  %v4143_v16 = vcombine.low %v111_v3, %v115_v4 }
  0x86   :  { %v402_v21 = vld [vmem:[#allocation2 + $0x960] sm:$0xff]  ;;  %2705 = vmatpush1.bf16.msra.mxu1 %v4191_v17  ;;  %2646 = vmatprep.subr.bf16.mxu0 %v4438_v18  ;;  %v4136_v18 = vcombine.high %v103_v11, %v107_v13 }
  0x87   :  { %v4430_v28 = vcombine.high %v398_v20, %v402_v21  ;;  %2706 = vmatprep.subr.bf16.mxu1 %v4184_v19  ;;  %v390_v30 = vld [vmem:[#allocation2 + $0x900] sm:$0xff]  ;;  %2565 = vmatprep.mubr.bf16.mxu0 %v4912_v22  ;;  %v4429_v36 = vcombine.low %v398_v20, %v402_v21  ;;  %v223_v21 = vld [vmem:[#allocation2 + $0x3c8] sm:$0xff] }
  0x88   :  { %v394_v31 = vld [vmem:[#allocation2 + $0x920] sm:$0xff]  ;;  %2625 = vmatprep.mubr.bf16.mxu1 %v4918_v25  ;;  %v4255_v33 = vcombine.low %v223_v21, %v227_v23 }
  0x89   :  { %v99_v35 = vld [vmem:[%s5654_s0 + $0x60] sm:$0xff]  ;;  %2647 = vmatpush1.bf16.msra.mxu0 %v4437_v26  ;;  %v4422_v40 = vcombine.high %v390_v30, %v394_v31  ;;  %v4421_v48 = vcombine.low %v390_v30, %v394_v31  ;;  %v4135_v26 = vcombine.low %v103_v11, %v107_v13  ;;  %v215_v30 = vld [vmem:[#allocation2 + $0x388] sm:$0xff] }
  0x8a   :  { %2707 = vmatpush1.bf16.msra.mxu1 %v4183_v27  ;;  %2648 = vmatprep.subr.bf16.mxu0 %v4430_v28  ;;  %v382_v42 = vld [vmem:[#allocation2 + $0x8c0] sm:$0xff]  ;;  %v4939_v44 = vcombine.high %v99_v35, %v99_v35  ;;  %v4946_v57 = vcombine.low %v99_v35, %v99_v35  ;;  %v219_v31 = vld [vmem:[#allocation2 + $0x3a8] sm:$0xff] }
  0x8b   :  { %2708 = vmatprep.subr.bf16.mxu1 %v4176_v29  ;;  %v386_v43 = vld [vmem:[#allocation2 + $0x8e0] sm:$0xff] }
  0x8c   :  { %2566 = vmatmul.mubr.bf16.gmra.mxu0 %v4925_v34  ;;  %v4414_v50 = vcombine.high %v382_v42, %v386_v43  ;;  %v374_v52 = vld [vmem:[#allocation2 + $0x880] sm:$0xff]  ;;  %v4413_v58 = vcombine.low %v382_v42, %v386_v43  ;;  %v4247_v43 = vcombine.low %v215_v30, %v219_v31 }
  0x8d   :  { %2649 = vmatpush1.bf16.msra.mxu0 %v4429_v36  ;;  %2626 = vmatmul.mubr.bf16.gmra.mxu1 %v4934_v37  ;;  %v378_v53 = vld [vmem:[#allocation2 + $0x8a0] sm:$0xff]  ;;  %v4248_v36 = vcombine.high %v215_v30, %v219_v31 }
  0x8e   :  { %2709 = vmatpush1.bf16.msra.mxu1 %v4175_v39  ;;  %2650 = vmatprep.subr.bf16.mxu0 %v4422_v40  ;;  %v4406_v62 = vcombine.high %v374_v52, %v378_v53  ;;  %v366_v0 = vld [vmem:[#allocation2 + $0x840] sm:$0xff]  ;;  %v4405_v5 = vcombine.low %v374_v52, %v378_v53  ;;  %v207_v40 = vld [vmem:[#allocation2 + $0x348] sm:$0xff] }
  0x8f   :  { %2710 = vmatprep.subr.bf16.mxu1 %v4168_v41  ;;  %2575 = vmatprep.mubr.bf16.mxu0 %v4939_v44  ;;  %v370_v1 = vld [vmem:[#allocation2 + $0x860] sm:$0xff]  ;;  %v211_v41 = vld [vmem:[#allocation2 + $0x368] sm:$0xff] }
  0x90   :  { %2635 = vmatprep.mubr.bf16.mxu1 %v4942_v47  ;;  %v4398_v7 = vcombine.high %v366_v0, %v370_v1  ;;  %v358_v9 = vld [vmem:[#allocation2 + $0x800] sm:$0xff]  ;;  %v4397_v14 = vcombine.low %v366_v0, %v370_v1  ;;  %v4240_v46 = vcombine.high %v207_v40, %v211_v41  ;;  %v4239_v53 = vcombine.low %v207_v40, %v211_v41 }
  0x91   :  { %2651 = vmatpush1.bf16.msra.mxu0 %v4421_v48  ;;  %v362_v10 = vld [vmem:[#allocation2 + $0x820] sm:$0xff] }
  0x92   :  { %2711 = vmatpush1.bf16.msra.mxu1 %v4167_v49  ;;  %2652 = vmatprep.subr.bf16.mxu0 %v4414_v50  ;;  %v4390_v17 = vcombine.high %v358_v9, %v362_v10  ;;  %v478_v19 = vld [vmem:[#allocation2 + $0xbc0] sm:$0xff]  ;;  %v4389_v24 = vcombine.low %v358_v9, %v362_v10  ;;  %v199_v50 = vld [vmem:[#allocation2 + $0x308] sm:$0xff] }
  0x93   :  { %2712 = vmatprep.subr.bf16.mxu1 %v4160_v51  ;;  %v482_v20 = vld [vmem:[#allocation2 + $0xbe0] sm:$0xff]  ;;  %v203_v51 = vld [vmem:[#allocation2 + $0x328] sm:$0xff] }
  0x94   :  { %2576 = vmatmul.mubr.bf16.gmra.mxu0 %v4946_v57  ;;  %v4510_v27 = vcombine.high %v478_v19, %v482_v20  ;;  %v470_v28 = vld [vmem:[#allocation2 + $0xb80] sm:$0xff]  ;;  %v4509_v32 = vcombine.low %v478_v19, %v482_v20  ;;  %v4232_v55 = vcombine.high %v199_v50, %v203_v51  ;;  %v4231_v1 = vcombine.low %v199_v50, %v203_v51 }
  0x95   :  { %2653 = vmatpush1.bf16.msra.mxu0 %v4413_v58  ;;  %2636 = vmatmul.mubr.bf16.gmra.mxu1 %v4949_v60  ;;  %v474_v29 = vld [vmem:[#allocation2 + $0xba0] sm:$0xff] }
  0x96   :  { %2713 = vmatpush1.bf16.msra.mxu1 %v4159_v61  ;;  %2654 = vmatprep.subr.bf16.mxu0 %v4406_v62  ;;  %v4502_v35 = vcombine.high %v470_v28, %v474_v29  ;;  %v462_v38 = vld [vmem:[#allocation2 + $0xb40] sm:$0xff]  ;;  %v4501_v42 = vcombine.low %v470_v28, %v474_v29  ;;  %v191_v62 = vld [vmem:[#allocation2 + $0x2c8] sm:$0xff] }
  0x97   :  { %2714 = vmatprep.subr.bf16.mxu1 %v4152_v63  ;;  %2676 = vmatprep.mubr.bf16.mxu0 %v4954_v2  ;;  %v466_v39 = vld [vmem:[#allocation2 + $0xb60] sm:$0xff]  ;;  %v195_v63 = vld [vmem:[#allocation2 + $0x2e8] sm:$0xff] }
  0x98   :  { %2736 = vmatprep.mubr.bf16.mxu1 %v4890_v56  ;;  %v4256_v56 = vcombine.high %v223_v21, %v227_v23  ;;  %v4494_v45 = vcombine.high %v462_v38, %v466_v39  ;;  %v454_v48 = vld [vmem:[#allocation2 + $0xb00] sm:$0xff]  ;;  %v4493_v52 = vcombine.low %v462_v38, %v466_v39  ;;  %v4224_v4 = vcombine.high %v191_v62, %v195_v63 }
  0x99   :  { %2655 = vmatpush1.bf16.msra.mxu0 %v4405_v5  ;;  %v458_v49 = vld [vmem:[#allocation2 + $0xb20] sm:$0xff]  ;;  %v4223_v10 = vcombine.low %v191_v62, %v195_v63 }
  0x9a   :  { %2715 = vmatpush1.bf16.msra.mxu1 %v4151_v6  ;;  %2656 = vmatprep.subr.bf16.mxu0 %v4398_v7  ;;  %v4486_v54 = vcombine.high %v454_v48, %v458_v49  ;;  %v446_v58 = vld [vmem:[#allocation2 + $0xac0] sm:$0xff]  ;;  %v4485_v0 = vcombine.low %v454_v48, %v458_v49  ;;  %v183_v7 = vld [vmem:[#allocation2 + $0x288] sm:$0xff] }
  0x9b   :  { %2716 = vmatprep.subr.bf16.mxu1 %v4144_v8  ;;  %v450_v61 = vld [vmem:[#allocation2 + $0xae0] sm:$0xff]  ;;  %v187_v8 = vld [vmem:[#allocation2 + $0x2a8] sm:$0xff] }
  0x9c   :  { %v4478_v3 = vcombine.high %v446_v58, %v450_v61  ;;  %v438_v5 = vld [vmem:[#allocation2 + $0xa80] sm:$0xff]  ;;  %v4477_v9 = vcombine.low %v446_v58, %v450_v61  ;;  %v4216_v13 = vcombine.high %v183_v7, %v187_v8  ;;  %v4215_v20 = vcombine.low %v183_v7, %v187_v8  ;;  %v411_v48 = vld [vmem:[#allocation2 + $0x9a8] sm:$0xff] }
  0x9d   :  { %2657 = vmatpush1.bf16.msra.mxu0 %v4397_v14  ;;  %v442_v6 = vld [vmem:[#allocation2 + $0xaa0] sm:$0xff]  ;;  %v399_v58 = vld [vmem:[#allocation2 + $0x948] sm:$0xff] }
  0x9e   :  { %2717 = vmatpush1.bf16.msra.mxu1 %v4143_v16  ;;  %2658 = vmatprep.subr.bf16.mxu0 %v4390_v17  ;;  %v4470_v11 = vcombine.high %v438_v5, %v442_v6  ;;  %v430_v14 = vld [vmem:[#allocation2 + $0xa40] sm:$0xff]  ;;  %v175_v17 = vld [vmem:[#allocation2 + $0x248] sm:$0xff]  ;;  %v4469_v19 = vcombine.low %v438_v5, %v442_v6 }
  0x9f   :  { %2718 = vmatprep.subr.bf16.mxu1 %v4136_v18  ;;  %v434_v16 = vld [vmem:[#allocation2 + $0xa60] sm:$0xff]  ;;  %v179_v18 = vld [vmem:[#allocation2 + $0x268] sm:$0xff] }
  0xa0   :  { %v4462_v21 = vcombine.high %v430_v14, %v434_v16  ;;  %v4208_v23 = vcombine.high %v175_v17, %v179_v18  ;;  %v4461_v28 = vcombine.low %v430_v14, %v434_v16  ;;  %v4207_v29 = vcombine.low %v175_v17, %v179_v18  ;;  %v403_v61 = vld [vmem:[#allocation2 + $0x968] sm:$0xff] }
  0xa1   :  { %2659 = vmatpush1.bf16.msra.mxu0 %v4389_v24  ;;  %v422_v24 = vld [vmem:[#allocation2 + $0xa00] sm:$0xff]  ;;  %v267_v5 = vld [vmem:[#allocation2 + $0x528] sm:$0xff] }
  0xa2   :  { %2719 = vmatpush1.bf16.msra.mxu1 %v4135_v26  ;;  %2660 = vmatprep.subr.bf16.mxu0 %v4510_v27  ;;  %v426_v26 = vld [vmem:[#allocation2 + $0xa20] sm:$0xff]  ;;  %v167_v27 = vld [vmem:[#allocation2 + $0x208] sm:$0xff] }
  0xa3   :  { %2720 = vmatprep.subr.bf16.mxu1 %v4256_v56  ;;  %v171_v56 = vld [vmem:[#allocation2 + $0x228] sm:$0xff]  ;;  %v4454_v30 = vcombine.high %v422_v24, %v426_v26  ;;  %v4453_v38 = vcombine.low %v422_v24, %v426_v26 }
  0xa4   :  { %v4200_v31 = vcombine.high %v167_v27, %v171_v56  ;;  %v4199_v39 = vcombine.low %v167_v27, %v171_v56  ;;  %v391_v6 = vld [vmem:[#allocation2 + $0x908] sm:$0xff] }
  0xa5   :  { %2661 = vmatpush2.bf16.msra.mxu0 %v4509_v32  ;;  %v287_v32 = vld [vmem:[#allocation2 + $0x5c8] sm:$0xff] }
  0xa6   :  { %2721 = vmatpush2.bf16.msra.mxu1 %v4255_v33  ;;  %2662 = vmatprep.subr.bf16.mxu0 %v4502_v35  ;;  %v291_v33 = vld [vmem:[#allocation2 + $0x5e8] sm:$0xff] }
  0xa7   :  { %2722 = vmatprep.subr.bf16.mxu1 %v4248_v36  ;;  %v415_v35 = vld [vmem:[#allocation2 + $0x9c8] sm:$0xff]  ;;  %v4320_v40 = vcombine.high %v287_v32, %v291_v33  ;;  %v4319_v49 = vcombine.low %v287_v32, %v291_v33 }
  0xa8   :  { %v419_v36 = vld [vmem:[#allocation2 + $0x9e8] sm:$0xff] }
  0xa9   :  { %2663 = vmatpush2.bf16.msra.mxu0 %v4501_v42  ;;  %v4448_v41 = vcombine.high %v415_v35, %v419_v36  ;;  %v279_v42 = vld [vmem:[#allocation2 + $0x588] sm:$0xff]  ;;  %v4447_v50 = vcombine.low %v415_v35, %v419_v36 }
  0xaa   :  { %2723 = vmatpush2.bf16.msra.mxu1 %v4247_v43  ;;  %2664 = vmatprep.subr.bf16.mxu0 %v4494_v45  ;;  %v283_v43 = vld [vmem:[#allocation2 + $0x5a8] sm:$0xff] }
  0xab   :  { %2724 = vmatprep.subr.bf16.mxu1 %v4240_v46  ;;  %v4963_v45 = vld [vmem:[%s5654_s0 + $0x10] ss:$24 sps:$4 sm:$0xff]   ;;  %v4312_v51 = vcombine.high %v279_v42, %v283_v43  ;;  %v4311_v62 = vcombine.low %v279_v42, %v283_v43 }
  0xac   :  { %v407_v46 = vld [vmem:[#allocation2 + $0x988] sm:$0xff] }
  0xad   :  { %2665 = vmatpush2.bf16.msra.mxu0 %v4493_v52  ;;  %v4440_v52 = vcombine.high %v407_v46, %v411_v48  ;;  %v4439_v63 = vcombine.low %v407_v46, %v411_v48  ;;  %v395_v7 = vld [vmem:[#allocation2 + $0x928] sm:$0xff] }
  0xae   :  { %2725 = vmatpush2.bf16.msra.mxu1 %v4239_v53  ;;  %2666 = vmatprep.subr.bf16.mxu0 %v4486_v54  ;;  %v4968_v53 = vld [vmem:[%s5654_s0 + $0x44] ss:$24 sps:$4 sm:$0xff]   ;;  %v271_v54 = vld [vmem:[#allocation2 + $0x548] sm:$0xff] }
  0xaf   :  { %2726 = vmatprep.subr.bf16.mxu1 %v4232_v55  ;;  %v275_v55 = vld [vmem:[#allocation2 + $0x568] sm:$0xff] }
  0xb0   :  { %v4303_v8 = vcombine.low %v271_v54, %v275_v55  ;;  %v255_v14 = vld [vmem:[#allocation2 + $0x4c8] sm:$0xff] }
  0xb1   :  { %2667 = vmatpush2.bf16.msra.mxu0 %v4485_v0  ;;  %v4304_v0 = vcombine.high %v271_v54, %v275_v55  ;;  %v259_v16 = vld [vmem:[#allocation2 + $0x4e8] sm:$0xff] }
  0xb2   :  { %2727 = vmatpush2.bf16.msra.mxu1 %v4231_v1  ;;  %2668 = vmatprep.subr.bf16.mxu0 %v4478_v3  ;;  %v101_v1 = vld [vmem:[%s5654_s0 + $0x70] sm:$0xff]  ;;  %v4432_v3 = vcombine.high %v399_v58, %v403_v61  ;;  %v383_v17 = vld [vmem:[#allocation2 + $0x8c8] sm:$0xff] }
  0xb3   :  { %2728 = vmatprep.subr.bf16.mxu1 %v4224_v4  ;;  %v263_v4 = vld [vmem:[#allocation2 + $0x508] sm:$0xff]  ;;  %v4987_v26 = vcombine.low %v101_v1, %v101_v1 }
  0xb4   :  { %v387_v18 = vld [vmem:[#allocation2 + $0x8e8] sm:$0xff] }
  0xb5   :  { %2669 = vmatpush2.bf16.msra.mxu0 %v4477_v9  ;;  %v4982_v9 = vcombine.high %v101_v1, %v101_v1  ;;  %v251_v24 = vld [vmem:[#allocation2 + $0x4a8] sm:$0xff] }
  0xb6   :  { %2729 = vmatpush2.bf16.msra.mxu1 %v4223_v10  ;;  %2670 = vmatprep.subr.bf16.mxu0 %v4470_v11  ;;  %v4431_v10 = vcombine.low %v399_v58, %v403_v61  ;;  %v4296_v11 = vcombine.high %v263_v4, %v267_v5  ;;  %v375_v27 = vld [vmem:[#allocation2 + $0x888] sm:$0xff] }
  0xb7   :  { %2730 = vmatprep.subr.bf16.mxu1 %v4216_v13  ;;  %v4424_v13 = vcombine.high %v391_v6, %v395_v7  ;;  %v379_v56 = vld [vmem:[#allocation2 + $0x8a8] sm:$0xff] }
  0xb8   :  { %v239_v32 = vld [vmem:[#allocation2 + $0x448] sm:$0xff] }
  0xb9   :  { %2671 = vmatpush2.bf16.msra.mxu0 %v4469_v19  ;;  %v4295_v19 = vcombine.low %v263_v4, %v267_v5  ;;  %v243_v33 = vld [vmem:[#allocation2 + $0x468] sm:$0xff] }
  0xba   :  { %2731 = vmatpush2.bf16.msra.mxu1 %v4215_v20  ;;  %2672 = vmatprep.subr.bf16.mxu0 %v4462_v21  ;;  %v4288_v20 = vcombine.high %v255_v14, %v259_v16  ;;  %v4416_v21 = vcombine.high %v383_v17, %v387_v18  ;;  %v367_v35 = vld [vmem:[#allocation2 + $0x848] sm:$0xff]  ;;  %v4271_v48 = vcombine.low %v239_v32, %v243_v33 }
  0xbb   :  { %2732 = vmatprep.subr.bf16.mxu1 %v4208_v23  ;;  %v247_v23 = vld [vmem:[#allocation2 + $0x488] sm:$0xff] }
  0xbc   :  { %v4279_v36 = vcombine.low %v247_v23, %v251_v24  ;;  %v235_v42 = vld [vmem:[#allocation2 + $0x428] sm:$0xff] }
  0xbd   :  { %2673 = vmatpush2.bf16.msra.mxu0 %v4461_v28  ;;  %v4287_v28 = vcombine.low %v255_v14, %v259_v16  ;;  %v359_v43 = vld [vmem:[#allocation2 + $0x808] sm:$0xff] }
  0xbe   :  { %2733 = vmatpush2.bf16.msra.mxu1 %v4207_v29  ;;  %2674 = vmatprep.subr.bf16.mxu0 %v4454_v30  ;;  %v4415_v29 = vcombine.low %v383_v17, %v387_v18  ;;  %v4280_v30 = vcombine.high %v247_v23, %v251_v24  ;;  %v363_v46 = vld [vmem:[#allocation2 + $0x828] sm:$0xff] }
  0xbf   :  { %2734 = vmatprep.subr.bf16.mxu1 %v4200_v31  ;;  %v4408_v31 = vcombine.high %v375_v27, %v379_v56  ;;  %v479_v54 = vld [vmem:[#allocation2 + $0xbc8] sm:$0xff]  ;;  %v4391_v61 = vcombine.low %v359_v43, %v363_v46 }
  0xc0   :  { %v483_v55 = vld [vmem:[#allocation2 + $0xbe8] sm:$0xff] }
  0xc1   :  { %2675 = vmatpush2.bf16.msra.mxu0 %v4453_v38  ;;  %v4407_v38 = vcombine.low %v375_v27, %v379_v56  ;;  %v471_v1 = vld [vmem:[#allocation2 + $0xb88] sm:$0xff]  ;;  %v4511_v5 = vcombine.low %v479_v54, %v483_v55 }
  0xc2   :  { %2735 = vmatpush2.bf16.msra.mxu1 %v4199_v39  ;;  %2765 = vmatprep.subr.bf16.mxu0 %v4320_v40  ;;  %v4272_v39 = vcombine.high %v239_v32, %v243_v33 }
  0xc3   :  { %2826 = vmatprep.subr.bf16.mxu1 %v4448_v41  ;;  %v231_v41 = vld [vmem:[#allocation2 + $0x408] sm:$0xff] }
  0xc4   :  { %2677 = vmatmul.mubr.bf16.vlgmr.msra.gmra.mxu0 %v4963_v45  ;;  %v4263_v58 = vcombine.low %v231_v41, %v235_v42 }
  0xc5   :  { %2737 = vmatmul.mubr.bf16.vlgmr.msra.gmra.mxu1 %v4902_v12  ;;  %2766 = vmatpush1.bf16.msra.mxu0 %v4319_v49  ;;  %v4979_v12 = vld [vmem:[%s5654_s0 + $0x40] ss:$24 sps:$4 sm:$0xff]  }
  0xc6   :  { %2827 = vmatpush1.bf16.msra.mxu1 %v4447_v50  ;;  %2767 = vmatprep.subr.bf16.mxu0 %v4312_v51  ;;  %v4392_v50 = vcombine.high %v359_v43, %v363_v46  ;;  %v351_v51 = vld [vmem:[#allocation2 + $0x7c8] sm:$0xff] }
  0xc7   :  { %2828 = vmatprep.subr.bf16.mxu1 %v4440_v52  ;;  %2685 = vmatprep.mubr.bf16.mxu0 %v4968_v53  ;;  %v355_v52 = vld [vmem:[#allocation2 + $0x7e8] sm:$0xff] }
  0xc8   :  { %2746 = vmatprep.mubr.bf16.mxu1 %v4912_v22  ;;  %v4423_v22 = vcombine.low %v391_v6, %v395_v7  ;;  %v4383_v4 = vcombine.low %v351_v51, %v355_v52 }
  0xc9   :  { %2768 = vmatpush1.bf16.msra.mxu0 %v4311_v62  ;;  %v4384_v62 = vcombine.high %v351_v51, %v355_v52 }
  0xca   :  { %2829 = vmatpush1.bf16.msra.mxu1 %v4439_v63  ;;  %2769 = vmatprep.subr.bf16.mxu0 %v4304_v0  ;;  %v343_v63 = vld [vmem:[#allocation2 + $0x788] sm:$0xff] }
  0xcb   :  { %2830 = vmatprep.subr.bf16.mxu1 %v4432_v3  ;;  %v347_v0 = vld [vmem:[#allocation2 + $0x7a8] sm:$0xff] }
  0xcc   :  { %2686 = vmatmul.mubr.bf16.gmra.mxu0 %v4979_v12  ;;  %v475_v3 = vld [vmem:[#allocation2 + $0xba8] sm:$0xff]  ;;  %v4376_v6 = vcombine.high %v343_v63, %v347_v0  ;;  %v4375_v14 = vcombine.low %v343_v63, %v347_v0 }
  0xcd   :  { %2770 = vmatpush1.bf16.msra.mxu0 %v4303_v8  ;;  %2695 = vmatprep.mubr.bf16.mxu0 %v4982_v9  ;;  %v4504_v7 = vcombine.high %v471_v1, %v475_v3  ;;  %v335_v8 = vld [vmem:[#allocation2 + $0x748] sm:$0xff]  ;;  %v4503_v16 = vcombine.low %v471_v1, %v475_v3 }
  0xce   :  { %2831 = vmatpush1.bf16.msra.mxu1 %v4431_v10  ;;  %2771 = vmatprep.subr.bf16.mxu0 %v4296_v11  ;;  %v339_v10 = vld [vmem:[#allocation2 + $0x768] sm:$0xff] }
  0xcf   :  { %2832 = vmatprep.subr.bf16.mxu1 %v4424_v13  ;;  %2747 = vmatmul.mubr.bf16.gmra.mxu1 %v4925_v34  ;;  %v371_v34 = vld [vmem:[#allocation2 + $0x868] sm:$0xff]  ;;  %v4368_v17 = vcombine.high %v335_v8, %v339_v10  ;;  %v4367_v23 = vcombine.low %v335_v8, %v339_v10 }
  0xd0   :  { %2756 = vmatprep.mubr.bf16.mxu1 %v4939_v44  ;;  %v4400_v40 = vcombine.high %v367_v35, %v371_v34  ;;  %v4399_v49 = vcombine.low %v367_v35, %v371_v34  ;;  %v463_v11 = vld [vmem:[#allocation2 + $0xb48] sm:$0xff] }
  0xd1   :  { %2772 = vmatpush1.bf16.msra.mxu0 %v4295_v19  ;;  %v467_v13 = vld [vmem:[#allocation2 + $0xb68] sm:$0xff] }
  0xd2   :  { %2833 = vmatpush1.bf16.msra.mxu1 %v4423_v22  ;;  %2773 = vmatprep.subr.bf16.mxu0 %v4288_v20  ;;  %v4496_v18 = vcombine.high %v463_v11, %v467_v13  ;;  %v327_v19 = vld [vmem:[#allocation2 + $0x708] sm:$0xff]  ;;  %v4495_v24 = vcombine.low %v463_v11, %v467_v13 }
  0xd3   :  { %2834 = vmatprep.subr.bf16.mxu1 %v4416_v21  ;;  %v331_v22 = vld [vmem:[#allocation2 + $0x728] sm:$0xff] }
  0xd4   :  { %2696 = vmatmul.mubr.bf16.gmra.mxu0 %v4987_v26  ;;  %v455_v20 = vld [vmem:[#allocation2 + $0xb08] sm:$0xff]  ;;  %v4360_v27 = vcombine.high %v327_v19, %v331_v22  ;;  %v4359_v32 = vcombine.low %v327_v19, %v331_v22 }
  0xd5   :  { %2774 = vmatpush1.bf16.msra.mxu0 %v4287_v28  ;;  %2797 = vmatprep.mubr.bf16.mxu0 %v4895_v59  ;;  %v4264_v59 = vcombine.high %v231_v41, %v235_v42  ;;  %v459_v21 = vld [vmem:[#allocation2 + $0xb28] sm:$0xff] }
  0xd6   :  { %2835 = vmatpush1.bf16.msra.mxu1 %v4415_v29  ;;  %2775 = vmatprep.subr.bf16.mxu0 %v4280_v30  ;;  %v4488_v56 = vcombine.high %v455_v20, %v459_v21  ;;  %v319_v28 = vld [vmem:[#allocation2 + $0x6c8] sm:$0xff]  ;;  %v4487_v33 = vcombine.low %v455_v20, %v459_v21 }
  0xd7   :  { %2836 = vmatprep.subr.bf16.mxu1 %v4408_v31  ;;  %2757 = vmatmul.mubr.bf16.gmra.mxu1 %v4946_v57  ;;  %v323_v29 = vld [vmem:[#allocation2 + $0x6e8] sm:$0xff] }
  0xd8   :  { %2858 = vmatprep.mubr.bf16.mxu1 %v4954_v2  ;;  %v4512_v2 = vcombine.high %v479_v54, %v483_v55  ;;  %v447_v30 = vld [vmem:[#allocation2 + $0xac8] sm:$0xff]  ;;  %v4352_v35 = vcombine.high %v319_v28, %v323_v29  ;;  %v4351_v41 = vcombine.low %v319_v28, %v323_v29 }
  0xd9   :  { %2776 = vmatpush1.bf16.msra.mxu0 %v4279_v36  ;;  %v451_v31 = vld [vmem:[#allocation2 + $0xae8] sm:$0xff] }
  0xda   :  { %2837 = vmatpush1.bf16.msra.mxu1 %v4407_v38  ;;  %2777 = vmatprep.subr.bf16.mxu0 %v4272_v39  ;;  %v4480_v34 = vcombine.high %v447_v30, %v451_v31  ;;  %v311_v36 = vld [vmem:[#allocation2 + $0x688] sm:$0xff]  ;;  %v4479_v42 = vcombine.low %v447_v30, %v451_v31 }
  0xdb   :  { %2838 = vmatprep.subr.bf16.mxu1 %v4400_v40  ;;  %v315_v38 = vld [vmem:[#allocation2 + $0x6a8] sm:$0xff] }
  0xdc   :  { %v439_v39 = vld [vmem:[#allocation2 + $0xa88] sm:$0xff]  ;;  %v4344_v43 = vcombine.high %v311_v36, %v315_v38  ;;  %v4343_v51 = vcombine.low %v311_v36, %v315_v38 }
  0xdd   :  { %2778 = vmatpush1.bf16.msra.mxu0 %v4271_v48  ;;  %v443_v40 = vld [vmem:[#allocation2 + $0xaa8] sm:$0xff] }
  0xde   :  { %2839 = vmatpush1.bf16.msra.mxu1 %v4399_v49  ;;  %2779 = vmatprep.subr.bf16.mxu0 %v4264_v59  ;;  %v4472_v46 = vcombine.high %v439_v39, %v443_v40  ;;  %v303_v48 = vld [vmem:[#allocation2 + $0x648] sm:$0xff]  ;;  %v4471_v52 = vcombine.low %v439_v39, %v443_v40  ;;  %v128_v39 = vld [vmem:[#allocation2 + $0xd0] sm:$0xff] }
  0xdf   :  { %2840 = vmatprep.subr.bf16.mxu1 %v4392_v50  ;;  %v307_v49 = vld [vmem:[#allocation2 + $0x668] sm:$0xff]  ;;  %v132_v40 = vld [vmem:[#allocation2 + $0xf0] sm:$0xff] }
  0xe0   :  { %v431_v59 = vld [vmem:[#allocation2 + $0xa48] sm:$0xff]  ;;  %v4336_v54 = vcombine.high %v303_v48, %v307_v49  ;;  %v4335_v63 = vcombine.low %v303_v48, %v307_v49  ;;  %v120_v48 = vld [vmem:[#allocation2 + $0x90] sm:$0xff] }
  0xe1   :  { %2780 = vmatpush1.bf16.msra.mxu0 %v4263_v58  ;;  %v435_v50 = vld [vmem:[#allocation2 + $0xa68] sm:$0xff]  ;;  %v124_v49 = vld [vmem:[#allocation2 + $0xb0] sm:$0xff] }
  0xe2   :  { %2841 = vmatpush1.bf16.msra.mxu1 %v4391_v61  ;;  %2781 = vmatprep.subr.bf16.mxu0 %v4384_v62  ;;  %v4464_v55 = vcombine.high %v431_v59, %v435_v50  ;;  %v295_v58 = vld [vmem:[#allocation2 + $0x608] sm:$0xff]  ;;  %v4463_v0 = vcombine.low %v431_v59, %v435_v50  ;;  %v248_v59 = vld [vmem:[#allocation2 + $0x490] sm:$0xff]  ;;  %v4161_v50 = vcombine.low %v128_v39, %v132_v40 }
  0xe3   :  { %2842 = vmatprep.subr.bf16.mxu1 %v4512_v2  ;;  %v299_v61 = vld [vmem:[#allocation2 + $0x628] sm:$0xff] }
  0xe4   :  { %v423_v62 = vld [vmem:[#allocation2 + $0xa08] sm:$0xff]  ;;  %v4328_v1 = vcombine.high %v295_v58, %v299_v61  ;;  %v4327_v8 = vcombine.low %v295_v58, %v299_v61  ;;  %v240_v58 = vld [vmem:[#allocation2 + $0x450] sm:$0xff] }
  0xe5   :  { %2782 = vmatpush2.bf16.msra.mxu0 %v4383_v4  ;;  %v427_v2 = vld [vmem:[#allocation2 + $0xa28] sm:$0xff]  ;;  %v160_v4 = vld [vmem:[#allocation2 + $0x1d0] sm:$0xff] }
  0xe6   :  { %2843 = vmatpush2.bf16.msra.mxu1 %v4511_v5  ;;  %2783 = vmatprep.subr.bf16.mxu0 %v4376_v6  ;;  %v4456_v3 = vcombine.high %v423_v62, %v427_v2  ;;  %v164_v5 = vld [vmem:[#allocation2 + $0x1f0] sm:$0xff]  ;;  %v4455_v10 = vcombine.low %v423_v62, %v427_v2  ;;  %v4153_v62 = vcombine.low %v120_v48, %v124_v49 }
  0xe7   :  { %2844 = vmatprep.subr.bf16.mxu1 %v4504_v7  ;;  %v288_v6 = vld [vmem:[#allocation2 + $0x5d0] sm:$0xff]  ;;  %v4194_v11 = vcombine.high %v160_v4, %v164_v5  ;;  %v4193_v19 = vcombine.low %v160_v4, %v164_v5  ;;  %v5007_v4 = vld [vmem:[%s5654_s0 + $0x4] ss:$24 sps:$4 sm:$0xff]  }
  0xe8   :  { %v292_v7 = vld [vmem:[#allocation2 + $0x5f0] sm:$0xff] }
  0xe9   :  { %2784 = vmatpush2.bf16.msra.mxu0 %v4375_v14  ;;  %v4322_v13 = vcombine.high %v288_v6, %v292_v7  ;;  %v152_v14 = vld [vmem:[#allocation2 + $0x190] sm:$0xff]  ;;  %v4321_v22 = vcombine.low %v288_v6, %v292_v7  ;;  %v5013_v7 = vld [vmem:[%s5654_s0 + $0xc] ss:$24 sps:$4 sm:$0xff]  }
  0xea   :  { %2845 = vmatpush2.bf16.msra.mxu1 %v4503_v16  ;;  %2785 = vmatprep.subr.bf16.mxu0 %v4368_v17  ;;  %v156_v16 = vld [vmem:[#allocation2 + $0x1b0] sm:$0xff] }
  0xeb   :  { %2846 = vmatprep.subr.bf16.mxu1 %v4496_v18  ;;  %v280_v17 = vld [vmem:[#allocation2 + $0x590] sm:$0xff]  ;;  %v4186_v20 = vcombine.high %v152_v14, %v156_v16  ;;  %v4185_v28 = vcombine.low %v152_v14, %v156_v16 }
  0xec   :  { %v284_v18 = vld [vmem:[#allocation2 + $0x5b0] sm:$0xff] }
  0xed   :  { %2786 = vmatpush2.bf16.msra.mxu0 %v4367_v23  ;;  %v4314_v21 = vcombine.high %v280_v17, %v284_v18  ;;  %v144_v23 = vld [vmem:[#allocation2 + $0x150] sm:$0xff]  ;;  %v4313_v29 = vcombine.low %v280_v17, %v284_v18 }
  0xee   :  { %2847 = vmatpush2.bf16.msra.mxu1 %v4495_v24  ;;  %2787 = vmatprep.subr.bf16.mxu0 %v4360_v27  ;;  %v148_v24 = vld [vmem:[#allocation2 + $0x170] sm:$0xff] }
  0xef   :  { %2848 = vmatprep.subr.bf16.mxu1 %v4488_v56  ;;  %v272_v27 = vld [vmem:[#allocation2 + $0x550] sm:$0xff]  ;;  %v4178_v30 = vcombine.high %v144_v23, %v148_v24 }
  0xf0   :  { %v276_v56 = vld [vmem:[#allocation2 + $0x570] sm:$0xff] }
  0xf1   :  { %2788 = vmatpush2.bf16.msra.mxu0 %v4359_v32  ;;  %v4306_v31 = vcombine.high %v272_v27, %v276_v56  ;;  %v136_v32 = vld [vmem:[#allocation2 + $0x110] sm:$0xff] }
  0xf2   :  { %2849 = vmatpush2.bf16.msra.mxu1 %v4487_v33  ;;  %2789 = vmatprep.subr.bf16.mxu0 %v4352_v35  ;;  %v140_v33 = vld [vmem:[#allocation2 + $0x130] sm:$0xff] }
  0xf3   :  { %2850 = vmatprep.subr.bf16.mxu1 %v4480_v34  ;;  %v264_v35 = vld [vmem:[#allocation2 + $0x510] sm:$0xff]  ;;  %v4177_v34 = vcombine.low %v144_v23, %v148_v24  ;;  %v4170_v36 = vcombine.high %v136_v32, %v140_v33 }
  0xf4   :  { %v244_v61 = vld [vmem:[#allocation2 + $0x470] sm:$0xff] }
  0xf5   :  { %2790 = vmatpush2.bf16.msra.mxu0 %v4351_v41  ;;  %v260_v41 = vld [vmem:[#allocation2 + $0x4f0] sm:$0xff] }
  0xf6   :  { %2851 = vmatpush2.bf16.msra.mxu1 %v4479_v42  ;;  %2791 = vmatprep.subr.bf16.mxu0 %v4344_v43  ;;  %v4162_v43 = vcombine.high %v128_v39, %v132_v40  ;;  %v232_v5 = vld [vmem:[#allocation2 + $0x410] sm:$0xff] }
  0xf7   :  { %2852 = vmatprep.subr.bf16.mxu1 %v4472_v46  ;;  %v236_v6 = vld [vmem:[#allocation2 + $0x430] sm:$0xff] }
  0xf8   :  { %v224_v14 = vld [vmem:[#allocation2 + $0x3d0] sm:$0xff] }
  0xf9   :  { %2792 = vmatpush2.bf16.msra.mxu0 %v4343_v51  ;;  %v4154_v51 = vcombine.high %v120_v48, %v124_v49  ;;  %v228_v16 = vld [vmem:[#allocation2 + $0x3f0] sm:$0xff] }
  0xfa   :  { %2853 = vmatpush2.bf16.msra.mxu1 %v4471_v52  ;;  %2793 = vmatprep.subr.bf16.mxu0 %v4336_v54  ;;  %v112_v54 = vld [vmem:[#allocation2 + $0x50] sm:$0xff] }
  0xfb   :  { %2854 = vmatprep.subr.bf16.mxu1 %v4464_v55  ;;  %v116_v55 = vld [vmem:[#allocation2 + $0x70] sm:$0xff] }
  0xfc   :  { %v352_v17 = vld [vmem:[#allocation2 + $0x7d0] sm:$0xff] }
  0xfd   :  { %2794 = vmatpush2.bf16.msra.mxu0 %v4335_v63  ;;  %v4146_v63 = vcombine.high %v112_v54, %v116_v55  ;;  %v356_v18 = vld [vmem:[#allocation2 + $0x7f0] sm:$0xff] }
  0xfe   :  { %2855 = vmatpush2.bf16.msra.mxu1 %v4463_v0  ;;  %2795 = vmatprep.subr.bf16.mxu0 %v4328_v1  ;;  %v4274_v0 = vcombine.high %v240_v58, %v244_v61  ;;  %v104_v1 = vld [vmem:[#allocation2 + $0x10] sm:$0xff] }
  0xff   :  { %2856 = vmatprep.subr.bf16.mxu1 %v4456_v3  ;;  %v108_v3 = vld [vmem:[#allocation2 + $0x30] sm:$0xff] }
 0x100   :  { %v216_v23 = vld [vmem:[#allocation2 + $0x390] sm:$0xff] }
 0x101   :  { %2796 = vmatpush2.bf16.msra.mxu0 %v4327_v8  ;;  %v4145_v8 = vcombine.low %v112_v54, %v116_v55  ;;  %v220_v24 = vld [vmem:[#allocation2 + $0x3b0] sm:$0xff] }
 0x102   :  { %2857 = vmatpush2.bf16.msra.mxu1 %v4455_v10  ;;  %2887 = vmatprep.subr.bf16.mxu0 %v4194_v11  ;;  %v4273_v10 = vcombine.low %v240_v58, %v244_v61  ;;  %v4138_v11 = vcombine.high %v104_v1, %v108_v3  ;;  %v200_v39 = vld [vmem:[#allocation2 + $0x310] sm:$0xff] }
 0x103   :  { %2939 = vmatprep.subr.bf16.mxu1 %v4322_v13  ;;  %v4266_v13 = vcombine.high %v232_v5, %v236_v6  ;;  %v204_v40 = vld [vmem:[#allocation2 + $0x330] sm:$0xff] }
 0x104   :  { %2798 = vmatmul.mubr.bf16.vlgmr.msra.gmra.mxu0 %v4907_v15  ;;  %v268_v15 = vld [vmem:[#allocation2 + $0x530] sm:$0xff] }
 0x105   :  { %2859 = vmatmul.mubr.bf16.vlgmr.msra.gmra.mxu1 %v4963_v45  ;;  %2888 = vmatpush1.bf16.msra.mxu0 %v4193_v19  ;;  %v4305_v45 = vcombine.low %v272_v27, %v276_v56  ;;  %v4298_v38 = vcombine.high %v264_v35, %v268_v15  ;;  %v4297_v42 = vcombine.low %v264_v35, %v268_v15  ;;  %v344_v27 = vld [vmem:[#allocation2 + $0x790] sm:$0xff] }
 0x106   :  { %2940 = vmatpush1.bf16.msra.mxu1 %v4321_v22  ;;  %2889 = vmatprep.subr.bf16.mxu0 %v4186_v20  ;;  %v4137_v19 = vcombine.low %v104_v1, %v108_v3  ;;  %v4265_v22 = vcombine.low %v232_v5, %v236_v6  ;;  %v4258_v20 = vcombine.high %v224_v14, %v228_v16  ;;  %v348_v56 = vld [vmem:[#allocation2 + $0x7b0] sm:$0xff] }
 0x107   :  { %2941 = vmatprep.subr.bf16.mxu1 %v4314_v21  ;;  %2807 = vmatprep.mubr.bf16.mxu0 %v4918_v25  ;;  %v256_v25 = vld [vmem:[#allocation2 + $0x4d0] sm:$0xff]  ;;  %v4386_v21 = vcombine.high %v352_v17, %v356_v18 }
 0x108   :  { %2868 = vmatprep.mubr.bf16.mxu1 %v4968_v53  ;;  %v4169_v53 = vcombine.low %v136_v32, %v140_v33  ;;  %v4290_v46 = vcombine.high %v256_v25, %v260_v41  ;;  %v208_v32 = vld [vmem:[#allocation2 + $0x350] sm:$0xff] }
 0x109   :  { %2890 = vmatpush1.bf16.msra.mxu0 %v4185_v28  ;;  %v4257_v28 = vcombine.low %v224_v14, %v228_v16  ;;  %v212_v33 = vld [vmem:[#allocation2 + $0x370] sm:$0xff] }
 0x10a   :  { %2942 = vmatpush1.bf16.msra.mxu1 %v4313_v29  ;;  %2891 = vmatprep.subr.bf16.mxu0 %v4178_v30  ;;  %v4385_v29 = vcombine.low %v352_v17, %v356_v18  ;;  %v4250_v30 = vcombine.high %v216_v23, %v220_v24  ;;  %v336_v35 = vld [vmem:[#allocation2 + $0x750] sm:$0xff] }
 0x10b   :  { %2943 = vmatprep.subr.bf16.mxu1 %v4306_v31  ;;  %v4378_v31 = vcombine.high %v344_v27, %v348_v56  ;;  %v340_v15 = vld [vmem:[#allocation2 + $0x770] sm:$0xff] }
 0x10c   :  { %2808 = vmatmul.mubr.bf16.gmra.mxu0 %v4934_v37  ;;  %v252_v37 = vld [vmem:[#allocation2 + $0x4b0] sm:$0xff] }
 0x10d   :  { %2892 = vmatpush1.bf16.msra.mxu0 %v4177_v34  ;;  %2869 = vmatmul.mubr.bf16.gmra.mxu1 %v4979_v12  ;;  %v4289_v12 = vcombine.low %v256_v25, %v260_v41  ;;  %v4282_v52 = vcombine.high %v248_v59, %v252_v37  ;;  %v4281_v2 = vcombine.low %v248_v59, %v252_v37  ;;  %v328_v25 = vld [vmem:[#allocation2 + $0x710] sm:$0xff] }
 0x10e   :  { %2944 = vmatpush1.bf16.msra.mxu1 %v4305_v45  ;;  %2893 = vmatprep.subr.bf16.mxu0 %v4170_v36  ;;  %v4249_v34 = vcombine.low %v216_v23, %v220_v24  ;;  %v4377_v45 = vcombine.low %v344_v27, %v348_v56  ;;  %v4242_v36 = vcombine.high %v208_v32, %v212_v33  ;;  %v332_v41 = vld [vmem:[#allocation2 + $0x730] sm:$0xff] }
 0x10f   :  { %2945 = vmatprep.subr.bf16.mxu1 %v4298_v38  ;;  %2817 = vmatprep.mubr.bf16.mxu0 %v4942_v47  ;;  %v4370_v38 = vcombine.high %v336_v35, %v340_v15  ;;  %v192_v48 = vld [vmem:[#allocation2 + $0x2d0] sm:$0xff] }
 0x110   :  { %2878 = vmatprep.mubr.bf16.mxu1 %v4982_v9  ;;  %v196_v49 = vld [vmem:[#allocation2 + $0x2f0] sm:$0xff] }
 0x111   :  { %2894 = vmatpush1.bf16.msra.mxu0 %v4169_v53  ;;  %v4241_v53 = vcombine.low %v208_v32, %v212_v33  ;;  %v320_v59 = vld [vmem:[#allocation2 + $0x6d0] sm:$0xff]  ;;  %v5019_v33 = vld [vmem:[#allocation6] sm:$0xff] }
 0x112   :  { %2946 = vmatpush1.bf16.msra.mxu1 %v4297_v42  ;;  %2895 = vmatprep.subr.bf16.mxu0 %v4162_v43  ;;  %v4369_v42 = vcombine.low %v336_v35, %v340_v15  ;;  %v4234_v43 = vcombine.high %v200_v39, %v204_v40  ;;  %v324_v37 = vld [vmem:[#allocation2 + $0x6f0] sm:$0xff] }
 0x113   :  { %2947 = vmatprep.subr.bf16.mxu1 %v4290_v46  ;;  %v4362_v46 = vcombine.high %v328_v25, %v332_v41  ;;  %v184_v54 = vld [vmem:[#allocation2 + $0x290] sm:$0xff] }
 0x114   :  { %2818 = vmatmul.mubr.bf16.gmra.mxu0 %v4949_v60  ;;  %v188_v55 = vld [vmem:[#allocation2 + $0x2b0] sm:$0xff] }
 0x115   :  { %2896 = vmatpush1.bf16.msra.mxu0 %v4161_v50  ;;  %2879 = vmatmul.mubr.bf16.gmra.mxu1 %v4987_v26  ;;  %v4233_v50 = vcombine.low %v200_v39, %v204_v40  ;;  %v312_v58 = vld [vmem:[#allocation2 + $0x690] sm:$0xff] }
 0x116   :  { %2948 = vmatpush1.bf16.msra.mxu1 %v4289_v12  ;;  %2897 = vmatprep.subr.bf16.mxu0 %v4154_v51  ;;  %v4361_v12 = vcombine.low %v328_v25, %v332_v41  ;;  %v4226_v51 = vcombine.high %v192_v48, %v196_v49  ;;  %v316_v61 = vld [vmem:[#allocation2 + $0x6b0] sm:$0xff] }
 0x117   :  { %2949 = vmatprep.subr.bf16.mxu1 %v4282_v52  ;;  %2919 = vmatprep.mubr.bf16.mxu0 %v5007_v4  ;;  %v4354_v52 = vcombine.high %v320_v59, %v324_v37  ;;  %v176_v1 = vld [vmem:[#allocation2 + $0x250] sm:$0xff] }
 0x118   :  { %2971 = vmatprep.mubr.bf16.mxu1 %v5013_v7  ;;  %v180_v3 = vld [vmem:[#allocation2 + $0x270] sm:$0xff] }
 0x119   :  { %2898 = vmatpush1.bf16.msra.mxu0 %v4153_v62  ;;  %v4225_v62 = vcombine.low %v192_v48, %v196_v49  ;;  %v304_v5 = vld [vmem:[#allocation2 + $0x650] sm:$0xff]  ;;  %v5028_v49 = vld [vmem:[%s5654_s0] ss:$24 sps:$4 sm:$0xff]  }
 0x11a   :  { %2950 = vmatpush1.bf16.msra.mxu1 %v4281_v2  ;;  %2899 = vmatprep.subr.bf16.mxu0 %v4146_v63  ;;  %v4353_v2 = vcombine.low %v320_v59, %v324_v37  ;;  %v4218_v63 = vcombine.high %v184_v54, %v188_v55  ;;  %v308_v6 = vld [vmem:[#allocation2 + $0x670] sm:$0xff]  ;;  %v145_v59 = vld [vmem:[#allocation2 + $0x158] sm:$0xff] }
 0x11b   :  { %2951 = vmatprep.subr.bf16.mxu1 %v4274_v0  ;;  %v4346_v0 = vcombine.high %v312_v58, %v316_v61  ;;  %v4338_v14 = vcombine.high %v304_v5, %v308_v6  ;;  %v168_v16 = vld [vmem:[#allocation2 + $0x210] sm:$0xff]  ;;  %v149_v37 = vld [vmem:[#allocation2 + $0x178] sm:$0xff] }
 0x11c   :  { %v172_v17 = vld [vmem:[#allocation2 + $0x230] sm:$0xff] }
 0x11d   :  { %2900 = vmatpush1.bf16.msra.mxu0 %v4145_v8  ;;  %v4217_v8 = vcombine.low %v184_v54, %v188_v55  ;;  %v296_v18 = vld [vmem:[#allocation2 + $0x610] sm:$0xff]  ;;  %v4202_v23 = vcombine.high %v168_v16, %v172_v17 }
 0x11e   :  { %2952 = vmatpush1.bf16.msra.mxu1 %v4273_v10  ;;  %2901 = vmatprep.subr.bf16.mxu0 %v4138_v11  ;;  %v488_v10 = vlaneseq  ;;  %v4345_v11 = vcombine.low %v312_v58, %v316_v61  ;;  %v416_v27 = vld [vmem:[#allocation2 + $0x9d0] sm:$0xff] }
 0x11f   :  { %2953 = vmatprep.subr.bf16.mxu1 %v4266_v13  ;;  %v4210_v13 = vcombine.high %v176_v1, %v180_v3  ;;  %v420_v56 = vld [vmem:[#allocation2 + $0x9f0] sm:$0xff] }
 0x120   :  { %v4450_v35 = vcombine.high %v416_v27, %v420_v56  ;;  %v4449_v40 = vcombine.low %v416_v27, %v420_v56  ;;  %v388_v27 = vld [vmem:[#allocation2 + $0x8f0] sm:$0xff]  ;;  %v129_v56 = vld [vmem:[#allocation2 + $0xd8] sm:$0xff] }
 0x121   :  { %2902 = vmatpush1.bf16.msra.mxu0 %v4137_v19  ;;  %v300_v19 = vld [vmem:[#allocation2 + $0x630] sm:$0xff] }
 0x122   :  { %2954 = vmatpush1.bf16.msra.mxu1 %v4265_v22  ;;  %2903 = vmatprep.subr.bf16.mxu0 %v4258_v20  ;;  %v4209_v22 = vcombine.low %v176_v1, %v180_v3  ;;  %v5016_v20 = vshrl.u32 %v488_v10, 7  ;;  %v4330_v24 = vcombine.high %v296_v18, %v300_v19  ;;  %v4329_v32 = vcombine.low %v296_v18, %v300_v19  ;;  %v396_v1 = vld [vmem:[#allocation2 + $0x930] sm:$0xff] }
 0x123   :  { %2955 = vmatprep.subr.bf16.mxu1 %v4386_v21  ;;  %v4337_v21 = vcombine.low %v304_v5, %v308_v6  ;;  %v5046_v3 = vld [vmem:[%s5654_s0 + $0x34] ss:$24 sps:$4 sm:$0xff]   ;;  %v137_v6 = vld [vmem:[#allocation2 + $0x118] sm:$0xff] }
 0x124   :  { %v5052_v10 = vld [vmem:[%s5654_s0 + $0x3c] ss:$24 sps:$4 sm:$0xff]  }
 0x125   :  { %2904 = vmatpush2.bf16.msra.mxu0 %v4257_v28  ;;  %v161_v28 = vld [vmem:[#allocation2 + $0x1d8] sm:$0xff] }
 0x126   :  { %2956 = vmatpush2.bf16.msra.mxu1 %v4385_v29  ;;  %2905 = vmatprep.subr.bf16.mxu0 %v4250_v30  ;;  %v165_v29 = vld [vmem:[#allocation2 + $0x1f8] sm:$0xff]  ;;  %v4201_v30 = vcombine.low %v168_v16, %v172_v17  ;;  %v4179_v17 = vcombine.low %v145_v59, %v149_v37 }
 0x127   :  { %2957 = vmatprep.subr.bf16.mxu1 %v4378_v31  ;;  %v490_v31 = vsub.s32 0, %v5016_v20  ;;  %v4196_v15 = vcombine.high %v161_v28, %v165_v29  ;;  %v4195_v25 = vcombine.low %v161_v28, %v165_v29  ;;  %v133_v28 = vld [vmem:[#allocation2 + $0xf8] sm:$0xff] }
 0x129   :  { %2906 = vmatpush2.bf16.msra.mxu0 %v4249_v34  ;;  %v408_v34 = vld [vmem:[#allocation2 + $0x990] sm:$0xff]  ;;  %v5022_v39 = vrot.slane %v5019_v33, %v490_v31 }
 0x12a   :  { %2958 = vmatpush2.bf16.msra.mxu1 %v4377_v45  ;;  %2907 = vmatprep.subr.bf16.mxu0 %v4242_v36  ;;  %v412_v45 = vld [vmem:[#allocation2 + $0x9b0] sm:$0xff]  ;;  %v153_v36 = vld [vmem:[#allocation2 + $0x198] sm:$0xff] }
 0x12b   :  { %2959 = vmatprep.subr.bf16.mxu1 %v4370_v38  ;;  %v157_v38 = vld [vmem:[#allocation2 + $0x1b8] sm:$0xff]  ;;  %v4442_v41 = vcombine.high %v408_v34, %v412_v45 }
 0x12c   :  { %v4187_v55 = vcombine.low %v153_v36, %v157_v38 }
 0x12d   :  { %2908 = vmatpush2.bf16.msra.mxu0 %v4241_v53  ;;  %v494_v53 = vsub.s32 1, %v5016_v20 }
 0x12e   :  { %2960 = vmatpush2.bf16.msra.mxu1 %v4369_v42  ;;  %2909 = vmatprep.subr.bf16.mxu0 %v4234_v43  ;;  %v4188_v42 = vcombine.high %v153_v36, %v157_v38  ;;  %v400_v43 = vld [vmem:[#allocation2 + $0x950] sm:$0xff] }
 0x12f   :  { %2961 = vmatprep.subr.bf16.mxu1 %v4362_v46  ;;  %v404_v46 = vld [vmem:[#allocation2 + $0x970] sm:$0xff] }
 0x130   :  { %v4434_v58 = vcombine.high %v400_v43, %v404_v46 }
 0x131   :  { %2910 = vmatpush2.bf16.msra.mxu0 %v4233_v50 }
 0x132   :  { %2962 = vmatpush2.bf16.msra.mxu1 %v4361_v12  ;;  %2911 = vmatprep.subr.bf16.mxu0 %v4226_v51  ;;  %v5035_v51 = vld [vmem:[%s5654_s0 + $0x8] ss:$24 sps:$4 sm:$0xff]  }
 0x133   :  { %2963 = vmatprep.subr.bf16.mxu1 %v4354_v52  ;;  %v4441_v52 = vcombine.low %v408_v34, %v412_v45  ;;  %v5071_v34 = vld [vmem:[%s5654_s0 + $0x38] ss:$24 sps:$4 sm:$0xff]  }
 0x135   :  { %2912 = vmatpush2.bf16.msra.mxu0 %v4225_v62 }
 0x136   :  { %2964 = vmatpush2.bf16.msra.mxu1 %v4353_v2  ;;  %2913 = vmatprep.subr.bf16.mxu0 %v4218_v63  ;;  %v5041_v2 = vrot.slane %v5019_v33, %v494_v53  ;;  %v4180_v63 = vcombine.high %v145_v59, %v149_v37 }
 0x137   :  { %2965 = vmatprep.subr.bf16.mxu1 %v4346_v0  ;;  %v392_v0 = vld [vmem:[#allocation2 + $0x910] sm:$0xff] }
 0x138   :  { %v4426_v18 = vcombine.high %v392_v0, %v396_v1 }
 0x139   :  { %2914 = vmatpush2.bf16.msra.mxu0 %v4217_v8  ;;  %v141_v8 = vld [vmem:[#allocation2 + $0x138] sm:$0xff] }
 0x13a   :  { %2966 = vmatpush2.bf16.msra.mxu1 %v4345_v11  ;;  %2915 = vmatprep.subr.bf16.mxu0 %v4210_v13  ;;  %v4171_v45 = vcombine.low %v137_v6, %v141_v8 }
 0x13b   :  { %2967 = vmatprep.subr.bf16.mxu1 %v4338_v14  ;;  %v4433_v14 = vcombine.low %v400_v43, %v404_v46  ;;  %v121_v46 = vld [vmem:[#allocation2 + $0x98] sm:$0xff] }
 0x13d   :  { %2916 = vmatpush2.bf16.msra.mxu0 %v4209_v22 }
 0x13e   :  { %2968 = vmatpush2.bf16.msra.mxu1 %v4337_v21  ;;  %2917 = vmatprep.subr.bf16.mxu0 %v4202_v23  ;;  %v4172_v23 = vcombine.high %v137_v6, %v141_v8  ;;  %v113_v8 = vld [vmem:[#allocation2 + $0x58] sm:$0xff] }
 0x13f   :  { %2969 = vmatprep.subr.bf16.mxu1 %v4330_v24  ;;  %v384_v24 = vld [vmem:[#allocation2 + $0x8d0] sm:$0xff] }
 0x140   :  { %v4418_v36 = vcombine.high %v384_v24, %v388_v27  ;;  %v4417_v37 = vcombine.low %v384_v24, %v388_v27  ;;  %v360_v27 = vld [vmem:[#allocation2 + $0x810] sm:$0xff] }
 0x141   :  { %2918 = vmatpush2.bf16.msra.mxu0 %v4201_v30  ;;  %v5062_v30 = vld [vmem:[%s5654_s0 + $0x30] ss:$24 sps:$4 sm:$0xff]  }
 0x142   :  { %2970 = vmatpush2.bf16.msra.mxu1 %v4329_v32  ;;  %2991 = vmatprep.subr.bf16.mxu0 %v4450_v35  ;;  %v4425_v32 = vcombine.low %v392_v0, %v396_v1  ;;  %v372_v0 = vld [vmem:[#allocation2 + $0x870] sm:$0xff] }
 0x143   :  { %3043 = vmatprep.subr.bf16.mxu1 %v4196_v15 }
 0x144   :  { %v2558_v48 = vpop.f32.mrf.mxu0  ;;  %2920 = vmatmul.mubr.bf16.vlgmr.msra.gmra.mxu0 %v5028_v49 }
 0x145   :  { %v2559_v50 = vadd.f32 %v2558_v48, %v5022_v39  ;;  %v2618_v12 = vpop.f32.mrf.mxu1  ;;  %2992 = vmatpush1.bf16.msra.mxu0 %v4449_v40  ;;  %2972 = vmatmul.mubr.bf16.vlgmr.msra.gmra.mxu1 %v5035_v51  ;;  %v4164_v40 = vcombine.high %v129_v56, %v133_v28  ;;  %v125_v48 = vld [vmem:[#allocation2 + $0xb8] sm:$0xff] }
 0x146   :  { %v2560_v54 = vpop.f32.mrf.mxu0  ;;  %3044 = vmatpush1.bf16.msra.mxu1 %v4195_v25  ;;  %2993 = vmatprep.subr.bf16.mxu0 %v4442_v41  ;;  %v376_v25 = vld [vmem:[#allocation2 + $0x890] sm:$0xff] }
 0x147   :  { %v5038_v61 = vadd.f32 %v2618_v12, %v2559_v50  ;;  %v2620_v62 = vpop.f32.mrf.mxu1  ;;  %3045 = vmatprep.subr.bf16.mxu1 %v4188_v42  ;;  %2925 = vmatprep.mubr.bf16.mxu0 %v5046_v3  ;;  %v380_v41 = vld [vmem:[#allocation2 + $0x8b0] sm:$0xff]  ;;  %v4163_v54 = vcombine.low %v129_v56, %v133_v28 }
 0x148   :  { %v2561_v5 = vpop.f32.mrf.mxu0  ;;  %2977 = vmatprep.mubr.bf16.mxu1 %v5052_v10  ;;  %v4156_v62 = vcombine.high %v121_v46, %v125_v48  ;;  %v364_v56 = vld [vmem:[#allocation2 + $0x830] sm:$0xff] }
 0x149   :  { %v2562_v11 = vadd.f32 %v2561_v5, %v5022_v39  ;;  %v2621_v13 = vpop.f32.mrf.mxu1  ;;  %2994 = vmatpush1.bf16.msra.mxu0 %v4441_v52 }
 0x14a   :  { %v2563_v16 = vpop.f32.mrf.mxu0  ;;  %3046 = vmatpush1.bf16.msra.mxu1 %v4187_v55  ;;  %2995 = vmatprep.subr.bf16.mxu0 %v4434_v58  ;;  %v4410_v55 = vcombine.high %v376_v25, %v380_v41 }
 0x14b   :  { %v5056_v19 = vadd.f32 %v2621_v13, %v2562_v11  ;;  %v2564_v22 = vadd.f32 %v2563_v16, %v5041_v2  ;;  %v2623_v21 = vpop.f32.mrf.mxu1  ;;  %3047 = vmatprep.subr.bf16.mxu1 %v4180_v63  ;;  %v368_v63 = vld [vmem:[#allocation2 + $0x850] sm:$0xff]  ;;  %v117_v11 = vld [vmem:[#allocation2 + $0x78] sm:$0xff] }
 0x14c   :  { %v2567_v29 = vpop.f32.mrf.mxu0  ;;  %2926 = vmatmul.mubr.bf16.gmra.mxu0 %v5062_v30  ;;  %v4148_v24 = vcombine.high %v113_v8, %v117_v11 }
 0x14d   :  { %v5065_v31 = vadd.f32 %v2623_v21, %v2564_v22  ;;  %2996 = vmatpush1.bf16.msra.mxu0 %v4433_v14  ;;  %v2568_v35 = vadd.f32 %v2567_v29, %v5022_v39  ;;  %v2627_v15 = vpop.f32.mrf.mxu1  ;;  %2978 = vmatmul.mubr.bf16.gmra.mxu1 %v5071_v34  ;;  %v4409_v14 = vcombine.low %v376_v25, %v380_v41 }
 0x14e   :  { %3048 = vmatpush1.bf16.msra.mxu1 %v4179_v17  ;;  %2997 = vmatprep.subr.bf16.mxu0 %v4426_v18  ;;  %v2569_v38 = vpop.f32.mrf.mxu0  ;;  %v4155_v22 = vcombine.low %v121_v46, %v125_v48  ;;  %v4402_v21 = vcombine.high %v368_v63, %v372_v0  ;;  %v4394_v25 = vcombine.high %v360_v27, %v364_v56  ;;  %v484_v46 = vld [vmem:[#allocation2 + $0xbf0] sm:$0xff] }
 0x14f   :  { %3049 = vmatprep.subr.bf16.mxu1 %v4172_v23  ;;  %v2570_v53 = vadd.f32 %v2569_v38, %v5041_v2  ;;  %v5075_v42 = vadd.f32 %v2627_v15, %v2568_v35  ;;  %v2629_v43 = vpop.f32.mrf.mxu1  ;;  %2931 = vmatprep.mubr.bf16.mxu0 %v4939_v44  ;;  %v105_v35 = vld [vmem:[#allocation2 + $0x18] sm:$0xff] }
 0x150   :  { %v2571_v59 = vpop.f32.mrf.mxu0  ;;  %2983 = vmatprep.mubr.bf16.mxu1 %v4942_v47  ;;  %v109_v15 = vld [vmem:[#allocation2 + $0x38] sm:$0xff] }
 0x151   :  { %2998 = vmatpush1.bf16.msra.mxu0 %v4425_v32  ;;  %v2572_v50 = vadd.f32 %v2571_v59, %v5022_v39  ;;  %v5080_v12 = vadd.f32 %v2629_v43, %v2570_v53  ;;  %v2631_v52 = vpop.f32.mrf.mxu1  ;;  %v4140_v53 = vcombine.high %v105_v35, %v109_v15  ;;  %v480_v43 = vld [vmem:[#allocation2 + $0xbd0] sm:$0xff]  ;;  %v225_v59 = vld [vmem:[#allocation2 + $0x3d8] sm:$0xff] }
 0x152   :  { %3050 = vmatpush1.bf16.msra.mxu1 %v4171_v45  ;;  %2999 = vmatprep.subr.bf16.mxu0 %v4418_v36  ;;  %v2573_v58 = vpop.f32.mrf.mxu0  ;;  %v4401_v36 = vcombine.low %v368_v63, %v372_v0  ;;  %v221_v63 = vld [vmem:[#allocation2 + $0x3b8] sm:$0xff]  ;;  %v4513_v0 = vcombine.low %v480_v43, %v484_v46 }
 0x153   :  { %3051 = vmatprep.subr.bf16.mxu1 %v4164_v40  ;;  %v2574_v1 = vadd.f32 %v2573_v58, %v5041_v2  ;;  %v5083_v5 = vadd.f32 %v2631_v52, %v2572_v50  ;;  %v2633_v6 = vpop.f32.mrf.mxu1  ;;  %v4147_v40 = vcombine.low %v113_v8, %v117_v11  ;;  %v4393_v50 = vcombine.low %v360_v27, %v364_v56  ;;  %v476_v58 = vld [vmem:[#allocation2 + $0xbb0] sm:$0xff]  ;;  %v201_v56 = vld [vmem:[#allocation2 + $0x318] sm:$0xff] }
 0x154   :  { %v2577_v13 = vpop.f32.mrf.mxu0  ;;  %2932 = vmatmul.mubr.bf16.gmra.mxu0 %v4946_v57  ;;  %v4514_v52 = vcombine.high %v480_v43, %v484_v46  ;;  %v464_v11 = vld [vmem:[#allocation2 + $0xb50] sm:$0xff] }
 0x155   :  { %3000 = vmatpush1.bf16.msra.mxu0 %v4417_v37  ;;  %v2578_v16 = vadd.f32 %v2577_v13, %v5022_v39  ;;  %v5087_v17 = vadd.f32 %v2633_v6, %v2574_v1  ;;  %v2637_v18 = vpop.f32.mrf.mxu1  ;;  %2984 = vmatmul.mubr.bf16.gmra.mxu1 %v4949_v60  ;;  %v5096_v39 = vld [vmem:[%s5654_s0 + $0x14] ss:$24 sps:$4 sm:$0xff]   ;;  %v229_v37 = vld [vmem:[#allocation2 + $0x3f8] sm:$0xff] }
 0x156   :  { %3052 = vmatpush1.bf16.msra.mxu1 %v4163_v54  ;;  %3001 = vmatprep.subr.bf16.mxu0 %v4410_v55  ;;  %v2579_v23 = vpop.f32.mrf.mxu0  ;;  %v4260_v54 = vcombine.high %v225_v59, %v229_v37  ;;  %v472_v55 = vld [vmem:[#allocation2 + $0xb90] sm:$0xff]  ;;  %v4259_v1 = vcombine.low %v225_v59, %v229_v37  ;;  %v185_v37 = vld [vmem:[#allocation2 + $0x298] sm:$0xff] }
 0x157   :  { %3053 = vmatprep.subr.bf16.mxu1 %v4156_v62  ;;  %v2580_v28 = vadd.f32 %v2579_v23, %v5041_v2  ;;  %v5091_v29 = vadd.f32 %v2637_v18, %v2578_v16  ;;  %v2639_v32 = vpop.f32.mrf.mxu1  ;;  %3023 = vmatprep.mubr.bf16.mxu0 %v5096_v39  ;;  %v217_v62 = vld [vmem:[#allocation2 + $0x398] sm:$0xff]  ;;  %v4506_v6 = vcombine.high %v472_v55, %v476_v58  ;;  %v468_v13 = vld [vmem:[#allocation2 + $0xb70] sm:$0xff] }
 0x158   :  { %v2581_v45 = vpop.f32.mrf.mxu0  ;;  %3075 = vmatprep.mubr.bf16.mxu1 %v5007_v4  ;;  %v4139_v4 = vcombine.low %v105_v35, %v109_v15  ;;  %v4252_v8 = vcombine.high %v217_v62, %v221_v63  ;;  %v213_v16 = vld [vmem:[#allocation2 + $0x378] sm:$0xff]  ;;  %v4505_v18 = vcombine.low %v472_v55, %v476_v58  ;;  %v460_v27 = vld [vmem:[#allocation2 + $0xb30] sm:$0xff] }
 0x159   :  { %3002 = vmatpush1.bf16.msra.mxu0 %v4409_v14  ;;  %v5100_v38 = vadd.f32 %v2639_v32, %v2580_v28  ;;  %v2641_v2 = vpop.f32.mrf.mxu1  ;;  %v209_v14 = vld [vmem:[#allocation2 + $0x358] sm:$0xff]  ;;  %v4497_v32 = vcombine.low %v464_v11, %v468_v13  ;;  %v444_v59 = vld [vmem:[#allocation2 + $0xab0] sm:$0xff] }
 0x15a   :  { %3054 = vmatpush1.bf16.msra.mxu1 %v4155_v22  ;;  %3003 = vmatprep.subr.bf16.mxu0 %v4402_v21  ;;  %v2582_v41 = vpop.f32.mrf.mxu0  ;;  %v4251_v22 = vcombine.low %v217_v62, %v221_v63  ;;  %v4498_v21 = vcombine.high %v464_v11, %v468_v13  ;;  %v4244_v23 = vcombine.high %v209_v14, %v213_v16  ;;  %v205_v28 = vld [vmem:[#allocation2 + $0x338] sm:$0xff]  ;;  %v452_v2 = vld [vmem:[#allocation2 + $0xaf0] sm:$0xff] }
 0x15b   :  { %3055 = vmatprep.subr.bf16.mxu1 %v4148_v24  ;;  %v2642_v48 = vpop.f32.mrf.mxu1  ;;  %v456_v24 = vld [vmem:[#allocation2 + $0xb10] sm:$0xff]  ;;  %v4243_v35 = vcombine.low %v209_v14, %v213_v16  ;;  %v4236_v45 = vcombine.high %v201_v56, %v205_v28  ;;  %v177_v63 = vld [vmem:[#allocation2 + $0x258] sm:$0xff] }
 0x15c   :  { %v4490_v15 = vcombine.high %v456_v24, %v460_v27  ;;  %v4489_v41 = vcombine.low %v456_v24, %v460_v27  ;;  %v440_v48 = vld [vmem:[#allocation2 + $0xa90] sm:$0xff]  ;;  %v169_v16 = vld [vmem:[#allocation2 + $0x218] sm:$0xff] }
 0x15d   :  { %3004 = vmatpush1.bf16.msra.mxu0 %v4401_v36  ;;  %v448_v36 = vld [vmem:[#allocation2 + $0xad0] sm:$0xff]  ;;  %v289_v27 = vld [vmem:[#allocation2 + $0x5d8] sm:$0xff] }
 0x15e   :  { %3056 = vmatpush1.bf16.msra.mxu1 %v4147_v40  ;;  %3005 = vmatprep.subr.bf16.mxu0 %v4394_v25  ;;  %v193_v40 = vld [vmem:[#allocation2 + $0x2d8] sm:$0xff]  ;;  %v4482_v43 = vcombine.high %v448_v36, %v452_v2  ;;  %v432_v58 = vld [vmem:[#allocation2 + $0xa50] sm:$0xff] }
 0x15f   :  { %3057 = vmatprep.subr.bf16.mxu1 %v4140_v53  ;;  %v197_v25 = vld [vmem:[#allocation2 + $0x2f8] sm:$0xff]  ;;  %v4235_v53 = vcombine.low %v201_v56, %v205_v28  ;;  %v436_v62 = vld [vmem:[#allocation2 + $0xa70] sm:$0xff] }
 0x160   :  { %v4228_v46 = vcombine.high %v193_v40, %v197_v25  ;;  %v424_v13 = vld [vmem:[#allocation2 + $0xa10] sm:$0xff]  ;;  %v293_v56 = vld [vmem:[#allocation2 + $0x5f8] sm:$0xff] }
 0x161   :  { %3006 = vmatpush1.bf16.msra.mxu0 %v4393_v50  ;;  %v189_v50 = vld [vmem:[#allocation2 + $0x2b8] sm:$0xff]  ;;  %v428_v14 = vld [vmem:[#allocation2 + $0xa30] sm:$0xff] }
 0x162   :  { %3058 = vmatpush1.bf16.msra.mxu1 %v4139_v4  ;;  %3007 = vmatprep.subr.bf16.mxu0 %v4514_v52  ;;  %v4481_v4 = vcombine.low %v448_v36, %v452_v2  ;;  %v4227_v52 = vcombine.low %v193_v40, %v197_v25  ;;  %v4220_v55 = vcombine.high %v185_v37, %v189_v50  ;;  %v417_v28 = vld [vmem:[#allocation2 + $0x9d8] sm:$0xff] }
 0x163   :  { %3059 = vmatprep.subr.bf16.mxu1 %v4260_v54  ;;  %v4474_v54 = vcombine.high %v440_v48, %v444_v59  ;;  %v281_v2 = vld [vmem:[#allocation2 + $0x598] sm:$0xff] }
 0x164   :  { %v285_v40 = vld [vmem:[#allocation2 + $0x5b8] sm:$0xff] }
 0x165   :  { %3008 = vmatpush2.bf16.msra.mxu0 %v4513_v0  ;;  %v181_v0 = vld [vmem:[#allocation2 + $0x278] sm:$0xff] }
 0x166   :  { %3060 = vmatpush2.bf16.msra.mxu1 %v4259_v1  ;;  %3009 = vmatprep.subr.bf16.mxu0 %v4506_v6  ;;  %v4473_v1 = vcombine.low %v440_v48, %v444_v59  ;;  %v4219_v6 = vcombine.low %v185_v37, %v189_v50  ;;  %v4212_v11 = vcombine.high %v177_v63, %v181_v0  ;;  %v409_v25 = vld [vmem:[#allocation2 + $0x998] sm:$0xff] }
 0x167   :  { %3061 = vmatprep.subr.bf16.mxu1 %v4252_v8  ;;  %v4466_v8 = vcombine.high %v432_v58, %v436_v62  ;;  %v4316_v48 = vcombine.high %v281_v2, %v285_v40  ;;  %v273_v37 = vld [vmem:[#allocation2 + $0x558] sm:$0xff] }
 0x168   :  { %v277_v50 = vld [vmem:[#allocation2 + $0x578] sm:$0xff] }
 0x169   :  { %3010 = vmatpush2.bf16.msra.mxu0 %v4505_v18  ;;  %v173_v18 = vld [vmem:[#allocation2 + $0x238] sm:$0xff] }
 0x16a   :  { %3062 = vmatpush2.bf16.msra.mxu1 %v4251_v22  ;;  %3011 = vmatprep.subr.bf16.mxu0 %v4498_v21  ;;  %v4465_v22 = vcombine.low %v432_v58, %v436_v62  ;;  %v4211_v21 = vcombine.low %v177_v63, %v181_v0  ;;  %v4204_v24 = vcombine.high %v169_v16, %v173_v18  ;;  %v502_v63 = vsub.s32 3, %v5016_v20 }
 0x16b   :  { %3063 = vmatprep.subr.bf16.mxu1 %v4244_v23  ;;  %v4458_v23 = vcombine.high %v424_v13, %v428_v14  ;;  %v4315_v0 = vcombine.low %v281_v2, %v285_v40 }
 0x16d   :  { %3012 = vmatpush2.bf16.msra.mxu0 %v4497_v32  ;;  %v421_v32 = vld [vmem:[#allocation2 + $0x9f8] sm:$0xff] }
 0x16e   :  { %3064 = vmatpush2.bf16.msra.mxu1 %v4243_v35  ;;  %3013 = vmatprep.subr.bf16.mxu0 %v4490_v15  ;;  %v4457_v35 = vcombine.low %v424_v13, %v428_v14  ;;  %v4203_v15 = vcombine.low %v169_v16, %v173_v18  ;;  %v4452_v36 = vcombine.high %v417_v28, %v421_v32  ;;  %v265_v14 = vld [vmem:[#allocation2 + $0x518] sm:$0xff] }
 0x16f   :  { %3065 = vmatprep.subr.bf16.mxu1 %v4236_v45  ;;  %v4324_v45 = vcombine.high %v289_v27, %v293_v56  ;;  %v269_v16 = vld [vmem:[#allocation2 + $0x538] sm:$0xff] }
 0x170   :  { %v5124_v18 = vld [vmem:[%s5654_s0 + $0x44] ss:$24 sps:$4 sm:$0xff]  }
 0x171   :  { %3014 = vmatpush2.bf16.msra.mxu0 %v4489_v41  ;;  %v413_v41 = vld [vmem:[#allocation2 + $0x9b8] sm:$0xff] }
 0x172   :  { %3066 = vmatpush2.bf16.msra.mxu1 %v4235_v53  ;;  %3015 = vmatprep.subr.bf16.mxu0 %v4482_v43  ;;  %v4323_v53 = vcombine.low %v289_v27, %v293_v56  ;;  %v498_v43 = vsub.s32 2, %v5016_v20  ;;  %v4444_v59 = vcombine.high %v409_v25, %v413_v41  ;;  %v4307_v56 = vcombine.low %v273_v37, %v277_v50 }
 0x173   :  { %3067 = vmatprep.subr.bf16.mxu1 %v4228_v46  ;;  %v4451_v46 = vcombine.low %v417_v28, %v421_v32 }
 0x175   :  { %3016 = vmatpush2.bf16.msra.mxu0 %v4481_v4 }
 0x176   :  { %3068 = vmatpush2.bf16.msra.mxu1 %v4227_v52  ;;  %3017 = vmatprep.subr.bf16.mxu0 %v4474_v54  ;;  %v5106_v52 = vld [vmem:[%s5654_s0 + $0x10] ss:$24 sps:$4 sm:$0xff]   ;;  %v401_v54 = vld [vmem:[#allocation2 + $0x958] sm:$0xff] }
 0x177   :  { %3069 = vmatprep.subr.bf16.mxu1 %v4220_v55  ;;  %v405_v55 = vld [vmem:[#allocation2 + $0x978] sm:$0xff] }
 0x179   :  { %3018 = vmatpush2.bf16.msra.mxu0 %v4473_v1  ;;  %v5117_v1 = vrot.slane %v5019_v33, %v498_v43  ;;  %v4299_v43 = vcombine.low %v265_v14, %v269_v16 }
 0x17a   :  { %3070 = vmatpush2.bf16.msra.mxu1 %v4219_v6  ;;  %3019 = vmatprep.subr.bf16.mxu0 %v4466_v8  ;;  %v4443_v8 = vcombine.low %v409_v25, %v413_v41  ;;  %v5146_v25 = vld [vmem:[%s5654_s0 + $0x40] ss:$24 sps:$4 sm:$0xff]  }
 0x17b   :  { %3071 = vmatprep.subr.bf16.mxu1 %v4212_v11  ;;  %v4308_v11 = vcombine.high %v273_v37, %v277_v50  ;;  %v385_v41 = vld [vmem:[#allocation2 + $0x8d8] sm:$0xff] }
 0x17d   :  { %3020 = vmatpush2.bf16.msra.mxu0 %v4465_v22  ;;  %v393_v22 = vld [vmem:[#allocation2 + $0x918] sm:$0xff] }
 0x17e   :  { %3072 = vmatpush2.bf16.msra.mxu1 %v4211_v21  ;;  %3021 = vmatprep.subr.bf16.mxu0 %v4458_v23  ;;  %v397_v21 = vld [vmem:[#allocation2 + $0x938] sm:$0xff]  ;;  %v5129_v23 = vrot.slane %v5019_v33, %v502_v63 }
 0x17f   :  { %3073 = vmatprep.subr.bf16.mxu1 %v4204_v24  ;;  %v4428_v33 = vcombine.high %v393_v22, %v397_v21  ;;  %v377_v63 = vld [vmem:[#allocation2 + $0x898] sm:$0xff] }
 0x181   :  { %3022 = vmatpush2.bf16.msra.mxu0 %v4457_v35  ;;  %v4435_v35 = vcombine.low %v401_v54, %v405_v55 }
 0x182   :  { %3074 = vmatpush2.bf16.msra.mxu1 %v4203_v15  ;;  %3096 = vmatprep.subr.bf16.mxu0 %v4324_v45  ;;  %v4300_v15 = vcombine.high %v265_v14, %v269_v16 }
 0x183   :  { %3149 = vmatprep.subr.bf16.mxu1 %v4452_v36  ;;  %v257_v36 = vld [vmem:[#allocation2 + $0x4d8] sm:$0xff] }
 0x184   :  { %v2678_v4 = vpop.f32.mrf.mxu0  ;;  %3024 = vmatmul.mubr.bf16.vlgmr.msra.gmra.mxu0 %v5106_v52 }
 0x185   :  { %v5110_v58 = vadd.f32 %v2678_v4, %v5038_v61  ;;  %v5112_v62 = vpop.f32.mrf.mxu1  ;;  %3097 = vmatpush1.bf16.msra.mxu0 %v4323_v53  ;;  %3076 = vmatmul.mubr.bf16.vlgmr.msra.gmra.mxu1 %v5028_v49  ;;  %v4436_v61 = vcombine.high %v401_v54, %v405_v55  ;;  %v389_v53 = vld [vmem:[#allocation2 + $0x8f8] sm:$0xff] }
 0x186   :  { %v2680_v6 = vpop.f32.mrf.mxu0  ;;  %3150 = vmatpush1.bf16.msra.mxu1 %v4451_v46  ;;  %3098 = vmatprep.subr.bf16.mxu0 %v4316_v48  ;;  %v4427_v48 = vcombine.low %v393_v22, %v397_v21  ;;  %v4420_v50 = vcombine.high %v385_v41, %v389_v53  ;;  %v249_v4 = vld [vmem:[#allocation2 + $0x498] sm:$0xff]  ;;  %v4419_v14 = vcombine.low %v385_v41, %v389_v53 }
 0x187   :  { %v5119_v13 = vpop.f32.mrf.mxu1  ;;  %3151 = vmatprep.subr.bf16.mxu1 %v4444_v59  ;;  %3029 = vmatprep.mubr.bf16.mxu0 %v5124_v18  ;;  %v253_v54 = vld [vmem:[#allocation2 + $0x4b8] sm:$0xff] }
 0x188   :  { %v2681_v49 = vpop.f32.mrf.mxu0  ;;  %3081 = vmatprep.mubr.bf16.mxu1 %v5046_v3  ;;  %v4284_v16 = vcombine.high %v249_v4, %v253_v54  ;;  %v245_v21 = vld [vmem:[#allocation2 + $0x478] sm:$0xff] }
 0x189   :  { %v5132_v24 = vadd.f32 %v2681_v49, %v5056_v19  ;;  %v2742_v27 = vpop.f32.mrf.mxu1  ;;  %3099 = vmatpush1.bf16.msra.mxu0 %v4315_v0  ;;  %v261_v19 = vld [vmem:[#allocation2 + $0x4f8] sm:$0xff] }
 0x18a   :  { %v5135_v28 = vadd.f32 %v2742_v27, %v5117_v1  ;;  %v2683_v32 = vpop.f32.mrf.mxu0  ;;  %3152 = vmatpush1.bf16.msra.mxu1 %v4443_v8  ;;  %3100 = vmatprep.subr.bf16.mxu0 %v4308_v11  ;;  %v4292_v59 = vcombine.high %v257_v36, %v261_v19  ;;  %v381_v0 = vld [vmem:[#allocation2 + $0x8b8] sm:$0xff] }
 0x18b   :  { %5717 = vst [vmem:[#allocation13_spill] sm:$0xff] %v5132_v24  ;;  %v5138_v45 = vadd.f32 %v2683_v32, %v5065_v31  ;;  %v2744_v3 = vpop.f32.mrf.mxu1  ;;  %3153 = vmatprep.subr.bf16.mxu1 %v4436_v61  ;;  %v4412_v22 = vcombine.high %v377_v63, %v381_v0  ;;  %v373_v32 = vld [vmem:[#allocation2 + $0x878] sm:$0xff]  ;;  %v5412_v24 = vld [vmem:[#allocation4] sm:$0xff] }
 0x18c   :  { %v5141_v2 = vadd.f32 %v2744_v3, %v5129_v23  ;;  %v2687_v40 = vpop.f32.mrf.mxu0  ;;  %3030 = vmatmul.mubr.bf16.gmra.mxu0 %v5146_v25  ;;  %v4283_v3 = vcombine.low %v249_v4, %v253_v54  ;;  %5758 = vst [vmem:[#allocation54_spill] sm:$0xff] %v5412_v24 }
 0x18d   :  { %5718 = vst [vmem:[#allocation14_spill] sm:$0xff] %v5138_v45  ;;  %v5150_v31 = vadd.f32 %v2687_v40, %v5075_v42  ;;  %3101 = vmatpush1.bf16.msra.mxu0 %v4307_v56  ;;  %3035 = vmatprep.mubr.bf16.mxu0 %v4982_v9  ;;  %v369_v56 = vld [vmem:[#allocation2 + $0x858] sm:$0xff]  ;;  %v5406_v45 = vld [vmem:[#allocation4 + $0x8] sm:$0xff] }
 0x18e   :  { %v2689_v46 = vpop.f32.mrf.mxu0  ;;  %3154 = vmatpush1.bf16.msra.mxu1 %v4435_v35  ;;  %3102 = vmatprep.subr.bf16.mxu0 %v4300_v15  ;;  %v4404_v53 = vcombine.high %v369_v56, %v373_v32  ;;  %5756 = vst [vmem:[#allocation52_spill] sm:$0xff] %v5406_v45 }
 0x18f   :  { %5719 = vst [vmem:[#allocation15_spill] sm:$0xff] %v5150_v31  ;;  %v5154_v37 = vadd.f32 %v2689_v46, %v5080_v12  ;;  %3155 = vmatprep.subr.bf16.mxu1 %v4428_v33  ;;  %v2748_v55 = vpop.f32.mrf.mxu1  ;;  %3082 = vmatmul.mubr.bf16.gmra.mxu1 %v5062_v30  ;;  %v4291_v12 = vcombine.low %v257_v36, %v261_v19  ;;  %v5398_v31 = vld [vmem:[#allocation4 + $0x38] sm:$0xff] }
 0x190   :  { %v2691_v42 = vpop.f32.mrf.mxu0  ;;  %v5158_v6 = vadd.f32 %v2748_v55, %v5117_v1  ;;  %3087 = vmatprep.mubr.bf16.mxu1 %v4939_v44  ;;  %v241_v44 = vld [vmem:[#allocation2 + $0x458] sm:$0xff]  ;;  %v4411_v36 = vcombine.low %v377_v63, %v381_v0  ;;  %5753 = vst [vmem:[#allocation49_spill] sm:$0xff] %v5398_v31 }
 0x191   :  { %5720 = vst [vmem:[#allocation16_spill] sm:$0xff] %v5154_v37  ;;  %v5162_v8 = vadd.f32 %v2691_v42, %v5083_v5  ;;  %3103 = vmatpush1.bf16.msra.mxu0 %v4299_v43  ;;  %v2750_v11 = vpop.f32.mrf.mxu1  ;;  %v4276_v19 = vcombine.high %v241_v44, %v245_v21  ;;  %v237_v43 = vld [vmem:[#allocation2 + $0x438] sm:$0xff]  ;;  %v4275_v4 = vcombine.low %v241_v44, %v245_v21  ;;  %v5392_v37 = vld [vmem:[#allocation4 + $0x50] sm:$0xff] }
 0x192   :  { %v2693_v61 = vpop.f32.mrf.mxu0  ;;  %3156 = vmatpush1.bf16.msra.mxu1 %v4427_v48  ;;  %3104 = vmatprep.subr.bf16.mxu0 %v4292_v59  ;;  %v5165_v30 = vadd.f32 %v2750_v11, %v5129_v23  ;;  %v361_v48 = vld [vmem:[#allocation2 + $0x818] sm:$0xff]  ;;  %5751 = vst [vmem:[#allocation47_spill] sm:$0xff] %v5392_v37 }
 0x193   :  { %5721 = vst [vmem:[#allocation17_spill] sm:$0xff] %v5162_v8  ;;  %v5168_v49 = vadd.f32 %v2693_v61, %v5087_v17  ;;  %3157 = vmatprep.subr.bf16.mxu1 %v4420_v50  ;;  %v2752_v5 = vpop.f32.mrf.mxu1  ;;  %v353_v0 = vld [vmem:[#allocation2 + $0x7d8] sm:$0xff] }
 0x194   :  { %v2697_v27 = vpop.f32.mrf.mxu0  ;;  %3036 = vmatmul.mubr.bf16.gmra.mxu0 %v4987_v26  ;;  %v5172_v35 = vadd.f32 %v2752_v5, %v5117_v1  ;;  %v481_v61 = vld [vmem:[#allocation2 + $0xbd8] sm:$0xff] }
 0x195   :  { %5722 = vst [vmem:[#allocation18_spill] sm:$0xff] %v5168_v49  ;;  %v5175_v15 = vadd.f32 %v2697_v27, %v5091_v29  ;;  %3105 = vmatpush1.bf16.msra.mxu0 %v4291_v12  ;;  %v2754_v17 = vpop.f32.mrf.mxu1  ;;  %3128 = vmatprep.mubr.bf16.mxu0 %v5013_v7  ;;  %v233_v29 = vld [vmem:[#allocation2 + $0x418] sm:$0xff]  ;;  %v5364_v49 = vld [vmem:[#allocation4 + $0x80] sm:$0xff] }
 0x196   :  { %v2699_v33 = vpop.f32.mrf.mxu0  ;;  %3158 = vmatpush1.bf16.msra.mxu1 %v4419_v14  ;;  %3106 = vmatprep.subr.bf16.mxu0 %v4284_v16  ;;  %v5179_v40 = vadd.f32 %v2754_v17, %v5129_v23  ;;  %v365_v7 = vld [vmem:[#allocation2 + $0x838] sm:$0xff]  ;;  %v4268_v55 = vcombine.high %v233_v29, %v237_v43  ;;  %5742 = vst [vmem:[#allocation38_spill] sm:$0xff] %v5364_v49 }
 0x197   :  { %5723 = vst [vmem:[#allocation19_spill] sm:$0xff] %v5175_v15  ;;  %v5182_v41 = vadd.f32 %v2699_v33, %v5100_v38  ;;  %3159 = vmatprep.subr.bf16.mxu1 %v4412_v22  ;;  %v2758_v46 = vpop.f32.mrf.mxu1  ;;  %3088 = vmatmul.mubr.bf16.gmra.mxu1 %v4946_v57  ;;  %v4403_v38 = vcombine.low %v369_v56, %v373_v32  ;;  %v357_v12 = vld [vmem:[#allocation2 + $0x7f8] sm:$0xff]  ;;  %v5358_v15 = vld [vmem:[#allocation4 + $0x88] sm:$0xff] }
 0x198   :  { %v5186_v59 = vadd.f32 %v2758_v46, %v5117_v1  ;;  %v2701_v50 = vpop.f32.mrf.mxu0  ;;  %3181 = vmatprep.mubr.bf16.mxu1 %v5096_v39  ;;  %v4396_v57 = vcombine.high %v361_v48, %v365_v7  ;;  %v485_v14 = vld [vmem:[#allocation2 + $0xbf8] sm:$0xff]  ;;  %v4267_v39 = vcombine.low %v233_v29, %v237_v43  ;;  %v4395_v22 = vcombine.low %v361_v48, %v365_v7 }
 0x199   :  { %5724 = vst [vmem:[#allocation20_spill] sm:$0xff] %v5182_v41  ;;  %3107 = vmatpush1.bf16.msra.mxu0 %v4283_v3  ;;  %v2760_v54 = vpop.f32.mrf.mxu1  ;;  %v4388_v44 = vcombine.high %v353_v0, %v357_v12  ;;  %v4516_v21 = vcombine.high %v481_v61, %v485_v14  ;;  %v345_v5 = vld [vmem:[#allocation2 + $0x798] sm:$0xff]  ;;  %v4387_v3 = vcombine.low %v353_v0, %v357_v12  ;;  %5740 = vst [vmem:[#allocation36_spill] sm:$0xff] %v5358_v15 }
 0x19a   :  { %3160 = vmatpush1.bf16.msra.mxu1 %v4411_v36  ;;  %3108 = vmatprep.subr.bf16.mxu0 %v4276_v19  ;;  %v5190_v42 = vadd.f32 %v2760_v54, %v5129_v23  ;;  %v2702_v63 = vpop.f32.mrf.mxu0  ;;  %v349_v27 = vld [vmem:[#allocation2 + $0x7b8] sm:$0xff]  ;;  %v4515_v17 = vcombine.low %v481_v61, %v485_v14 }
 0x19b   :  { %3161 = vmatprep.subr.bf16.mxu1 %v4404_v53  ;;  %v2762_v11 = vpop.f32.mrf.mxu1  ;;  %v473_v56 = vld [vmem:[#allocation2 + $0xb98] sm:$0xff]  ;;  %v4380_v33 = vcombine.high %v345_v5, %v349_v27  ;;  %v4379_v46 = vcombine.low %v345_v5, %v349_v27 }
 0x19c   :  { %v477_v32 = vld [vmem:[#allocation2 + $0xbb8] sm:$0xff] }
 0x19d   :  { %3109 = vmatpush1.bf16.msra.mxu0 %v4275_v4  ;;  %v2763_v16 = vpop.f32.mrf.mxu1  ;;  %v4508_v36 = vcombine.high %v473_v56, %v477_v32  ;;  %v337_v19 = vld [vmem:[#allocation2 + $0x758] sm:$0xff]  ;;  %v4507_v48 = vcombine.low %v473_v56, %v477_v32 }
 0x19e   :  { %3162 = vmatpush1.bf16.msra.mxu1 %v4403_v38  ;;  %3110 = vmatprep.subr.bf16.mxu0 %v4268_v55  ;;  %v341_v53 = vld [vmem:[#allocation2 + $0x778] sm:$0xff] }
 0x19f   :  { %3163 = vmatprep.subr.bf16.mxu1 %v4396_v57  ;;  %v465_v29 = vld [vmem:[#allocation2 + $0xb58] sm:$0xff]  ;;  %v4372_v7 = vcombine.high %v337_v19, %v341_v53  ;;  %v4371_v63 = vcombine.low %v337_v19, %v341_v53 }
 0x1a0   :  { %v469_v43 = vld [vmem:[#allocation2 + $0xb78] sm:$0xff] }
 0x1a1   :  { %3111 = vmatpush1.bf16.msra.mxu0 %v4267_v39  ;;  %v4500_v50 = vcombine.high %v465_v29, %v469_v43  ;;  %v329_v4 = vld [vmem:[#allocation2 + $0x718] sm:$0xff]  ;;  %v4499_v57 = vcombine.low %v465_v29, %v469_v43 }
 0x1a2   :  { %3164 = vmatpush1.bf16.msra.mxu1 %v4395_v22  ;;  %3112 = vmatprep.subr.bf16.mxu0 %v4388_v44  ;;  %v333_v54 = vld [vmem:[#allocation2 + $0x738] sm:$0xff] }
 0x1a3   :  { %3165 = vmatprep.subr.bf16.mxu1 %v4516_v21  ;;  %v457_v38 = vld [vmem:[#allocation2 + $0xb18] sm:$0xff]  ;;  %v4364_v0 = vcombine.high %v329_v4, %v333_v54  ;;  %v4363_v16 = vcombine.low %v329_v4, %v333_v54 }
 0x1a4   :  { %v461_v55 = vld [vmem:[#allocation2 + $0xb38] sm:$0xff] }
 0x1a5   :  { %3113 = vmatpush2.bf16.msra.mxu0 %v4387_v3  ;;  %v4492_v12 = vcombine.high %v457_v38, %v461_v55  ;;  %v321_v11 = vld [vmem:[#allocation2 + $0x6d8] sm:$0xff]  ;;  %v4491_v22 = vcombine.low %v457_v38, %v461_v55 }
 0x1a6   :  { %3166 = vmatpush2.bf16.msra.mxu1 %v4515_v17  ;;  %3114 = vmatprep.subr.bf16.mxu0 %v4380_v33  ;;  %v325_v61 = vld [vmem:[#allocation2 + $0x6f8] sm:$0xff] }
 0x1a7   :  { %3167 = vmatprep.subr.bf16.mxu1 %v4508_v36  ;;  %v449_v14 = vld [vmem:[#allocation2 + $0xad8] sm:$0xff]  ;;  %v4356_v44 = vcombine.high %v321_v11, %v325_v61  ;;  %v4355_v3 = vcombine.low %v321_v11, %v325_v61 }
 0x1a8   :  { %v453_v39 = vld [vmem:[#allocation2 + $0xaf8] sm:$0xff] }
 0x1a9   :  { %3115 = vmatpush2.bf16.msra.mxu0 %v4379_v46  ;;  %v4484_v21 = vcombine.high %v449_v14, %v453_v39  ;;  %v313_v5 = vld [vmem:[#allocation2 + $0x698] sm:$0xff]  ;;  %v4483_v17 = vcombine.low %v449_v14, %v453_v39  ;;  %v5192_v14 = vld [vmem:[#allocation4 + $0x1e8] sm:$0xff] }
 0x1aa   :  { %3168 = vmatpush2.bf16.msra.mxu1 %v4507_v48  ;;  %3116 = vmatprep.subr.bf16.mxu0 %v4372_v7  ;;  %v317_v27 = vld [vmem:[#allocation2 + $0x6b8] sm:$0xff]  ;;  %5725 = vst [vmem:[#allocation21_spill] sm:$0xff] %v5192_v14 }
 0x1ab   :  { %3169 = vmatprep.subr.bf16.mxu1 %v4500_v50  ;;  %v441_v56 = vld [vmem:[#allocation2 + $0xa98] sm:$0xff]  ;;  %v4348_v33 = vcombine.high %v313_v5, %v317_v27  ;;  %v4347_v46 = vcombine.low %v313_v5, %v317_v27  ;;  %v5204_v5 = vld [vmem:[#allocation4 + $0x1f0] sm:$0xff]  ;;  %v5206_v27 = vld [vmem:[#allocation4 + $0x1c8] sm:$0xff] }
 0x1ac   :  { %v445_v32 = vld [vmem:[#allocation2 + $0xab8] sm:$0xff] }
 0x1ad   :  { %3117 = vmatpush2.bf16.msra.mxu0 %v4371_v63  ;;  %v4476_v36 = vcombine.high %v441_v56, %v445_v32  ;;  %v305_v19 = vld [vmem:[#allocation2 + $0x658] sm:$0xff]  ;;  %v4475_v48 = vcombine.low %v441_v56, %v445_v32 }
 0x1ae   :  { %3170 = vmatpush2.bf16.msra.mxu1 %v4499_v57  ;;  %3118 = vmatprep.subr.bf16.mxu0 %v4364_v0  ;;  %v309_v53 = vld [vmem:[#allocation2 + $0x678] sm:$0xff] }
 0x1af   :  { %3171 = vmatprep.subr.bf16.mxu1 %v4492_v12  ;;  %v433_v29 = vld [vmem:[#allocation2 + $0xa58] sm:$0xff]  ;;  %v4340_v7 = vcombine.high %v305_v19, %v309_v53  ;;  %v4339_v63 = vcombine.low %v305_v19, %v309_v53  ;;  %v5230_v53 = vld [vmem:[#allocation4 + $0x188] sm:$0xff] }
 0x1b0   :  { %v437_v43 = vld [vmem:[#allocation2 + $0xa78] sm:$0xff] }
 0x1b1   :  { %3119 = vmatpush2.bf16.msra.mxu0 %v4363_v16  ;;  %v4468_v50 = vcombine.high %v433_v29, %v437_v43  ;;  %v297_v4 = vld [vmem:[#allocation2 + $0x618] sm:$0xff]  ;;  %v4467_v57 = vcombine.low %v433_v29, %v437_v43  ;;  %v2739_v16 = vadd.f32 %v5112_v62, %v5117_v1  ;;  %v5212_v1 = vld [vmem:[#allocation4 + $0x1c0] sm:$0xff] }
 0x1b2   :  { %3172 = vmatpush2.bf16.msra.mxu1 %v4491_v22  ;;  %3120 = vmatprep.subr.bf16.mxu0 %v4356_v44  ;;  %v301_v54 = vld [vmem:[#allocation2 + $0x638] sm:$0xff]  ;;  %v5200_v22 = vld [vmem:[#allocation4 + $0x1e0] sm:$0xff]  ;;  %v3202_v44 = vsub.f32 0.0, %v5110_v58  ;;  %v5218_v58 = vld [vmem:[#allocation4 + $0x1a8] sm:$0xff] }
 0x1b3   :  { %3173 = vmatprep.subr.bf16.mxu1 %v4484_v21  ;;  %v425_v38 = vld [vmem:[#allocation2 + $0xa18] sm:$0xff]  ;;  %v4332_v0 = vcombine.high %v297_v4, %v301_v54  ;;  %v4331_v11 = vcombine.low %v297_v4, %v301_v54 }
 0x1b4   :  { %v429_v55 = vld [vmem:[#allocation2 + $0xa38] sm:$0xff] }
 0x1b5   :  { %3121 = vmatpush2.bf16.msra.mxu0 %v4355_v3  ;;  %v4460_v12 = vcombine.high %v425_v38, %v429_v55  ;;  %v4459_v61 = vcombine.low %v425_v38, %v429_v55  ;;  %v5194_v39 = vld [vmem:[#allocation4 + $0x1f8] sm:$0xff]  ;;  %v5246_v55 = vld [vmem:[#allocation4 + $0x180] sm:$0xff] }
 0x1b6   :  { %3174 = vmatpush2.bf16.msra.mxu1 %v4483_v17  ;;  %3122 = vmatprep.subr.bf16.mxu0 %v4348_v33  ;;  %5726 = vst [vmem:[#allocation22_spill] sm:$0xff] %v5194_v39  ;;  %v5210_v62 = vld [vmem:[#allocation4 + $0x1d8] sm:$0xff] }
 0x1b7   :  { %3175 = vmatprep.subr.bf16.mxu1 %v4476_v36  ;;  %v3205_v36 = vmul.f32 1.442695, %v3202_v44  ;;  %v5267_v44 = vld [vmem:[#allocation4 + $0x148] sm:$0xff]  ;;  %v5386_v8 = vld [vmem:[#allocation4 + $0x58] sm:$0xff] }
 0x1b8   :  { %5749 = vst [vmem:[#allocation45_spill] sm:$0xff] %v5386_v8 }
 0x1b9   :  { %3123 = vmatpush2.bf16.msra.mxu0 %v4347_v46  ;;  %4593 = vpow2.f32 %v3205_v36 }
 0x1ba   :  { %3176 = vmatpush2.bf16.msra.mxu1 %v4475_v48  ;;  %3124 = vmatprep.subr.bf16.mxu0 %v4340_v7  ;;  %v5235_v48 = vld [vmem:[#allocation4 + $0x198] sm:$0xff]  ;;  %v2741_v7 = vadd.f32 %v5119_v13, %v5129_v23  ;;  %v5250_v23 = vld [vmem:[#allocation4 + $0x190] sm:$0xff] }
 0x1bb   :  { %3177 = vmatprep.subr.bf16.mxu1 %v4468_v50 }
 0x1bd   :  { %3125 = vmatpush2.bf16.msra.mxu0 %v4339_v63 }
 0x1be   :  { %3178 = vmatpush2.bf16.msra.mxu1 %v4467_v57  ;;  %3126 = vmatprep.subr.bf16.mxu0 %v4332_v0  ;;  %v5252_v57 = vld [vmem:[#allocation4 + $0x168] sm:$0xff] }
 0x1bf   :  { %3179 = vmatprep.subr.bf16.mxu1 %v4460_v12 }
 0x1c1   :  { %3127 = vmatpush2.bf16.msra.mxu0 %v4331_v11  ;;  %v5259_v11 = vld [vmem:[#allocation4 + $0x178] sm:$0xff] }
 0x1c2   :  { %3180 = vmatpush2.bf16.msra.mxu1 %v4459_v61  ;;  %3286 = vmatprep.subr.mxu0 %v5192_v14  ;;  %v5261_v61 = vld [vmem:[#allocation4 + $0x160] sm:$0xff] }
 0x1c3   :  { %3357 = vmatprep.subr.mxu1 %v5194_v39 }
 0x1c4   :  { %v2799_v21 = vpop.f32.mrf.mxu0  ;;  %3129 = vmatmul.mubr.bf16.vlgmr.msra.gmra.mxu0 %v5035_v51  ;;  %v5216_v51 = vld [vmem:[#allocation4 + $0x1d0] sm:$0xff] }
 0x1c5   :  { %v2800_v56 = vadd.f32 %v2799_v21, %v2739_v16  ;;  %v2860_v32 = vpop.f32.mrf.mxu1  ;;  %3182 = vmatmul.mubr.bf16.vlgmr.msra.gmra.mxu1 %v5106_v52  ;;  %3134 = vmatprep.mubr.bf16.mxu0 %v5052_v10  ;;  %v5222_v10 = vld [vmem:[#allocation4 + $0x1b8] sm:$0xff]  ;;  %v5224_v52 = vld [vmem:[#allocation4 + $0x1a0] sm:$0xff]  ;;  %v5265_v16 = vld [vmem:[#allocation4 + $0x170] sm:$0xff] }
 0x1c6   :  { %v2801_v3 = vpop.f32.mrf.mxu0  ;;  %3187 = vmatprep.mubr.bf16.mxu1 %v5124_v18  ;;  %3287 = vmatpush1.msra.mxu0 %v5200_v22  ;;  %v5228_v18 = vld [vmem:[#allocation4 + $0x1b0] sm:$0xff] }
 0x1c7   :  { %v2861_v17 = vadd.f32 %v2860_v32, %v2800_v56  ;;  %v2862_v33 = vpop.f32.mrf.mxu1  ;;  %3358 = vmatpush1.msra.mxu1 %v5204_v5  ;;  %3288 = vmatprep.subr.mxu0 %v5206_v27  ;;  %v2802_v63 = vadd.f32 %v2801_v3, %v2741_v7  ;;  %v5276_v56 = vld [vmem:[#allocation4 + $0x140] sm:$0xff]  ;;  %v5280_v3 = vld [vmem:[#allocation4 + $0x150] sm:$0xff] }
 0x1c8   :  { %v2803_v19 = vpop.f32.mrf.mxu0  ;;  %3359 = vmatprep.subr.mxu1 %v5210_v62  ;;  %3289 = vmatpush1.msra.mxu0 %v5212_v1 }
 0x1c9   :  { %v3203_v29 = vsub.f32 0.0, %v2861_v17  ;;  %v2804_v43 = vadd.f32 %v2803_v19, %v5135_v28  ;;  %v2864_v46 = vpop.f32.mrf.mxu1  ;;  %3360 = vmatpush1.msra.mxu1 %v5216_v51  ;;  %3290 = vmatprep.subr.mxu0 %v5218_v58 }
 0x1ca   :  { %v2805_v50 = vpop.f32.mrf.mxu0  ;;  %3361 = vmatprep.subr.mxu1 %v5222_v10  ;;  %3291 = vmatpush1.msra.mxu0 %v5224_v52 }
 0x1cb   :  { %v3207_v4 = vmul.f32 1.442695, %v3203_v29  ;;  %v5241_v54 = vadd.f32 %v2864_v46, %v2804_v43  ;;  %v2806_v28 = vadd.f32 %v2805_v50, %v5141_v2  ;;  %v2866_v38 = vpop.f32.mrf.mxu1  ;;  %3362 = vmatpush1.msra.mxu1 %v5228_v18  ;;  %3292 = vmatprep.subr.mxu0 %v5230_v53  ;;  %v5289_v29 = vld [vmem:[#allocation4 + $0x138] sm:$0xff]  ;;  %v5293_v43 = vld [vmem:[#allocation4 + $0x120] sm:$0xff]  ;;  %v5300_v50 = vld [vmem:[#allocation4 + $0x130] sm:$0xff] }
 0x1cc   :  { %v2809_v13 = vpop.f32.mrf.mxu0  ;;  %3135 = vmatmul.mubr.bf16.gmra.mxu0 %v5071_v34  ;;  %3363 = vmatprep.subr.mxu1 %v5235_v48 }
 0x1cd   :  { %5727 = vst [vmem:[#allocation23_spill] sm:$0xff] %v5241_v54  ;;  %4595 = vpow2.f32 %v3207_v4  ;;  %v5254_v2 = vadd.f32 %v2866_v38, %v2806_v28  ;;  %v2810_v0 = vadd.f32 %v2809_v13, %v5158_v6  ;;  %v2870_v12 = vpop.f32.mrf.mxu1  ;;  %3188 = vmatmul.mubr.bf16.gmra.mxu1 %v5146_v25  ;;  %3140 = vmatprep.mubr.bf16.mxu0 %v4942_v47  ;;  %v5274_v47 = vld [vmem:[#allocation4 + $0x158] sm:$0xff]  ;;  %v5302_v4 = vld [vmem:[#allocation4 + $0x108] sm:$0xff] }
 0x1ce   :  { %v2811_v34 = vpop.f32.mrf.mxu0  ;;  %3193 = vmatprep.mubr.bf16.mxu1 %v4982_v9  ;;  %3293 = vmatpush1.msra.mxu0 %v5246_v55  ;;  %v2863_v9 = vadd.f32 %v2862_v33, %v2802_v63  ;;  %v5306_v63 = vld [vmem:[#allocation4 + $0x118] sm:$0xff] }
 0x1cf   :  { %5728 = vst [vmem:[#allocation24_spill] sm:$0xff] %v5254_v2  ;;  %v2812_v6 = vadd.f32 %v2811_v34, %v5165_v30  ;;  %v5270_v21 = vadd.f32 %v2870_v12, %v2810_v0  ;;  %v2872_v25 = vpop.f32.mrf.mxu1  ;;  %3364 = vmatpush1.msra.mxu1 %v5250_v23  ;;  %3294 = vmatprep.subr.mxu0 %v5252_v57  ;;  %v5282_v30 = vld [vmem:[#allocation4 + $0x128] sm:$0xff]  ;;  %v5315_v34 = vld [vmem:[#allocation4 + $0x110] sm:$0xff]  ;;  %v5400_v2 = vld [vmem:[#allocation4 + $0x20] sm:$0xff] }
 0x1d0   :  { %v2813_v32 = vpop.f32.mrf.mxu0  ;;  %3365 = vmatprep.subr.mxu1 %v5259_v11  ;;  %3295 = vmatpush1.msra.mxu0 %v5261_v61  ;;  %v3204_v28 = vsub.f32 0.0, %v2863_v9  ;;  %v5323_v9 = vld [vmem:[#allocation4 + $0xe0] sm:$0xff]  ;;  %5754 = vst [vmem:[#allocation50_spill] sm:$0xff] %v5400_v2  ;;  %v5410_v54 = vld [vmem:[#allocation4 + $0x18] sm:$0xff] }
 0x1d1   :  { %5729 = vst [vmem:[#allocation25_spill] sm:$0xff] %v5270_v21  ;;  %v2814_v17 = vadd.f32 %v2813_v32, %v5172_v35  ;;  %v5285_v36 = vadd.f32 %v2872_v25, %v2812_v6  ;;  %v2874_v19 = vpop.f32.mrf.mxu1  ;;  %3366 = vmatpush1.msra.mxu1 %v5265_v16  ;;  %3296 = vmatprep.subr.mxu0 %v5267_v44  ;;  %v5317_v6 = vld [vmem:[#allocation4 + $0xe8] sm:$0xff]  ;;  %v5321_v25 = vld [vmem:[#allocation4 + $0xf8] sm:$0xff]  ;;  %5757 = vst [vmem:[#allocation53_spill] sm:$0xff] %v5410_v54 }
 0x1d2   :  { %v2815_v33 = vpop.f32.mrf.mxu0  ;;  %3367 = vmatprep.subr.mxu1 %v5274_v47  ;;  %3297 = vmatpush1.msra.mxu0 %v5276_v56  ;;  %v5394_v21 = vld [vmem:[#allocation4 + $0x28] sm:$0xff] }
 0x1d3   :  { %5730 = vst [vmem:[#allocation26_spill] sm:$0xff] %v5285_v36  ;;  %v2816_v46 = vadd.f32 %v2815_v33, %v5179_v40  ;;  %v5296_v7 = vadd.f32 %v2874_v19, %v2814_v17  ;;  %v2876_v35 = vpop.f32.mrf.mxu1  ;;  %3368 = vmatpush1.msra.mxu1 %v5280_v3  ;;  %3298 = vmatprep.subr.mxu0 %v5282_v30  ;;  %v5308_v40 = vld [vmem:[#allocation4 + $0x100] sm:$0xff]  ;;  %v5330_v17 = vld [vmem:[#allocation4 + $0xf0] sm:$0xff]  ;;  %v5332_v19 = vld [vmem:[#allocation4 + $0xc8] sm:$0xff]  ;;  %v3209_v33 = vmul.f32 1.442695, %v3204_v28 }
 0x1d4   :  { %v2819_v38 = vpop.f32.mrf.mxu0  ;;  %3141 = vmatmul.mubr.bf16.gmra.mxu0 %v4949_v60  ;;  %3369 = vmatprep.subr.mxu1 %v5289_v29  ;;  %v5388_v36 = vld [vmem:[#allocation4 + $0x40] sm:$0xff]  ;;  %5752 = vst [vmem:[#allocation48_spill] sm:$0xff] %v5394_v21 }
 0x1d5   :  { %5731 = vst [vmem:[#allocation27_spill] sm:$0xff] %v5296_v7  ;;  %v2820_v13 = vadd.f32 %v2819_v38, %v5186_v59  ;;  %v5311_v0 = vadd.f32 %v2876_v35, %v2816_v46  ;;  %v2880_v12 = vpop.f32.mrf.mxu1  ;;  %3194 = vmatmul.mubr.bf16.gmra.mxu1 %v4987_v26  ;;  %3299 = vmatpush1.msra.mxu0 %v5293_v43  ;;  %v5336_v46 = vld [vmem:[#allocation4 + $0xd8] sm:$0xff]  ;;  %v5338_v35 = vld [vmem:[#allocation4 + $0xc0] sm:$0xff]  ;;  %v4594_v38 = vpop.eup %4593  ;;  %4597 = vpow2.f32 %v3209_v33  ;;  %v5370_v7 = vld [vmem:[#allocation4 + $0x68] sm:$0xff] }
 0x1d6   :  { %v2821_v60 = vpop.f32.mrf.mxu0  ;;  %3370 = vmatpush1.msra.mxu1 %v5300_v50  ;;  %3300 = vmatprep.subr.mxu0 %v5302_v4  ;;  %5744 = vst [vmem:[#allocation40_spill] sm:$0xff] %v5370_v7  ;;  %v5374_v33 = vld [vmem:[#allocation4 + $0x78] sm:$0xff]  ;;  %5750 = vst [vmem:[#allocation46_spill] sm:$0xff] %v5388_v36 }
 0x1d7   :  { %5732 = vst [vmem:[#allocation28_spill] sm:$0xff] %v5311_v0  ;;  %v2822_v59 = vadd.f32 %v2821_v60, %v5190_v42  ;;  %v5326_v32 = vadd.f32 %v2880_v12, %v2820_v13  ;;  %v2882_v26 = vpop.f32.mrf.mxu1  ;;  %3371 = vmatprep.subr.mxu1 %v5306_v63  ;;  %3301 = vmatpush1.msra.mxu0 %v5308_v40  ;;  %v5344_v12 = vld [vmem:[#allocation4 + $0xd0] sm:$0xff]  ;;  %v5346_v60 = vld [vmem:[#allocation4 + $0xa8] sm:$0xff]  ;;  %v5362_v0 = vld [vmem:[#allocation4 + $0x98] sm:$0xff] }
 0x1d8   :  { %3372 = vmatpush1.msra.mxu1 %v5315_v34  ;;  %3302 = vmatprep.subr.mxu0 %v5317_v6  ;;  %v2823_v42 = vpop.f32.mrf.mxu0  ;;  %5735 = vst [vmem:[#allocation31_spill] sm:$0xff] %v5344_v12  ;;  %5736 = vst [vmem:[#allocation32_spill] sm:$0xff] %v5346_v60 }
 0x1d9   :  { %5733 = vst [vmem:[#allocation29_spill] sm:$0xff] %v5326_v32  ;;  %v5340_v13 = vadd.f32 %v2882_v26, %v2822_v59  ;;  %3373 = vmatprep.subr.mxu1 %v5321_v25  ;;  %3303 = vmatpush1.msra.mxu0 %v5323_v9  ;;  %v2884_v28 = vpop.f32.mrf.mxu1  ;;  %v5350_v32 = vld [vmem:[#allocation4 + $0xb8] sm:$0xff]  ;;  %v5352_v42 = vld [vmem:[#allocation4 + $0xa0] sm:$0xff]  ;;  %5741 = vst [vmem:[#allocation37_spill] sm:$0xff] %v5362_v0 }
 0x1da   :  { %v4596_v41 = vpop.eup %4595  ;;  %3374 = vmatpush1.msra.mxu1 %v5330_v17  ;;  %3304 = vmatprep.subr.mxu0 %v5332_v19  ;;  %5737 = vst [vmem:[#allocation33_spill] sm:$0xff] %v5350_v32  ;;  %5738 = vst [vmem:[#allocation34_spill] sm:$0xff] %v5352_v42  ;;  %v2824_v59 = vpop.f32.mrf.mxu0 }
 0x1db   :  { %5734 = vst [vmem:[#allocation30_spill] sm:$0xff] %v5340_v13  ;;  %v3212_v26 = vadd.f32 1.0, %v4596_v41  ;;  %3375 = vmatprep.subr.mxu1 %v5336_v46  ;;  %3305 = vmatpush1.msra.mxu0 %v5338_v35  ;;  %v5356_v13 = vld [vmem:[#allocation4 + $0xb0] sm:$0xff]  ;;  %v2885_v28 = vpop.f32.mrf.mxu1  ;;  %v3211_v59 = vadd.f32 1.0, %v4594_v38  ;;  %5745 = vst [vmem:[#allocation41_spill] sm:$0xff] %v5374_v33 }
 0x1dc   :  { %5739 = vst [vmem:[#allocation35_spill] sm:$0xff] %v5356_v13  ;;  %3376 = vmatpush1.msra.mxu1 %v5344_v12  ;;  %3306 = vmatprep.subr.mxu0 %v5346_v60  ;;  %v5368_v41 = vld [vmem:[#allocation4 + $0x90] sm:$0xff]  ;;  %v5376_v28 = vld [vmem:[#allocation4 + $0x60] sm:$0xff] }
 0x1dd   :  { %4599 = vrcp.f32 %v3212_v26  ;;  %3377 = vmatprep.subr.mxu1 %v5350_v32  ;;  %3307 = vmatpush1.msra.mxu0 %v5352_v42  ;;  %5743 = vst [vmem:[#allocation39_spill] sm:$0xff] %v5368_v41  ;;  %5746 = vst [vmem:[#allocation42_spill] sm:$0xff] %v5376_v28  ;;  %v5380_v38 = vld [vmem:[#allocation4 + $0x70] sm:$0xff]  ;;  %v5382_v26 = vld [vmem:[#allocation4 + $0x48] sm:$0xff] }
 0x1de   :  { %3378 = vmatpush1.msra.mxu1 %v5356_v13  ;;  %3308 = vmatprep.subr.mxu0 %v5358_v15  ;;  %5747 = vst [vmem:[#allocation43_spill] sm:$0xff] %v5380_v38  ;;  %5748 = vst [vmem:[#allocation44_spill] sm:$0xff] %v5382_v26  ;;  %4601 = vrcp.f32 %v3211_v59  ;;  %v5404_v59 = vld [vmem:[#allocation4 + $0x30] sm:$0xff] }
 0x1df   :  { %3379 = vmatprep.subr.mxu1 %v5362_v0  ;;  %3309 = vmatpush1.msra.mxu0 %v5364_v49  ;;  %5755 = vst [vmem:[#allocation51_spill] sm:$0xff] %v5404_v59 }
 0x1e0   :  { %3380 = vmatpush1.msra.mxu1 %v5368_v41  ;;  %3310 = vmatprep.subr.mxu0 %v5370_v7 }
 0x1e1   :  { %3381 = vmatprep.subr.mxu1 %v5374_v33  ;;  %3311 = vmatpush1.msra.mxu0 %v5376_v28 }
 0x1e2   :  { %3382 = vmatpush1.msra.mxu1 %v5380_v38  ;;  %3312 = vmatprep.subr.mxu0 %v5382_v26  ;;  %v5416_v26 = vld [vmem:[#allocation4 + $0x10] sm:$0xff] }
 0x1e3   :  { %3383 = vmatprep.subr.mxu1 %v5386_v8  ;;  %3313 = vmatpush1.msra.mxu0 %v5388_v36  ;;  %5759 = vst [vmem:[#allocation55_spill] sm:$0xff] %v5416_v26 }
 0x1e4   :  { %3384 = vmatpush1.msra.mxu1 %v5392_v37  ;;  %3314 = vmatprep.subr.mxu0 %v5394_v21  ;;  %v5685_v37 = vmov 0.0   ;;  %v4598_v21 = vpop.eup %4597 }
 0x1e5   :  { %3385 = vmatprep.subr.mxu1 %v5398_v31  ;;  %3315 = vmatpush1.msra.mxu0 %v5400_v2  ;;  %v3213_v31 = vadd.f32 1.0, %v4598_v21 }
 0x1e6   :  { %3386 = vmatpush1.msra.mxu1 %v5404_v59  ;;  %3316 = vmatprep.subr.mxu0 %v5406_v45 }
 0x1e7   :  { %3387 = vmatprep.subr.mxu1 %v5410_v54  ;;  %3317 = vmatpush1.msra.mxu0 %v5412_v24  ;;  %4603 = vrcp.f32 %v3213_v31 }
 0x1e8   :  { %3350 = vmatprep.mubr.f32.mxu0 %v5685_v37  ;;  %3388 = vmatpush1.msra.mxu1 %v5416_v26 }
 0x1e9   :  { %3421 = vmatprep.mubr.f32.mxu1 %v5685_v37  ;;  %3459 = vmatprep.subr.mxu0 %v5192_v14  ;;  %v5764_v37 = vld [vmem:[#allocation48_spill] sm:$0xff] }
 0x1ea   :  { %v4600_v2 = vpop.eup %4599  ;;  %3530 = vmatprep.subr.mxu1 %v5194_v39 }
 0x1eb   :  { %v3217_v59 = vmul.f32 2.0, %v4600_v2  ;;  %v4602_v36 = vpop.eup %4601 }
 0x1ed   :  { %v4517_v45 = vadd.f32 -1.0, %v3217_v59 }
 0x1ef   :  { %v5427_v54 = vmul.f32 %v4602_v36, %v4517_v45 }
 0x1f1   :  { %4605 = vtanh.f32 %v5427_v54 }
 0x1f4   :  { %v4604_v24 = vpop.eup %4603 }
 0x1fe   :  { %v4606_v8 = vpop.eup %4605 }
 0x1ff   :  { %v3221_v26 = vmul.f32 %v4606_v8, %v4604_v24 }
 0x201   :  { %3351 = vmatmul.mubr.f32.vlgmr.msra.gmra.mxu0 %v3221_v26  ;;  %3422 = vmatmul.mubr.f32.vlgmr.msra.gmra.mxu1 %v3221_v26 }
 0x202   :  { %3460 = vmatpush1.msra.mxu0 %v5200_v22  ;;  %3531 = vmatpush1.msra.mxu1 %v5204_v5 }
 0x203   :  { %3461 = vmatprep.subr.mxu0 %v5206_v27  ;;  %3532 = vmatprep.subr.mxu1 %v5210_v62 }
 0x204   :  { %v2921_v2 = vpop.f32.mrf.mxu0  ;;  %3462 = vmatpush1.msra.mxu0 %v5212_v1  ;;  %3533 = vmatpush1.msra.mxu1 %v5216_v51 }
 0x205   :  { %v2973_v45 = vpop.f32.mrf.mxu1  ;;  %3463 = vmatprep.subr.mxu0 %v5218_v58  ;;  %3534 = vmatprep.subr.mxu1 %v5222_v10  ;;  %v506_v2 = vsub.s32 4, %v5016_v20 }
 0x206   :  { %v2922_v24 = vpop.f32.mrf.mxu0  ;;  %3464 = vmatpush1.msra.mxu0 %v5224_v52  ;;  %3535 = vmatpush1.msra.mxu1 %v5228_v18 }
 0x207   :  { %v2974_v31 = vpop.f32.mrf.mxu1  ;;  %3465 = vmatprep.subr.mxu0 %v5230_v53  ;;  %3536 = vmatprep.subr.mxu1 %v5235_v48 }
 0x208   :  { %v2923_v8 = vpop.f32.mrf.mxu0  ;;  %3466 = vmatpush1.msra.mxu0 %v5246_v55  ;;  %3537 = vmatpush1.msra.mxu1 %v5250_v23 }
 0x209   :  { %v2975_v21 = vpop.f32.mrf.mxu1  ;;  %3467 = vmatprep.subr.mxu0 %v5252_v57  ;;  %3538 = vmatprep.subr.mxu1 %v5259_v11 }
 0x20a   :  { %v2924_v36 = vpop.f32.mrf.mxu0  ;;  %3468 = vmatpush1.msra.mxu0 %v5261_v61  ;;  %3539 = vmatpush1.msra.mxu1 %v5265_v16  ;;  %v5461_v21 = vld [vmem:[#allocation6] sm:$0xff] }
 0x20b   :  { %v2976_v26 = vpop.f32.mrf.mxu1  ;;  %3469 = vmatprep.subr.mxu0 %v5267_v44  ;;  %3540 = vmatprep.subr.mxu1 %v5274_v47  ;;  %v507_v36 = vrot.slane %v5461_v21, %v506_v2 }
 0x20c   :  { %v2927_v59 = vpop.f32.mrf.mxu0  ;;  %3470 = vmatpush1.msra.mxu0 %v5276_v56  ;;  %3541 = vmatpush1.msra.mxu1 %v5280_v3 }
 0x20d   :  { %v2979_v45 = vpop.f32.mrf.mxu1  ;;  %3471 = vmatprep.subr.mxu0 %v5282_v30  ;;  %3542 = vmatprep.subr.mxu1 %v5289_v29 }
 0x20e   :  { %v2928_v24 = vpop.f32.mrf.mxu0  ;;  %3472 = vmatpush1.msra.mxu0 %v5293_v43  ;;  %3543 = vmatpush1.msra.mxu1 %v5300_v50 }
 0x20f   :  { %v2980_v31 = vpop.f32.mrf.mxu1  ;;  %3473 = vmatprep.subr.mxu0 %v5302_v4  ;;  %3544 = vmatprep.subr.mxu1 %v5306_v63 }
 0x210   :  { %v2929_v8 = vpop.f32.mrf.mxu0  ;;  %3474 = vmatpush1.msra.mxu0 %v5308_v40  ;;  %3545 = vmatpush1.msra.mxu1 %v5315_v34 }
 0x211   :  { %v2981_v26 = vpop.f32.mrf.mxu1  ;;  %3475 = vmatprep.subr.mxu0 %v5317_v6  ;;  %3546 = vmatprep.subr.mxu1 %v5321_v25 }
 0x212   :  { %v2930_v59 = vpop.f32.mrf.mxu0  ;;  %3476 = vmatpush1.msra.mxu0 %v5323_v9  ;;  %3547 = vmatpush1.msra.mxu1 %v5330_v17 }
 0x213   :  { %v2982_v45 = vpop.f32.mrf.mxu1  ;;  %3477 = vmatprep.subr.mxu0 %v5332_v19  ;;  %3548 = vmatprep.subr.mxu1 %v5336_v46 }
 0x214   :  { %v2933_v24 = vpop.f32.mrf.mxu0  ;;  %3478 = vmatpush1.msra.mxu0 %v5338_v35  ;;  %3549 = vmatpush1.msra.mxu1 %v5344_v12 }
 0x215   :  { %v2934_v2 = vadd.f32 %v2933_v24, %v507_v36  ;;  %v2985_v31 = vpop.f32.mrf.mxu1  ;;  %3479 = vmatprep.subr.mxu0 %v5346_v60  ;;  %3550 = vmatprep.subr.mxu1 %v5350_v32 }
 0x216   :  { %v2935_v8 = vpop.f32.mrf.mxu0  ;;  %3480 = vmatpush1.msra.mxu0 %v5352_v42  ;;  %3551 = vmatpush1.msra.mxu1 %v5356_v13 }
 0x217   :  { %v2986_v26 = vadd.f32 %v2985_v31, %v2934_v2  ;;  %v2987_v59 = vpop.f32.mrf.mxu1  ;;  %3481 = vmatprep.subr.mxu0 %v5358_v15  ;;  %3552 = vmatprep.subr.mxu1 %v5362_v0  ;;  %v5760_v31 = vld [vmem:[#allocation44_spill] sm:$0xff]  ;;  %v5761_v8 = vld [vmem:[#allocation45_spill] sm:$0xff] }
 0x218   :  { %v2936_v45 = vpop.f32.mrf.mxu0  ;;  %3482 = vmatpush1.msra.mxu0 %v5364_v49  ;;  %3553 = vmatpush1.msra.mxu1 %v5368_v41  ;;  %v5762_v59 = vld [vmem:[#allocation46_spill] sm:$0xff] }
 0x219   :  { %v2988_v36 = vpop.f32.mrf.mxu1  ;;  %3483 = vmatprep.subr.mxu0 %v5370_v7  ;;  %3554 = vmatprep.subr.mxu1 %v5374_v33  ;;  %v5763_v45 = vld [vmem:[#allocation47_spill] sm:$0xff]  ;;  %v5766_v7 = vld [vmem:[#allocation50_spill] sm:$0xff] }
 0x21a   :  { %v2937_v24 = vpop.f32.mrf.mxu0  ;;  %3484 = vmatpush1.msra.mxu0 %v5376_v28  ;;  %3555 = vmatpush1.msra.mxu1 %v5380_v38  ;;  %v5765_v36 = vld [vmem:[#allocation49_spill] sm:$0xff]  ;;  %v5768_v28 = vld [vmem:[#allocation52_spill] sm:$0xff] }
 0x21b   :  { %v2989_v2 = vpop.f32.mrf.mxu1  ;;  %3485 = vmatprep.subr.mxu0 %v5760_v31  ;;  %3556 = vmatprep.subr.mxu1 %v5761_v8  ;;  %v5767_v24 = vld [vmem:[#allocation51_spill] sm:$0xff]  ;;  %v5769_v38 = vld [vmem:[#allocation53_spill] sm:$0xff]  ;;  %v5771_v31 = vmov 0.0  }
 0x21c   :  { %3486 = vmatpush1.msra.mxu0 %v5762_v59  ;;  %3557 = vmatpush1.msra.mxu1 %v5763_v45  ;;  %v5770_v2 = vld [vmem:[#allocation54_spill] sm:$0xff]  ;;  %v5772_v8 = vld [vmem:[#allocation55_spill] sm:$0xff] }
 0x21d   :  { %3487 = vmatprep.subr.mxu0 %v5764_v37  ;;  %3558 = vmatprep.subr.mxu1 %v5765_v36 }
 0x21e   :  { %3488 = vmatpush1.msra.mxu0 %v5766_v7  ;;  %3559 = vmatpush1.msra.mxu1 %v5767_v24 }
 0x21f   :  { %3489 = vmatprep.subr.mxu0 %v5768_v28  ;;  %3560 = vmatprep.subr.mxu1 %v5769_v38 }
 0x220   :  { %3490 = vmatpush1.msra.mxu0 %v5770_v2  ;;  %3523 = vmatprep.mubr.f32.mxu0 %v5771_v31 }
 0x221   :  { %3561 = vmatpush1.msra.mxu1 %v5772_v8  ;;  %3594 = vmatprep.mubr.f32.mxu1 %v5771_v31 }
 0x222   :  { %3632 = vmatprep.subr.mxu0 %v5192_v14  ;;  %3703 = vmatprep.subr.mxu1 %v5194_v39 }
 0x244   :  { %v3025_v36 = vpop.f32.mrf.mxu0 }
 0x245   :  { %v3077_v7 = vpop.f32.mrf.mxu1 }
 0x246   :  { %v3026_v37 = vpop.f32.mrf.mxu0 }
 0x247   :  { %v3078_v24 = vpop.f32.mrf.mxu1 }
 0x248   :  { %v3027_v45 = vpop.f32.mrf.mxu0 }
 0x249   :  { %v3079_v28 = vpop.f32.mrf.mxu1 }
 0x24a   :  { %v3028_v59 = vpop.f32.mrf.mxu0 }
 0x24b   :  { %v3080_v38 = vpop.f32.mrf.mxu1 }
 0x24c   :  { %v3031_v33 = vpop.f32.mrf.mxu0 }
 0x24e   :  { %v3032_v2 = vpop.f32.mrf.mxu0 }
 0x24f   :  { %v3083_v41 = vpop.f32.mrf.mxu1 }
 0x250   :  { %v3033_v49 = vpop.f32.mrf.mxu0 }
 0x251   :  { %v3084_v0 = vpop.f32.mrf.mxu1  ;;  %v510_v49 = vsub.s32 6, %v5016_v20 }
 0x252   :  { %v3034_v8 = vpop.f32.mrf.mxu0 }
 0x253   :  { %v3085_v15 = vpop.f32.mrf.mxu1 }
 0x254   :  { %v3037_v31 = vpop.f32.mrf.mxu0  ;;  %v514_v15 = vsub.s32 7, %v5016_v20 }
 0x255   :  { %v3038_v13 = vadd.f32 %v3037_v31, %v2986_v26  ;;  %v3086_v14 = vpop.f32.mrf.mxu1 }
 0x256   :  { %v3039_v42 = vpop.f32.mrf.mxu0 }
 0x257   :  { %v3089_v39 = vpop.f32.mrf.mxu1  ;;  %v511_v42 = vrot.slane %v5461_v21, %v510_v49 }
 0x258   :  { %v3040_v36 = vpop.f32.mrf.mxu0 }
 0x259   :  { %v3091_v7 = vpop.f32.mrf.mxu1  ;;  %v515_v36 = vrot.slane %v5461_v21, %v514_v15 }
 0x25a   :  { %v3041_v37 = vpop.f32.mrf.mxu0 }
 0x25b   :  { %v3093_v24 = vpop.f32.mrf.mxu1 }
 0x25d   :  { %v3094_v45 = vpop.f32.mrf.mxu1 }
 0x25e   :  { %v3090_v45 = vadd.f32 %v3089_v39, %v511_v42 }
 0x284   :  { %v3130_v28 = vpop.f32.mrf.mxu0 }
 0x285   :  { %v3183_v59 = vpop.f32.mrf.mxu1 }
 0x286   :  { %v3131_v38 = vpop.f32.mrf.mxu0 }
 0x287   :  { %v3184_v33 = vpop.f32.mrf.mxu1  ;;  %v3092_v38 = vadd.f32 %v3091_v7, %v515_v36 }
 0x288   :  { %v3132_v2 = vpop.f32.mrf.mxu0 }
 0x289   :  { %v3185_v0 = vpop.f32.mrf.mxu1  ;;  %v3978_v2 = vsub.f32 0.0, %v3038_v13 }
 0x28a   :  { %v3133_v41 = vpop.f32.mrf.mxu0 }
 0x28b   :  { %v3186_v26 = vpop.f32.mrf.mxu1  ;;  %v3981_v49 = vmul.f32 1.442695, %v3978_v2 }
 0x28c   :  { %v3136_v14 = vpop.f32.mrf.mxu0 }
 0x28d   :  { %v3189_v31 = vpop.f32.mrf.mxu1  ;;  %4607 = vpow2.f32 %v3981_v49 }
 0x28e   :  { %v3137_v8 = vpop.f32.mrf.mxu0 }
 0x28f   :  { %v3190_v37 = vpop.f32.mrf.mxu1 }
 0x290   :  { %v3138_v24 = vpop.f32.mrf.mxu0 }
 0x291   :  { %v3191_v28 = vpop.f32.mrf.mxu1 }
 0x292   :  { %v3139_v59 = vpop.f32.mrf.mxu0 }
 0x293   :  { %v3192_v33 = vpop.f32.mrf.mxu1 }
 0x294   :  { %v3142_v0 = vpop.f32.mrf.mxu0 }
 0x295   :  { %v3143_v41 = vadd.f32 %v3142_v0, %v3090_v45  ;;  %v3195_v32 = vpop.f32.mrf.mxu1 }
 0x296   :  { %v3144_v20 = vpop.f32.mrf.mxu0 }
 0x297   :  { %v3196_v26 = vadd.f32 %v3195_v32, %v3143_v41  ;;  %v3145_v14 = vadd.f32 %v3144_v20, %v3092_v38  ;;  %v3197_v60 = vpop.f32.mrf.mxu1 }
 0x298   :  { %v3146_v31 = vpop.f32.mrf.mxu0 }
 0x299   :  { %v3979_v8 = vsub.f32 0.0, %v3196_v26  ;;  %v3198_v12 = vadd.f32 %v3197_v60, %v3145_v14  ;;  %v3199_v21 = vpop.f32.mrf.mxu1  ;;  %v5774_v26 = vld [vmem:[#allocation23_spill] sm:$0xff] }
 0x29a   :  { %v3147_v15 = vpop.f32.mrf.mxu0  ;;  %v4608_v13 = vpop.eup %4607  ;;  %v5775_v21 = vld [vmem:[#allocation14_spill] sm:$0xff] }
 0x29b   :  { %v3983_v37 = vmul.f32 1.442695, %v3979_v8  ;;  %v3200_v39 = vpop.f32.mrf.mxu1  ;;  %v3980_v7 = vsub.f32 0.0, %v3198_v12  ;;  %v3987_v45 = vadd.f32 1.0, %v4608_v13  ;;  %v5773_v12 = vld [vmem:[#allocation13_spill] sm:$0xff] }
 0x29d   :  { %4609 = vpow2.f32 %v3983_v37  ;;  %v3985_v42 = vmul.f32 1.442695, %v3980_v7 }
 0x29f   :  { %4611 = vpow2.f32 %v3985_v42 }
 0x2aa   :  { %v4610_v36 = vpop.eup %4609 }
 0x2ab   :  { %v3988_v24 = vadd.f32 1.0, %v4610_v36 }
 0x2ac   :  { %v4612_v32 = vpop.eup %4611 }
 0x2ad   :  { %4613 = vrcp.f32 %v3988_v24  ;;  %v3989_v38 = vadd.f32 1.0, %v4612_v32 }
 0x2ae   :  { %4615 = vrcp.f32 %v3987_v45  ;;  %v5776_v45 = vld [vmem:[#allocation24_spill] sm:$0xff] }
 0x2af   :  { %4617 = vrcp.f32 %v3989_v38 }
 0x2ba   :  { %v4614_v28 = vpop.eup %4613 }
 0x2bb   :  { %v3993_v59 = vmul.f32 2.0, %v4614_v28  ;;  %v4616_v33 = vpop.eup %4615 }
 0x2bc   :  { %v4618_v36 = vpop.eup %4617 }
 0x2bd   :  { %v4522_v60 = vadd.f32 -1.0, %v3993_v59 }
 0x2bf   :  { %v3995_v2 = vmul.f32 %v4616_v33, %v4522_v60 }
 0x2c1   :  { %4619 = vtanh.f32 %v3995_v2  ;;  %v3352_v0 = vpop.f32.mrf.mxu0  ;;  %v3423_v41 = vpop.f32.mrf.mxu1 }
 0x2c2   :  { %v3428_v20 = vadd.f32 %v3352_v0, %v5773_v12  ;;  %v3430_v14 = vadd.f32 %v3423_v41, %v5774_v26 }
 0x2c3   :  { %v3354_v49 = vpop.f32.mrf.mxu0  ;;  %v3425_v13 = vpop.f32.mrf.mxu1 }
 0x2c4   :  { %v3432_v31 = vsub.f32 0.0, %v3428_v20  ;;  %v3434_v8 = vsub.f32 0.0, %v3430_v14  ;;  %v3429_v15 = vadd.f32 %v3354_v49, %v5775_v21  ;;  %v3431_v32 = vadd.f32 %v3425_v13, %v5776_v45  ;;  %v5796_v45 = vld [vmem:[#allocation49_spill] sm:$0xff] }
 0x2c6   :  { %v3436_v37 = vmul.f32 1.442695, %v3432_v31  ;;  %v3440_v39 = vmul.f32 1.442695, %v3434_v8  ;;  %v3433_v7 = vsub.f32 0.0, %v3429_v15  ;;  %v3435_v59 = vsub.f32 0.0, %v3431_v32 }
 0x2c7   :  { %v5797_v32 = vld [vmem:[#allocation50_spill] sm:$0xff] }
 0x2c8   :  { %4621 = vpow2.f32 %v3436_v37  ;;  %v3438_v42 = vmul.f32 1.442695, %v3433_v7  ;;  %v3442_v33 = vmul.f32 1.442695, %v3435_v59  ;;  %v5798_v59 = vld [vmem:[#allocation51_spill] sm:$0xff] }
 0x2c9   :  { %4623 = vpow2.f32 %v3440_v39 }
 0x2ca   :  { %4625 = vpow2.f32 %v3438_v42 }
 0x2ce   :  { %v4620_v24 = vpop.eup %4619 }
 0x2cf   :  { %v5508_v28 = vmul.f32 %v4620_v24, %v4618_v36  ;;  %v5794_v36 = vld [vmem:[#allocation47_spill] sm:$0xff]  ;;  %v5795_v24 = vld [vmem:[#allocation48_spill] sm:$0xff] }
 0x2d1   :  { %5777 = vst [vmem:[#allocation13_spill] sm:$0xff] %v5508_v28 }
 0x2d5   :  { %v4622_v38 = vpop.eup %4621 }
 0x2d6   :  { %v4624_v60 = vpop.eup %4623  ;;  %v3444_v12 = vadd.f32 1.0, %v4622_v38  ;;  %v5799_v38 = vld [vmem:[#allocation52_spill] sm:$0xff] }
 0x2d7   :  { %v4626_v2 = vpop.eup %4625  ;;  %v3446_v0 = vadd.f32 1.0, %v4624_v60  ;;  %v5800_v60 = vld [vmem:[#allocation53_spill] sm:$0xff] }
 0x2d8   :  { %v3445_v41 = vadd.f32 1.0, %v4626_v2  ;;  %v5802_v2 = vmov 0.0  }
 0x2d9   :  { %4627 = vrcp.f32 %v3446_v0  ;;  %v5803_v0 = vld [vmem:[#allocation55_spill] sm:$0xff] }
 0x2da   :  { %4629 = vpow2.f32 %v3442_v33  ;;  %v5801_v33 = vld [vmem:[#allocation54_spill] sm:$0xff] }
 0x2db   :  { %4631 = vrcp.f32 %v3445_v41  ;;  %v5804_v41 = vld [vmem:[#allocation21_spill] sm:$0xff] }
 0x2dc   :  { %4633 = vrcp.f32 %v3444_v12  ;;  %v5805_v12 = vld [vmem:[#allocation22_spill] sm:$0xff] }
 0x2e6   :  { %v4628_v20 = vpop.eup %4627 }
 0x2e7   :  { %v4630_v26 = vpop.eup %4629  ;;  %v3452_v14 = vmul.f32 2.0, %v4628_v20 }
 0x2e8   :  { %v4632_v49 = vpop.eup %4631  ;;  %v3447_v21 = vadd.f32 1.0, %v4630_v26 }
 0x2e9   :  { %v4518_v31 = vadd.f32 -1.0, %v3452_v14  ;;  %v4634_v8 = vpop.eup %4633  ;;  %v3454_v37 = vmul.f32 %v4632_v49, %v5427_v54  ;;  %v5790_v54 = vld [vmem:[#allocation43_spill] sm:$0xff] }
 0x2ea   :  { %4635 = vrcp.f32 %v3447_v21  ;;  %v5806_v14 = vld [vmem:[#allocation15_spill] sm:$0xff] }
 0x2eb   :  { %v3455_v15 = vmul.f32 %v4634_v8, %v4518_v31  ;;  %v5807_v31 = vld [vmem:[#allocation25_spill] sm:$0xff] }
 0x2ed   :  { %v5511_v39 = vadd.f32 %v3455_v15, %v3454_v37 }
 0x2ef   :  { %4637 = vtanh.f32 %v5511_v39 }
 0x2f7   :  { %v4636_v7 = vpop.eup %4635 }
 0x2fc   :  { %v4638_v42 = vpop.eup %4637 }
 0x2fd   :  { %v3458_v13 = vmul.f32 %v4638_v42, %v4636_v7  ;;  %v5808_v7 = vld [vmem:[#allocation16_spill] sm:$0xff] }
 0x2ff   :  { %3524 = vmatmul.mubr.f32.vlgmr.msra.gmra.mxu0 %v3458_v13  ;;  %3595 = vmatmul.mubr.f32.vlgmr.msra.gmra.mxu1 %v3458_v13 }
 0x300   :  { %3633 = vmatpush1.msra.mxu0 %v5200_v22  ;;  %3704 = vmatpush1.msra.mxu1 %v5204_v5  ;;  %v5778_v22 = vld [vmem:[#allocation31_spill] sm:$0xff]  ;;  %v5779_v5 = vld [vmem:[#allocation32_spill] sm:$0xff] }
 0x301   :  { %3634 = vmatprep.subr.mxu0 %v5206_v27  ;;  %3705 = vmatprep.subr.mxu1 %v5210_v62  ;;  %v5780_v27 = vld [vmem:[#allocation33_spill] sm:$0xff]  ;;  %v5781_v62 = vld [vmem:[#allocation34_spill] sm:$0xff] }
 0x302   :  { %3635 = vmatpush1.msra.mxu0 %v5212_v1  ;;  %3706 = vmatpush1.msra.mxu1 %v5216_v51  ;;  %v5782_v1 = vld [vmem:[#allocation35_spill] sm:$0xff]  ;;  %v5783_v51 = vld [vmem:[#allocation36_spill] sm:$0xff] }
 0x303   :  { %3636 = vmatprep.subr.mxu0 %v5218_v58  ;;  %3707 = vmatprep.subr.mxu1 %v5222_v10  ;;  %v5784_v58 = vld [vmem:[#allocation37_spill] sm:$0xff]  ;;  %v5785_v10 = vld [vmem:[#allocation38_spill] sm:$0xff] }
 0x304   :  { %3637 = vmatpush1.msra.mxu0 %v5224_v52  ;;  %3708 = vmatpush1.msra.mxu1 %v5228_v18  ;;  %v5786_v52 = vld [vmem:[#allocation39_spill] sm:$0xff]  ;;  %v5787_v18 = vld [vmem:[#allocation40_spill] sm:$0xff] }
 0x305   :  { %3638 = vmatprep.subr.mxu0 %v5230_v53  ;;  %3709 = vmatprep.subr.mxu1 %v5235_v48  ;;  %v5788_v53 = vld [vmem:[#allocation41_spill] sm:$0xff]  ;;  %v5789_v48 = vld [vmem:[#allocation42_spill] sm:$0xff] }
 0x306   :  { %3639 = vmatpush1.msra.mxu0 %v5246_v55  ;;  %3710 = vmatpush1.msra.mxu1 %v5250_v23  ;;  %v5791_v55 = vld [vmem:[#allocation44_spill] sm:$0xff]  ;;  %v5792_v23 = vld [vmem:[#allocation45_spill] sm:$0xff] }
 0x307   :  { %3640 = vmatprep.subr.mxu0 %v5252_v57  ;;  %3711 = vmatprep.subr.mxu1 %v5259_v11  ;;  %v5793_v57 = vld [vmem:[#allocation46_spill] sm:$0xff] }
 0x308   :  { %3641 = vmatpush1.msra.mxu0 %v5261_v61  ;;  %3712 = vmatpush1.msra.mxu1 %v5265_v16 }
 0x309   :  { %3642 = vmatprep.subr.mxu0 %v5267_v44  ;;  %3713 = vmatprep.subr.mxu1 %v5274_v47 }
 0x30a   :  { %3643 = vmatpush1.msra.mxu0 %v5276_v56  ;;  %3714 = vmatpush1.msra.mxu1 %v5280_v3 }
 0x30b   :  { %3644 = vmatprep.subr.mxu0 %v5282_v30  ;;  %3715 = vmatprep.subr.mxu1 %v5289_v29 }
 0x30c   :  { %3645 = vmatpush1.msra.mxu0 %v5293_v43  ;;  %3716 = vmatpush1.msra.mxu1 %v5300_v50 }
 0x30d   :  { %3646 = vmatprep.subr.mxu0 %v5302_v4  ;;  %3717 = vmatprep.subr.mxu1 %v5306_v63 }
 0x30e   :  { %3647 = vmatpush1.msra.mxu0 %v5308_v40  ;;  %3718 = vmatpush1.msra.mxu1 %v5315_v34 }
 0x30f   :  { %3648 = vmatprep.subr.mxu0 %v5317_v6  ;;  %3719 = vmatprep.subr.mxu1 %v5321_v25 }
 0x310   :  { %3649 = vmatpush1.msra.mxu0 %v5323_v9  ;;  %3720 = vmatpush1.msra.mxu1 %v5330_v17 }
 0x311   :  { %3650 = vmatprep.subr.mxu0 %v5332_v19  ;;  %3721 = vmatprep.subr.mxu1 %v5336_v46 }
 0x312   :  { %3651 = vmatpush1.msra.mxu0 %v5338_v35  ;;  %3722 = vmatpush1.msra.mxu1 %v5778_v22 }
 0x313   :  { %3652 = vmatprep.subr.mxu0 %v5779_v5  ;;  %3723 = vmatprep.subr.mxu1 %v5780_v27 }
 0x314   :  { %3653 = vmatpush1.msra.mxu0 %v5781_v62  ;;  %3724 = vmatpush1.msra.mxu1 %v5782_v1 }
 0x315   :  { %3654 = vmatprep.subr.mxu0 %v5783_v51  ;;  %3725 = vmatprep.subr.mxu1 %v5784_v58 }
 0x316   :  { %3655 = vmatpush1.msra.mxu0 %v5785_v10  ;;  %3726 = vmatpush1.msra.mxu1 %v5786_v52 }
 0x317   :  { %3656 = vmatprep.subr.mxu0 %v5787_v18  ;;  %3727 = vmatprep.subr.mxu1 %v5788_v53 }
 0x318   :  { %3657 = vmatpush1.msra.mxu0 %v5789_v48  ;;  %3728 = vmatpush1.msra.mxu1 %v5790_v54 }
 0x319   :  { %3658 = vmatprep.subr.mxu0 %v5791_v55  ;;  %3729 = vmatprep.subr.mxu1 %v5792_v23 }
 0x31a   :  { %3659 = vmatpush1.msra.mxu0 %v5793_v57  ;;  %3730 = vmatpush1.msra.mxu1 %v5794_v36 }
 0x31b   :  { %3660 = vmatprep.subr.mxu0 %v5795_v24  ;;  %3731 = vmatprep.subr.mxu1 %v5796_v45 }
 0x31c   :  { %3661 = vmatpush1.msra.mxu0 %v5797_v32  ;;  %3732 = vmatpush1.msra.mxu1 %v5798_v59 }
 0x31d   :  { %3662 = vmatprep.subr.mxu0 %v5799_v38  ;;  %3733 = vmatprep.subr.mxu1 %v5800_v60 }
 0x31e   :  { %3663 = vmatpush1.msra.mxu0 %v5801_v33  ;;  %3696 = vmatprep.mubr.f32.mxu0 %v5802_v2 }
 0x31f   :  { %3734 = vmatpush1.msra.mxu1 %v5803_v0  ;;  %3767 = vmatprep.mubr.f32.mxu1 %v5802_v2 }
 0x320   :  { %3805 = vmatprep.subr.mxu0 %v5804_v41  ;;  %3876 = vmatprep.subr.mxu1 %v5805_v12  ;;  %v5809_v12 = vld [vmem:[#allocation26_spill] sm:$0xff] }
 0x3bf   :  { %v3525_v20 = vpop.f32.mrf.mxu0  ;;  %v3596_v26 = vpop.f32.mrf.mxu1 }
 0x3c0   :  { %v3601_v49 = vadd.f32 %v3525_v20, %v5806_v14  ;;  %v3603_v8 = vadd.f32 %v3596_v26, %v5807_v31 }
 0x3c1   :  { %v3527_v21 = vpop.f32.mrf.mxu0  ;;  %v3598_v41 = vpop.f32.mrf.mxu1 }
 0x3c2   :  { %v3605_v15 = vsub.f32 0.0, %v3601_v49  ;;  %v3607_v37 = vsub.f32 0.0, %v3603_v8  ;;  %v3602_v42 = vadd.f32 %v3527_v21, %v5808_v7  ;;  %v3604_v33 = vadd.f32 %v3598_v41, %v5809_v12  ;;  %v4706_v12 = vld [vmem:[#allocation4 + $0x1e0] sm:$0xff] }
 0x3c4   :  { %v3609_v13 = vmul.f32 1.442695, %v3605_v15  ;;  %v3613_v28 = vmul.f32 1.442695, %v3607_v37  ;;  %v3606_v0 = vsub.f32 0.0, %v3602_v42  ;;  %v3608_v60 = vsub.f32 0.0, %v3604_v33 }
 0x3c6   :  { %4639 = vpow2.f32 %v3609_v13  ;;  %v3611_v2 = vmul.f32 1.442695, %v3606_v0  ;;  %v3615_v14 = vmul.f32 1.442695, %v3608_v60 }
 0x3c7   :  { %4641 = vpow2.f32 %v3613_v28 }
 0x3c8   :  { %4643 = vpow2.f32 %v3611_v2 }
 0x3d3   :  { %v4640_v38 = vpop.eup %4639 }
 0x3d4   :  { %v4642_v20 = vpop.eup %4641  ;;  %v3617_v8 = vadd.f32 1.0, %v4640_v38 }
 0x3d5   :  { %v4644_v26 = vpop.eup %4643  ;;  %v3619_v31 = vadd.f32 1.0, %v4642_v20  ;;  %v4707_v20 = vld [vmem:[#allocation4 + $0x1f0] sm:$0xff] }
 0x3d6   :  { %v3618_v49 = vadd.f32 1.0, %v4644_v26  ;;  %v4709_v26 = vld [vmem:[#allocation4 + $0x1d8] sm:$0xff] }
 0x3d7   :  { %4645 = vrcp.f32 %v3619_v31  ;;  %v4710_v31 = vld [vmem:[#allocation4 + $0x1c0] sm:$0xff] }
 0x3d8   :  { %4647 = vpow2.f32 %v3615_v14  ;;  %v4708_v14 = vld [vmem:[#allocation4 + $0x1c8] sm:$0xff] }
 0x3d9   :  { %4649 = vrcp.f32 %v3618_v49  ;;  %v4712_v49 = vld [vmem:[#allocation4 + $0x1a8] sm:$0xff] }
 0x3da   :  { %4651 = vrcp.f32 %v3617_v8  ;;  %v4713_v8 = vld [vmem:[#allocation4 + $0x1b8] sm:$0xff] }
 0x3e4   :  { %v4646_v21 = vpop.eup %4645 }
 0x3e5   :  { %v4648_v15 = vpop.eup %4647  ;;  %v3625_v0 = vmul.f32 2.0, %v4646_v21  ;;  %v4714_v21 = vld [vmem:[#allocation4 + $0x1a0] sm:$0xff] }
 0x3e6   :  { %v4650_v28 = vpop.eup %4649  ;;  %v3620_v7 = vadd.f32 1.0, %v4648_v15  ;;  %v4715_v15 = vld [vmem:[#allocation4 + $0x1b0] sm:$0xff] }
 0x3e7   :  { %v4519_v2 = vadd.f32 -1.0, %v3625_v0  ;;  %v4652_v37 = vpop.eup %4651  ;;  %v3627_v33 = vmul.f32 %v4650_v28, %v5511_v39  ;;  %v4711_v39 = vld [vmem:[#allocation4 + $0x1d0] sm:$0xff]  ;;  %v4716_v0 = vld [vmem:[#allocation4 + $0x188] sm:$0xff]  ;;  %v4717_v28 = vld [vmem:[#allocation4 + $0x198] sm:$0xff] }
 0x3e8   :  { %4653 = vrcp.f32 %v3620_v7  ;;  %v4720_v7 = vld [vmem:[#allocation4 + $0x168] sm:$0xff] }
 0x3e9   :  { %v3628_v42 = vmul.f32 %v4652_v37, %v4519_v2  ;;  %v4718_v2 = vld [vmem:[#allocation4 + $0x180] sm:$0xff]  ;;  %v4719_v37 = vld [vmem:[#allocation4 + $0x190] sm:$0xff] }
 0x3eb   :  { %v5585_v13 = vadd.f32 %v3628_v42, %v3627_v33  ;;  %v5819_v33 = vld [vmem:[#allocation13_spill] sm:$0xff] }
 0x3ed   :  { %4655 = vtanh.f32 %v5585_v13 }
 0x3f5   :  { %v4654_v38 = vpop.eup %4653 }
 0x3fa   :  { %v4656_v60 = vpop.eup %4655 }
 0x3fb   :  { %v3631_v41 = vmul.f32 %v4656_v60, %v4654_v38  ;;  %v4029_v38 = vld [vmem:[#allocation7 + $0xf8] sm:$0xff] }
 0x3fc   :  { %v4013_v60 = vld [vmem:[#allocation7 + $0x78] sm:$0xff] }
 0x3fd   :  { %3697 = vmatmul.mubr.f32.vlgmr.msra.gmra.mxu0 %v3631_v41  ;;  %3768 = vmatmul.mubr.f32.vlgmr.msra.gmra.mxu1 %v3631_v41  ;;  %v4028_v41 = vld [vmem:[#allocation7 + $0xf0] sm:$0xff] }
 0x3fe   :  { %3806 = vmatpush1.msra.mxu0 %v4706_v12  ;;  %3877 = vmatpush1.msra.mxu1 %v4707_v20  ;;  %v4012_v12 = vld [vmem:[#allocation7 + $0x70] sm:$0xff]  ;;  %v4011_v20 = vld [vmem:[#allocation7 + $0x68] sm:$0xff] }
 0x3ff   :  { %3807 = vmatprep.subr.mxu0 %v4708_v14  ;;  %3878 = vmatprep.subr.mxu1 %v4709_v26  ;;  %v4026_v14 = vld [vmem:[#allocation7 + $0xe0] sm:$0xff] }
 0x400   :  { %3808 = vmatpush1.msra.mxu0 %v4710_v31  ;;  %3879 = vmatpush1.msra.mxu1 %v4711_v39  ;;  %v4010_v26 = vld [vmem:[#allocation7 + $0x60] sm:$0xff]  ;;  %v4025_v31 = vld [vmem:[#allocation7 + $0xd8] sm:$0xff] }
 0x401   :  { %3809 = vmatprep.subr.mxu0 %v4712_v49  ;;  %3880 = vmatprep.subr.mxu1 %v4713_v8  ;;  %v4009_v39 = vld [vmem:[#allocation7 + $0x58] sm:$0xff]  ;;  %v4024_v49 = vld [vmem:[#allocation7 + $0xd0] sm:$0xff] }
 0x402   :  { %3810 = vmatpush1.msra.mxu0 %v4714_v21  ;;  %3881 = vmatpush1.msra.mxu1 %v4715_v15  ;;  %v4008_v8 = vld [vmem:[#allocation7 + $0x50] sm:$0xff]  ;;  %v4023_v21 = vld [vmem:[#allocation7 + $0xc8] sm:$0xff] }
 0x403   :  { %3811 = vmatprep.subr.mxu0 %v4716_v0  ;;  %3882 = vmatprep.subr.mxu1 %v4717_v28  ;;  %v4007_v15 = vld [vmem:[#allocation7 + $0x48] sm:$0xff]  ;;  %v4022_v0 = vld [vmem:[#allocation7 + $0xc0] sm:$0xff] }
 0x404   :  { %3812 = vmatpush1.msra.mxu0 %v4718_v2  ;;  %3883 = vmatpush1.msra.mxu1 %v4719_v37  ;;  %v4006_v28 = vld [vmem:[#allocation7 + $0x40] sm:$0xff]  ;;  %v4021_v2 = vld [vmem:[#allocation7 + $0xb8] sm:$0xff] }
 0x405   :  { %3813 = vmatprep.subr.mxu0 %v4720_v7  ;;  %3884 = vmatprep.subr.mxu1 %v5259_v11  ;;  %v5810_v11 = vld [vmem:[#allocation52_spill] sm:$0xff]  ;;  %v4020_v7 = vld [vmem:[#allocation7 + $0xb0] sm:$0xff] }
 0x406   :  { %3814 = vmatpush1.msra.mxu0 %v5261_v61  ;;  %3885 = vmatpush1.msra.mxu1 %v5265_v16  ;;  %v5811_v61 = vld [vmem:[#allocation53_spill] sm:$0xff]  ;;  %v5812_v16 = vld [vmem:[#allocation54_spill] sm:$0xff]  ;;  %v4005_v37 = vld [vmem:[#allocation7 + $0x38] sm:$0xff] }
 0x407   :  { %3815 = vmatprep.subr.mxu0 %v5267_v44  ;;  %3886 = vmatprep.subr.mxu1 %v5274_v47  ;;  %v5813_v44 = vmov 0.0   ;;  %v5814_v47 = vld [vmem:[#allocation55_spill] sm:$0xff] }
 0x408   :  { %3816 = vmatpush1.msra.mxu0 %v5276_v56  ;;  %3887 = vmatpush1.msra.mxu1 %v5280_v3 }
 0x409   :  { %3817 = vmatprep.subr.mxu0 %v5282_v30  ;;  %3888 = vmatprep.subr.mxu1 %v5289_v29  ;;  %v5815_v30 = vld [vmem:[#allocation17_spill] sm:$0xff] }
 0x40a   :  { %3818 = vmatpush1.msra.mxu0 %v5293_v43  ;;  %3889 = vmatpush1.msra.mxu1 %v5300_v50  ;;  %v5816_v43 = vld [vmem:[#allocation27_spill] sm:$0xff] }
 0x40b   :  { %3819 = vmatprep.subr.mxu0 %v5302_v4  ;;  %3890 = vmatprep.subr.mxu1 %v5306_v63 }
 0x40c   :  { %3820 = vmatpush1.msra.mxu0 %v5308_v40  ;;  %3891 = vmatpush1.msra.mxu1 %v5315_v34  ;;  %v5817_v34 = vld [vmem:[#allocation18_spill] sm:$0xff] }
 0x40d   :  { %3821 = vmatprep.subr.mxu0 %v5317_v6  ;;  %3892 = vmatprep.subr.mxu1 %v5321_v25 }
 0x40e   :  { %3822 = vmatpush1.msra.mxu0 %v5323_v9  ;;  %3893 = vmatpush1.msra.mxu1 %v5330_v17 }
 0x40f   :  { %3823 = vmatprep.subr.mxu0 %v5332_v19  ;;  %3894 = vmatprep.subr.mxu1 %v5336_v46 }
 0x410   :  { %3824 = vmatpush1.msra.mxu0 %v5338_v35  ;;  %3895 = vmatpush1.msra.mxu1 %v5778_v22  ;;  %v5818_v35 = vld [vmem:[#allocation28_spill] sm:$0xff] }
 0x411   :  { %3825 = vmatprep.subr.mxu0 %v5779_v5  ;;  %3896 = vmatprep.subr.mxu1 %v5780_v27 }
 0x412   :  { %3826 = vmatpush1.msra.mxu0 %v5781_v62  ;;  %3897 = vmatpush1.msra.mxu1 %v5782_v1 }
 0x413   :  { %3827 = vmatprep.subr.mxu0 %v5783_v51  ;;  %3898 = vmatprep.subr.mxu1 %v5784_v58 }
 0x414   :  { %3828 = vmatpush1.msra.mxu0 %v5785_v10  ;;  %3899 = vmatpush1.msra.mxu1 %v5786_v52 }
 0x415   :  { %3829 = vmatprep.subr.mxu0 %v5787_v18  ;;  %3900 = vmatprep.subr.mxu1 %v5788_v53 }
 0x416   :  { %3830 = vmatpush1.msra.mxu0 %v5789_v48  ;;  %3901 = vmatpush1.msra.mxu1 %v5790_v54 }
 0x417   :  { %3831 = vmatprep.subr.mxu0 %v5791_v55  ;;  %3902 = vmatprep.subr.mxu1 %v5792_v23 }
 0x418   :  { %3832 = vmatpush1.msra.mxu0 %v5793_v57  ;;  %3903 = vmatpush1.msra.mxu1 %v5794_v36 }
 0x419   :  { %3833 = vmatprep.subr.mxu0 %v5795_v24  ;;  %3904 = vmatprep.subr.mxu1 %v5796_v45 }
 0x41a   :  { %3834 = vmatpush1.msra.mxu0 %v5797_v32  ;;  %3905 = vmatpush1.msra.mxu1 %v5798_v59 }
 0x41b   :  { %3835 = vmatprep.subr.mxu0 %v5810_v11  ;;  %3906 = vmatprep.subr.mxu1 %v5811_v61  ;;  %v4004_v11 = vld [vmem:[#allocation7 + $0x30] sm:$0xff]  ;;  %v4019_v61 = vld [vmem:[#allocation7 + $0xa8] sm:$0xff] }
 0x41c   :  { %3836 = vmatpush1.msra.mxu0 %v5812_v16  ;;  %3869 = vmatprep.mubr.f32.mxu0 %v5813_v44  ;;  %v4003_v16 = vld [vmem:[#allocation7 + $0x28] sm:$0xff] }
 0x41d   :  { %3907 = vmatpush1.msra.mxu1 %v5814_v47  ;;  %3940 = vmatprep.mubr.f32.mxu1 %v5813_v44  ;;  %v4018_v44 = vld [vmem:[#allocation7 + $0xa0] sm:$0xff] }
 0x41e   :  { %4524 = vmatprep.subr.mxu0 %v4029_v38  ;;  %v4002_v47 = vld [vmem:[#allocation7 + $0x20] sm:$0xff] }
 0x4bd   :  { %v3698_v56 = vpop.f32.mrf.mxu0  ;;  %v3769_v3 = vpop.f32.mrf.mxu1 }
 0x4be   :  { %v3774_v29 = vadd.f32 %v3698_v56, %v5815_v30  ;;  %v3776_v50 = vadd.f32 %v3769_v3, %v5816_v43  ;;  %v4017_v56 = vld [vmem:[#allocation7 + $0x98] sm:$0xff]  ;;  %v4016_v30 = vld [vmem:[#allocation7 + $0x90] sm:$0xff]  ;;  %v4015_v43 = vld [vmem:[#allocation7 + $0x88] sm:$0xff] }
 0x4bf   :  { %v3700_v4 = vpop.f32.mrf.mxu0  ;;  %v3771_v46 = vpop.f32.mrf.mxu1  ;;  %v4001_v3 = vld [vmem:[#allocation7 + $0x18] sm:$0xff] }
 0x4c0   :  { %v3778_v63 = vsub.f32 0.0, %v3774_v29  ;;  %v3780_v40 = vsub.f32 0.0, %v3776_v50  ;;  %v3775_v6 = vadd.f32 %v3700_v4, %v5817_v34  ;;  %v3777_v22 = vadd.f32 %v3771_v46, %v5818_v35  ;;  %v4000_v29 = vld [vmem:[#allocation7 + $0x10] sm:$0xff]  ;;  %v3999_v50 = vld [vmem:[#allocation7 + $0x8] sm:$0xff]  ;;  %v4014_v4 = vld [vmem:[#allocation7 + $0x80] sm:$0xff] }
 0x4c2   :  { %v3782_v25 = vmul.f32 1.442695, %v3778_v63  ;;  %v3786_v9 = vmul.f32 1.442695, %v3780_v40  ;;  %v3779_v17 = vsub.f32 0.0, %v3775_v6  ;;  %v3781_v5 = vsub.f32 0.0, %v3777_v22 }
 0x4c3   :  { %v3998_v63 = vld [vmem:[#allocation7] sm:$0xff]  ;;  %v5820_v6 = vld [vmem:[#allocation19_spill] sm:$0xff] }
 0x4c4   :  { %4657 = vpow2.f32 %v3782_v25  ;;  %v3784_v19 = vmul.f32 1.442695, %v3779_v17  ;;  %v3788_v1 = vmul.f32 1.442695, %v3781_v5  ;;  %v5822_v22 = vld [vmem:[#allocation20_spill] sm:$0xff] }
 0x4c5   :  { %4659 = vpow2.f32 %v3786_v9  ;;  %v5821_v9 = vld [vmem:[#allocation29_spill] sm:$0xff] }
 0x4c6   :  { %4661 = vpow2.f32 %v3784_v19 }
 0x4d1   :  { %v4658_v27 = vpop.eup %4657 }
 0x4d2   :  { %v4660_v62 = vpop.eup %4659  ;;  %v3790_v52 = vadd.f32 1.0, %v4658_v27 }
 0x4d3   :  { %v4662_v51 = vpop.eup %4661  ;;  %v3792_v58 = vadd.f32 1.0, %v4660_v62 }
 0x4d4   :  { %v3791_v10 = vadd.f32 1.0, %v4662_v51 }
 0x4d5   :  { %4663 = vrcp.f32 %v3792_v58 }
 0x4d6   :  { %4665 = vpow2.f32 %v3788_v1 }
 0x4d7   :  { %4667 = vrcp.f32 %v3791_v10  ;;  %v5823_v10 = vld [vmem:[#allocation30_spill] sm:$0xff] }
 0x4d8   :  { %4669 = vrcp.f32 %v3790_v52 }
 0x4e2   :  { %v4664_v18 = vpop.eup %4663 }
 0x4e3   :  { %v4666_v53 = vpop.eup %4665  ;;  %v3798_v48 = vmul.f32 2.0, %v4664_v18 }
 0x4e4   :  { %v4668_v54 = vpop.eup %4667  ;;  %v3793_v57 = vadd.f32 1.0, %v4666_v53 }
 0x4e5   :  { %v4520_v55 = vadd.f32 -1.0, %v3798_v48  ;;  %v4670_v23 = vpop.eup %4669  ;;  %v3800_v24 = vmul.f32 %v4668_v54, %v5585_v13  ;;  %v4027_v13 = vld [vmem:[#allocation7 + $0xe8] sm:$0xff] }
 0x4e6   :  { %4671 = vrcp.f32 %v3793_v57 }
 0x4e7   :  { %v3801_v36 = vmul.f32 %v4670_v23, %v4520_v55 }
 0x4e9   :  { %v5642_v45 = vadd.f32 %v3801_v36, %v3800_v24 }
 0x4eb   :  { %4673 = vtanh.f32 %v5642_v45 }
 0x4f3   :  { %v4672_v32 = vpop.eup %4671 }
 0x4f8   :  { %v4674_v59 = vpop.eup %4673 }
 0x4f9   :  { %v3804_v42 = vmul.f32 %v4674_v59, %v4672_v32 }
 0x4fb   :  { %3870 = vmatmul.mubr.f32.vlgmr.msra.gmra.mxu0 %v3804_v42  ;;  %3941 = vmatmul.mubr.f32.vlgmr.msra.gmra.mxu1 %v3804_v42 }
 0x4fc   :  { %4101 = vmatprep.mubr.f32.mxu0 %v5819_v33  ;;  %4525 = vmatpush3.msra.mxu0 %v4013_v60 }
 0x4fd   :  { %4526 = vmatprep.subr.mxu0 %v4028_v41 }
 0x4fe   :  { %4527 = vmatpush3.msra.mxu0 %v4012_v12 }
 0x4ff   :  { %4528 = vmatprep.subr.mxu0 %v4027_v13 }
 0x500   :  { %4529 = vmatpush3.msra.mxu0 %v4011_v20 }
 0x501   :  { %4530 = vmatprep.subr.mxu0 %v4026_v14 }
 0x502   :  { %4531 = vmatpush3.msra.mxu0 %v4010_v26 }
 0x503   :  { %4532 = vmatprep.subr.mxu0 %v4025_v31 }
 0x504   :  { %4533 = vmatpush3.msra.mxu0 %v4009_v39  ;;  %v4523_v39 = vld [vmem:[#allocation9] ss:$0 sm:$0xff] }
 0x505   :  { %4534 = vmatprep.subr.mxu0 %v4024_v49 }
 0x506   :  { %4535 = vmatpush3.msra.mxu0 %v4008_v8 }
 0x507   :  { %4536 = vmatprep.subr.mxu0 %v4023_v21 }
 0x508   :  { %4537 = vmatpush3.msra.mxu0 %v4007_v15 }
 0x509   :  { %4538 = vmatprep.subr.mxu0 %v4022_v0 }
 0x50a   :  { %4539 = vmatpush3.msra.mxu0 %v4006_v28 }
 0x50b   :  { %4540 = vmatprep.subr.mxu0 %v4021_v2 }
 0x50c   :  { %4541 = vmatpush3.msra.mxu0 %v4005_v37 }
 0x50d   :  { %4542 = vmatprep.subr.mxu0 %v4020_v7 }
 0x50e   :  { %4543 = vmatpush3.msra.mxu0 %v4004_v11 }
 0x50f   :  { %4544 = vmatprep.subr.mxu0 %v4019_v61 }
 0x510   :  { %4545 = vmatpush3.msra.mxu0 %v4003_v16 }
 0x511   :  { %4546 = vmatprep.subr.mxu0 %v4018_v44 }
 0x512   :  { %4547 = vmatpush3.msra.mxu0 %v4002_v47 }
 0x513   :  { %4548 = vmatprep.subr.mxu0 %v4017_v56 }
 0x514   :  { %4549 = vmatpush3.msra.mxu0 %v4001_v3 }
 0x515   :  { %4550 = vmatprep.subr.mxu0 %v4016_v30 }
 0x516   :  { %4551 = vmatpush3.msra.mxu0 %v4000_v29 }
 0x517   :  { %4552 = vmatprep.subr.mxu0 %v4015_v43 }
 0x518   :  { %4553 = vmatpush3.msra.mxu0 %v3999_v50 }
 0x519   :  { %4554 = vmatprep.subr.mxu0 %v4014_v4 }
 0x51a   :  { %4555 = vmatpush3.msra.mxu0 %v3998_v63 }
 0x5bb   :  { %v3871_v40 = vpop.f32.mrf.mxu0  ;;  %v3942_v34 = vpop.f32.mrf.mxu1 }
 0x5bc   :  { %v3947_v25 = vadd.f32 %v3871_v40, %v5820_v6  ;;  %v3949_v17 = vadd.f32 %v3942_v34, %v5821_v9 }
 0x5bd   :  { %v3873_v19 = vpop.f32.mrf.mxu0  ;;  %v3944_v58 = vpop.f32.mrf.mxu1 }
 0x5be   :  { %v3951_v46 = vsub.f32 0.0, %v3947_v25  ;;  %v3953_v35 = vsub.f32 0.0, %v3949_v17  ;;  %v3948_v5 = vadd.f32 %v3873_v19, %v5822_v22  ;;  %v3950_v52 = vadd.f32 %v3944_v58, %v5823_v10 }
 0x5c0   :  { %v3955_v27 = vmul.f32 1.442695, %v3951_v46  ;;  %v3959_v62 = vmul.f32 1.442695, %v3953_v35  ;;  %v3952_v1 = vsub.f32 0.0, %v3948_v5  ;;  %v3954_v18 = vsub.f32 0.0, %v3950_v52 }
 0x5c2   :  { %4675 = vpow2.f32 %v3955_v27  ;;  %v3957_v51 = vmul.f32 1.442695, %v3952_v1  ;;  %v3961_v54 = vmul.f32 1.442695, %v3954_v18 }
 0x5c3   :  { %4677 = vpow2.f32 %v3959_v62 }
 0x5c4   :  { %4679 = vpow2.f32 %v3957_v51 }
 0x5cf   :  { %v4676_v53 = vpop.eup %4675 }
 0x5d0   :  { %v4678_v48 = vpop.eup %4677  ;;  %v3963_v36 = vadd.f32 1.0, %v4676_v53 }
 0x5d1   :  { %v4680_v55 = vpop.eup %4679  ;;  %v3965_v23 = vadd.f32 1.0, %v4678_v48 }
 0x5d2   :  { %v3964_v57 = vadd.f32 1.0, %v4680_v55 }
 0x5d3   :  { %4681 = vrcp.f32 %v3965_v23 }
 0x5d4   :  { %4683 = vpow2.f32 %v3961_v54 }
 0x5d5   :  { %4685 = vrcp.f32 %v3964_v57 }
 0x5d6   :  { %4687 = vrcp.f32 %v3963_v36 }
 0x5e0   :  { %v4682_v24 = vpop.eup %4681 }
 0x5e1   :  { %v4684_v32 = vpop.eup %4683  ;;  %v3971_v59 = vmul.f32 2.0, %v4682_v24 }
 0x5e2   :  { %v4686_v42 = vpop.eup %4685  ;;  %v3966_v60 = vadd.f32 1.0, %v4684_v32 }
 0x5e3   :  { %v4521_v33 = vadd.f32 -1.0, %v3971_v59  ;;  %v4688_v38 = vpop.eup %4687  ;;  %v3973_v12 = vmul.f32 %v4686_v42, %v5642_v45 }
 0x5e4   :  { %4689 = vrcp.f32 %v3966_v60 }
 0x5e5   :  { %v3974_v41 = vmul.f32 %v4688_v38, %v4521_v33 }
 0x5e7   :  { %v3975_v13 = vadd.f32 %v3974_v41, %v3973_v12 }
 0x5e9   :  { %4691 = vtanh.f32 %v3975_v13 }
 0x5f1   :  { %v4690_v20 = vpop.eup %4689 }
 0x5f6   :  { %v4692_v14 = vpop.eup %4691 }
 0x5f7   :  { %v3977_v26 = vmul.f32 %v4692_v14, %v4690_v20 }
 0x5f9   :  { %4102 = vmatmul.mubr.f32.vlgmr.msra.gmra.mxu0 %v3977_v26 }
 0x6b9   :  { %v4556_v31 = vpop.f32.mrf.mxu0 }
 0x6bb   :  { %v4557_v49 = vpop.f32.mrf.mxu0 }
 0x6bc   :  { %v4558_v8 = vadd.f32 %v4557_v49, %v4556_v31 }
 0x6be   :  { %v4104_v21 = vadd.f32 %v4558_v8, %v4523_v39 }
 0x6c0   :  { %4107 = vst [vmem:[%s5660_s6] sm:$0xff] %v4104_v21 }
 0x6c1   :  { %4112 = vsyncpa [#allocation3], 1 }
 0x6c2   :  { %4113 = vsyncpa [#allocation5], 1 }
 0x6c3   :  { %4114 = vsyncpa [#allocation8], 1 }

</bundles_post_ra>
